<compile_context>
chip_gen: v7x
topology: tpu7x:2x2x1
jax: 0.10.0
libtpu: 0.0.40
codegen_flags: <defaults>
</compile_context>

<pallas_src>
import functools

import numpy as np
import jax
import jax.numpy as jnp
from jax import lax
from jax.experimental import pallas as pl
from jax.experimental.pallas import tpu as pltpu

# ---------------- scaled-down dimensions (stand-ins for the ResNet-50-sized originals) ------
B = 2                    # batch
C = 64                   # backbone output channels        (2048 in the original)
H = W = 8                # backbone output spatial         (7x7 in the original)
RED = 16                 # SE reduction                    (16, as in the original)
CSE = C // RED           # SE bottleneck channels
C2 = 32                  # additional_conv out channels    (512 in the original)
HP, WP = H // 2, W // 2  # spatial after the 2x2 maxpool
NP = HP * WP             # pooled spatial positions per image
F = C2 * NP              # flattened trunk feature size
H1, H2 = 128, 64         # fc_symbol / fc_context hidden   (1024 / 512 in the original)
D1, D2 = 128, 64         # fc_distribution hidden          (exactly as in the original)
NIMG = 2 * B             # both siamese branches stacked
HW = H * W
R = NIMG * HW            # rows of the (row = image*spatial, lane = channel) activation
BHW = B * HW
N1 = 2 * H1 + D1         # packed head layer-1 width (sym | ctx | dist)
N2 = 2 * H2 + D2         # packed head layer-2 width
NOUT = 128               # lane-dense packed output width (cols 0/1/2 used)
BN_EPS = 1e-5


def _build_conv_masks():
    """Per-row 0/1 boundary masks for the 9 conv taps, precomputed on the host (no in-kernel
    iota/where work).  mask[r, k] = 1 iff the tap (dy, dx) of row r stays inside its image."""
    r = np.arange(R)
    i = (r // W) % H
    j = r % W
    masks = np.zeros((R, 9), np.float32)
    for k in range(9):
        dy, dx = k // 3 - 1, k % 3 - 1
        valid = (i + dy >= 0) & (i + dy < H) & (j + dx >= 0) & (j + dx < W)
        masks[:, k] = valid.astype(np.float32)
    return masks


_CONV_MASKS = _build_conv_masks()


def _siamese_forward_kernel(feat_ref, boxes_ref, se_ref, mask_ref, wconv_ref,
                            w1_ref, w2_ref, w3_ref, misc_ref, out_ref):
    f32 = jnp.float32
    bf16 = jnp.bfloat16

    x = feat_ref[...]                                        # (R, C) f32

    # ---------------- SE block (per-image squeeze & excite) ----------------
    se = se_ref[...]
    se_w1 = se[0:C, 0:CSE]
    se_w2 = se[C:C + CSE, :]
    se_b1 = se[C + CSE:C + CSE + 1, 0:CSE]
    se_b2 = se[C + CSE + 1:C + CSE + 2, :]

    x3 = x.reshape(NIMG, HW, C)                              # leading-dim split (safe reshape)
    pooled = jnp.mean(x3, axis=1)                            # (NIMG, C) global avg pool
    s_hid = jnp.maximum(
        jnp.dot(pooled, se_w1, preferred_element_type=f32) + se_b1, 0.0)
    gate = 1.0 / (1.0 + jnp.exp(
        -(jnp.dot(s_hid, se_w2, preferred_element_type=f32) + se_b2)))     # (NIMG, C)
    x_se = (x3 * gate[:, None, :]).reshape(R, C)             # broadcast gate, back to (R, C)

    # ------ 3x3 SAME conv as ONE im2col matmul (9 rolled + masked taps, bf16) ------
    masks = mask_ref[...]                                    # (R, 9) f32
    pieces = []
    for k in range(9):
        dy, dx = k // 3 - 1, k % 3 - 1
        off = dy * W + dx
        if off == 0:
            tap = x_se                                       # centre tap is always valid
        else:
            # rolled[r] = x_se[(r + off) % R]; mask kills rows whose neighbour is outside
            # the image (this also covers every wrapped / cross-image row).
            tap = pltpu.roll(x_se, shift=(-off) % R, axis=0) * masks[:, k:k + 1]
        pieces.append(tap.astype(bf16))
    im2col = jnp.concatenate(pieces, axis=1)                 # (R, 9*C) bf16
    acc = jnp.dot(im2col, wconv_ref[...], preferred_element_type=f32)       # (R, C2)

    misc = misc_ref[...]                                     # (12, N1) f32
    scale = misc[3:4, 0:C2]                                  # conv-bias + BN folded host-side
    shift = misc[3:4, C2:2 * C2]
    y = jnp.maximum(acc * scale + shift, 0.0)                # (R, C2)

    # ---------------- 2x2 / stride-2 maxpool via rolls ----------------
    # Only rows with even (i, j) are consumed downstream, and for those the three shifted
    # reads never wrap or cross an image boundary, so no masking is needed here.
    m = jnp.maximum(
        jnp.maximum(y, pltpu.roll(y, shift=R - 1, axis=0)),
        jnp.maximum(pltpu.roll(y, shift=R - W, axis=0),
                    pltpu.roll(y, shift=R - W - 1, axis=0)))

    # ------------- |out1 - out2| and lane-major flatten of the pooled rows -------------
    d_full = jnp.abs(m[:BHW, :] - m[BHW:, :])                # (B*HW, C2)
    blocks = []
    for p in range(NP):                                      # NHWC flatten order (hp, wp, c)
        q = (p // WP) * (2 * W) + (p % WP) * 2
        blocks.append(jnp.concatenate(
            [d_full[q:q + 1, :], d_full[HW + q:HW + q + 1, :]], axis=0))    # (B, C2)
    d_flat = jnp.concatenate(blocks, axis=1).astype(bf16)    # (B, F) lane-major

    # ------------- fused symbol / distribution / context heads (one dot per layer) -------------
    b1 = misc[0:1, :]
    b2 = misc[1:2, 0:N2]
    b3 = misc[2:3, 0:NOUT]
    w1_box = misc[4:12, :]                                   # (8, N1): dist layer-1 weights

    h1 = jnp.dot(d_flat, w1_ref[...], preferred_element_type=f32)
    h1 = h1 + jnp.dot(boxes_ref[...], w1_box, preferred_element_type=f32) + b1
    h1 = jnp.maximum(h1, 0.0)                                # (B, N1)
    h2 = jnp.maximum(
        jnp.dot(h1.astype(bf16), w2_ref[...], preferred_element_type=f32) + b2, 0.0)
    out_ref[...] = jnp.dot(h2.astype(bf16), w3_ref[...], preferred_element_type=f32) + b3


@jax.jit
def siamese_forward(params, f1, f2, box1, box2):
    """Pallas forward of AdvancedSiameseNetwork from the SE block onward.

    f1, f2 : (B, C, H, W) feature maps produced by the (untranslated) ResNet-50 backbone.
    box1, box2 : (B, 4).
    Returns (symbol_similarity, distribution_similarity, context_similarity), each (B, 1).
    """
    f32, bf16 = jnp.float32, jnp.bfloat16

    # Stack both siamese branches into ONE slab: rows = (image, i, j), lanes = channels.
    feat = jnp.concatenate([f1, f2], axis=0)                                 # (2B, C, H, W)
    feat = jnp.transpose(feat, (0, 2, 3, 1)).reshape(R, C).astype(f32)       # (R, C)
    boxes = jnp.concatenate([box1, box2], axis=1).astype(f32)                # (B, 8)

    # --- SE slab: [se_w1 (padded) ; se_w2 ; se_b1 (padded) ; se_b2] -> (C+CSE+2, C) ---
    se_slab = jnp.concatenate([
        jnp.pad(params["se_w1"], ((0, 0), (0, C - CSE))),
        params["se_w2"],
        jnp.pad(params["se_b1"], ((0, 0), (0, C - CSE))),
        params["se_b2"]], axis=0)

    masks = jnp.asarray(_CONV_MASKS)                                         # (R, 9)

    # --- conv weight as im2col layout (tap-major, channel-minor), bf16 ---
    w_conv = params["conv_w"].reshape(9 * C, C2).astype(bf16)                # (9C, C2)

    # --- packed heads: cols 0:128 sym, 128:256 ctx, 256:384 dist (block-diagonal) ---
    w1_heads = jnp.concatenate(
        [params["sym_w1"], params["ctx_w1"], jnp.zeros((F, D1), f32)], axis=1).astype(bf16)
    w2 = jnp.zeros((N1, N2), f32)
    w2 = w2.at[0:H1, 0:H2].set(params["sym_w2"])
    w2 = w2.at[H1:2 * H1, H2:2 * H2].set(params["ctx_w2"])
    w2 = w2.at[2 * H1:N1, 2 * H2:N2].set(params["dist_w2"])
    w2 = w2.astype(bf16)
    w3 = jnp.zeros((N2, NOUT), f32)                    # output cols: 0=sym, 1=dist, 2=ctx
    w3 = w3.at[0:H2, 0:1].set(params["sym_w3"])
    w3 = w3.at[H2:2 * H2, 2:3].set(params["ctx_w3"])
    w3 = w3.at[2 * H2:N2, 1:2].set(params["dist_w3"])
    w3 = w3.astype(bf16)

    b1 = jnp.concatenate([params["sym_b1"], params["ctx_b1"], params["dist_b1"]], axis=1)
    b2 = jnp.concatenate([params["sym_b2"], params["ctx_b2"], params["dist_b2"]], axis=1)
    b3 = jnp.zeros((1, NOUT), f32)
    b3 = b3.at[0:1, 0:1].set(params["sym_b3"])
    b3 = b3.at[0:1, 1:2].set(params["dist_b3"])
    b3 = b3.at[0:1, 2:3].set(params["ctx_b3"])

    # conv bias + BatchNorm (inference running stats) folded into per-channel scale/shift.
    scale = params["bn_gamma"] * jax.lax.rsqrt(params["bn_var"] + BN_EPS)    # (1, C2)
    shift = params["bn_beta"] + (params["conv_b"] - params["bn_mean"]) * scale

    # dist layer-1 weight placed in the dist column block.
    w1_box = jnp.concatenate([jnp.zeros((8, 2 * H1), f32), params["dist_w1"]], axis=1)

    # --- misc slab (12, N1): biases, BN scale/shift and the tiny box weights packed together ---
    misc = jnp.concatenate([
        b1,
        jnp.pad(b2, ((0, 0), (0, N1 - N2))),
        jnp.pad(b3, ((0, 0), (0, N1 - NOUT))),
        jnp.pad(jnp.concatenate([scale, shift], axis=1), ((0, 0), (0, N1 - 2 * C2))),
        w1_box], axis=0)

    vmem = pl.BlockSpec(memory_space=pltpu.VMEM)
    out = pl.pallas_call(
        _siamese_forward_kernel,
        out_shape=jax.ShapeDtypeStruct((B, NOUT), jnp.float32),
        in_specs=[vmem] * 9,
        out_specs=vmem,
    )(feat, boxes, se_slab, masks, w_conv, w1_heads, w2, w3, misc)

    return out[:, 0:1], out[:, 1:2], out[:, 2:3]     # (symbol, distribution, context)


def init_params(key):
    keys = iter(jax.random.split(key, 40))

    def w(shape, fan_in):
        return jax.random.normal(next(keys), shape, jnp.float32) / np.sqrt(fan_in)

    def b(shape):
        return 0.1 * jax.random.normal(next(keys), shape, jnp.float32)

    p = {
        "se_w1": w((C, CSE), C), "se_b1": b((1, CSE)),
        "se_w2": w((CSE, C), CSE), "se_b2": b((1, C)),
        "conv_w": w((3, 3, C, C2), 9 * C), "conv_b": b((1, C2)),     # HWIO layout
        "bn_gamma": 1.0 + b((1, C2)), "bn_beta": b((1, C2)),
        "bn_mean": b((1, C2)), "bn_var": 1.0 + jnp.abs(b((1, C2))),
    }
    for name in ("sym", "ctx"):
        p[f"{name}_w1"] = w((F, H1), F)
        p[f"{name}_b1"] = b((1, H1))
        p[f"{name}_w2"] = w((H1, H2), H1)
        p[f"{name}_b2"] = b((1, H2))
        p[f"{name}_w3"] = w((H2, 1), H2)
        p[f"{name}_b3"] = b((1, 1))
    p["dist_w1"] = w((8, D1), 8)
    p["dist_b1"] = b((1, D1))
    p["dist_w2"] = w((D1, D2), D1)
    p["dist_b2"] = b((1, D2))
    p["dist_w3"] = w((D2, 1), D2)
    p["dist_b3"] = b((1, 1))
    return p


def reference_forward(params, f1, f2, box1, box2):
    """Pure-JAX f32 reference with identical math (NHWC flatten, inference-mode BN)."""
    hi = jax.lax.Precision.HIGHEST
    dot = functools.partial(jnp.dot, precision=hi)

    def trunk(x_nchw):
        x = jnp.transpose(x_nchw, (0, 2, 3, 1))                          # (B, H, W, C)
        pooled = jnp.mean(x, axis=(1, 2))                                # (B, C)
        s = jax.nn.relu(dot(pooled, params["se_w1"]) + params["se_b1"])
        g = jax.nn.sigmoid(dot(s, params["se_w2"]) + params["se_b2"])
        x = x * g[:, None, None, :]
        y = lax.conv_general_dilated(x, params["conv_w"], (1, 1), "SAME",
                                     dimension_numbers=("NHWC", "HWIO", "NHWC"),
                                     precision=hi)
        y = y + params["conv_b"].reshape(1, 1, 1, C2)
        scale = (params["bn_gamma"] / jnp.sqrt(params["bn_var"] + BN_EPS)).reshape(1, 1, 1, C2)
        y = (y - params["bn_mean"].reshape(1, 1, 1, C2)) * scale + params["bn_beta"].reshape(1, 1, 1, C2)
        y = jax.nn.relu(y)
        y = y.reshape(B, HP, 2, WP, 2, C2).max(axis=(2, 4))              # (B, HP, WP, C2)
        return y.reshape(B, F)                                           # NHWC flatten

    def mlp(x, pre):
        h = jax.nn.relu(dot(x, params[pre + "_w1"]) + params[pre + "_b1"])
        h = jax.nn.relu(dot(h, params[pre + "_w2"]) + params[pre + "_b2"])
        return dot(h, params[pre + "_w3"]) + params[pre + "_b3"]

    o1, o2 = trunk(f1), trunk(f2)
    d = jnp.abs(o1 - o2)
    sym = mlp(d, "sym")
    ctx = mlp(d, "ctx")
    dist = mlp(jnp.concatenate([box1, box2], axis=1), "dist")
    return sym, dist, ctx


if __name__ == "__main__":
    key = jax.random.PRNGKey(0)
    pkey, k1, k2, k3, k4 = jax.random.split(key, 5)
    params = init_params(pkey)

    f1 = jax.random.normal(k1, (B, C, H, W), jnp.float32)    # backbone features of x1
    f2 = jax.random.normal(k2, (B, C, H, W), jnp.float32)    # backbone features of x2
    box1 = jax.random.uniform(k3, (B, 4), jnp.float32)
    box2 = jax.random.uniform(k4, (B, 4), jnp.float32)

    sym, dist, ctx = siamese_forward(params, f1, f2, box1, box2)
    jax.block_until_ready((sym, dist, ctx))

    r_sym, r_dist, r_ctx = reference_forward(params, f1, f2, box1, box2)
    # The kernel uses bf16 MXU operands with f32 accumulation (per perf review), so compare
    # against the f32 reference with a bf16-appropriate tolerance.
    for got, want, name in ((sym, r_sym, "symbol"),
                            (dist, r_dist, "distribution"),
                            (ctx, r_ctx, "context")):
        assert got.shape == (B, 1), (name, got.shape)
        assert np.allclose(np.asarray(got), np.asarray(want), rtol=5e-2, atol=5e-2), \
            (name, np.asarray(got), np.asarray(want))

    print("KERNEL_OK")
</pallas_src>

<mosaic_0001>
module attributes {stable_mosaic.version = 11 : i64} {
  func.func @_siamese_forward_kernel(%arg0: memref<256x64xf32, #tpu.memory_space<vmem>>, %arg1: memref<2x8xf32, #tpu.memory_space<vmem>>, %arg2: memref<70x64xf32, #tpu.memory_space<vmem>>, %arg3: memref<256x9xf32, #tpu.memory_space<vmem>>, %arg4: memref<576x32xbf16, #tpu.memory_space<vmem>>, %arg5: memref<512x384xbf16, #tpu.memory_space<vmem>>, %arg6: memref<384x192xbf16, #tpu.memory_space<vmem>>, %arg7: memref<192x128xbf16, #tpu.memory_space<vmem>>, %arg8: memref<12x384xf32, #tpu.memory_space<vmem>>, %arg9: memref<2x128xf32, #tpu.memory_space<vmem>>) attributes {dimension_semantics = [], scalar_prefetch = 0 : i64, scratch_operands = 0 : i64, tpu.core_type = #tpu.core_type<tc>} {
    %c0 = arith.constant 0 : index
    %c0_0 = arith.constant 0 : index
    %0 = vector.load %arg0[%c0, %c0_0] : memref<256x64xf32, #tpu.memory_space<vmem>>, vector<256x64xf32>
    %c0_1 = arith.constant 0 : index
    %c0_2 = arith.constant 0 : index
    %1 = vector.load %arg2[%c0_1, %c0_2] : memref<70x64xf32, #tpu.memory_space<vmem>>, vector<70x64xf32>
    %2 = vector.extract_strided_slice %1 {offsets = [0, 0], sizes = [64, 4], strides = [1, 1]} : vector<70x64xf32> to vector<64x4xf32>
    %3 = vector.extract_strided_slice %1 {offsets = [64, 0], sizes = [4, 64], strides = [1, 1]} : vector<70x64xf32> to vector<4x64xf32>
    %4 = vector.extract_strided_slice %1 {offsets = [68, 0], sizes = [1, 4], strides = [1, 1]} : vector<70x64xf32> to vector<1x4xf32>
    %5 = vector.extract_strided_slice %1 {offsets = [69, 0], sizes = [1, 64], strides = [1, 1]} : vector<70x64xf32> to vector<1x64xf32>
    %6 = vector.shape_cast %0 : vector<256x64xf32> to vector<4x64x64xf32>
    %cst = arith.constant dense<0.000000e+00> : vector<4x64xf32>
    %7 = vector.multi_reduction <add>, %6, %cst [1] : vector<4x64x64xf32> to vector<4x64xf32>
    %cst_3 = arith.constant 6.400000e+01 : f32
    %8 = vector.broadcast %cst_3 : f32 to vector<4x64xf32>
    %9 = arith.divf %7, %8 : vector<4x64xf32>
    %cst_4 = arith.constant dense<0.000000e+00> : vector<4x4xf32>
    %10 = tpu.matmul %9, %2, %cst_4 {dimension_numbers = #tpu.dot_dimension_numbers<[1], [0], [0], [1], [0, 0, 1, 1], [], []>} : vector<4x64xf32>, vector<64x4xf32>, vector<4x4xf32> -> vector<4x4xf32>
    %11 = vector.broadcast %4 : vector<1x4xf32> to vector<4x4xf32>
    %12 = arith.addf %10, %11 : vector<4x4xf32>
    %cst_5 = arith.constant 0.000000e+00 : f32
    %13 = vector.broadcast %cst_5 : f32 to vector<4x4xf32>
    %14 = arith.maximumf %12, %13 : vector<4x4xf32>
    %cst_6 = arith.constant dense<0.000000e+00> : vector<4x64xf32>
    %15 = tpu.matmul %14, %3, %cst_6 {dimension_numbers = #tpu.dot_dimension_numbers<[1], [0], [0], [1], [0, 0, 1, 1], [], []>} : vector<4x4xf32>, vector<4x64xf32>, vector<4x64xf32> -> vector<4x64xf32>
    %16 = vector.broadcast %5 : vector<1x64xf32> to vector<4x64xf32>
    %17 = arith.addf %15, %16 : vector<4x64xf32>
    %cst_7 = arith.constant 0.000000e+00 : f32
    %18 = vector.broadcast %cst_7 : f32 to vector<4x64xf32>
    %19 = arith.subf %18, %17 : vector<4x64xf32>
    %20 = math.exp %19 : vector<4x64xf32>
    %cst_8 = arith.constant 1.000000e+00 : f32
    %21 = vector.broadcast %cst_8 : f32 to vector<4x64xf32>
    %22 = arith.addf %21, %20 : vector<4x64xf32>
    %cst_9 = arith.constant 1.000000e+00 : f32
    %23 = vector.broadcast %cst_9 : f32 to vector<4x64xf32>
    %24 = arith.divf %23, %22 : vector<4x64xf32>
    %25 = vector.shape_cast %24 : vector<4x64xf32> to vector<4x1x64xf32>
    %26 = vector.broadcast %25 : vector<4x1x64xf32> to vector<4x64x64xf32>
    %27 = arith.mulf %6, %26 : vector<4x64x64xf32>
    %28 = vector.shape_cast %27 : vector<4x64x64xf32> to vector<256x64xf32>
    %c0_10 = arith.constant 0 : index
    %c0_11 = arith.constant 0 : index
    %29 = vector.load %arg3[%c0_10, %c0_11] : memref<256x9xf32, #tpu.memory_space<vmem>>, vector<256x9xf32>
    %c9_i32 = arith.constant 9 : i32
    %30 = tpu.dynamic_rotate %28 by %c9_i32 dim 0 : vector<256x64xf32>, i32 -> vector<256x64xf32>
    %31 = vector.extract_strided_slice %29 {offsets = [0, 0], sizes = [256, 1], strides = [1, 1]} : vector<256x9xf32> to vector<256x1xf32>
    %32 = vector.broadcast %31 : vector<256x1xf32> to vector<256x64xf32>
    %33 = arith.mulf %30, %32 : vector<256x64xf32>
    %34 = arith.truncf %33 : vector<256x64xf32> to vector<256x64xbf16>
    %c8_i32 = arith.constant 8 : i32
    %35 = tpu.dynamic_rotate %28 by %c8_i32 dim 0 : vector<256x64xf32>, i32 -> vector<256x64xf32>
    %36 = vector.extract_strided_slice %29 {offsets = [0, 1], sizes = [256, 1], strides = [1, 1]} : vector<256x9xf32> to vector<256x1xf32>
    %37 = vector.broadcast %36 : vector<256x1xf32> to vector<256x64xf32>
    %38 = arith.mulf %35, %37 : vector<256x64xf32>
    %39 = arith.truncf %38 : vector<256x64xf32> to vector<256x64xbf16>
    %c7_i32 = arith.constant 7 : i32
    %40 = tpu.dynamic_rotate %28 by %c7_i32 dim 0 : vector<256x64xf32>, i32 -> vector<256x64xf32>
    %41 = vector.extract_strided_slice %29 {offsets = [0, 2], sizes = [256, 1], strides = [1, 1]} : vector<256x9xf32> to vector<256x1xf32>
    %42 = vector.broadcast %41 : vector<256x1xf32> to vector<256x64xf32>
    %43 = arith.mulf %40, %42 : vector<256x64xf32>
    %44 = arith.truncf %43 : vector<256x64xf32> to vector<256x64xbf16>
    %c1_i32 = arith.constant 1 : i32
    %45 = tpu.dynamic_rotate %28 by %c1_i32 dim 0 : vector<256x64xf32>, i32 -> vector<256x64xf32>
    %46 = vector.extract_strided_slice %29 {offsets = [0, 3], sizes = [256, 1], strides = [1, 1]} : vector<256x9xf32> to vector<256x1xf32>
    %47 = vector.broadcast %46 : vector<256x1xf32> to vector<256x64xf32>
    %48 = arith.mulf %45, %47 : vector<256x64xf32>
    %49 = arith.truncf %48 : vector<256x64xf32> to vector<256x64xbf16>
    %50 = arith.truncf %28 : vector<256x64xf32> to vector<256x64xbf16>
    %c255_i32 = arith.constant 255 : i32
    %51 = tpu.dynamic_rotate %28 by %c255_i32 dim 0 : vector<256x64xf32>, i32 -> vector<256x64xf32>
    %52 = vector.extract_strided_slice %29 {offsets = [0, 5], sizes = [256, 1], strides = [1, 1]} : vector<256x9xf32> to vector<256x1xf32>
    %53 = vector.broadcast %52 : vector<256x1xf32> to vector<256x64xf32>
    %54 = arith.mulf %51, %53 : vector<256x64xf32>
    %55 = arith.truncf %54 : vector<256x64xf32> to vector<256x64xbf16>
    %c249_i32 = arith.constant 249 : i32
    %56 = tpu.dynamic_rotate %28 by %c249_i32 dim 0 : vector<256x64xf32>, i32 -> vector<256x64xf32>
    %57 = vector.extract_strided_slice %29 {offsets = [0, 6], sizes = [256, 1], strides = [1, 1]} : vector<256x9xf32> to vector<256x1xf32>
    %58 = vector.broadcast %57 : vector<256x1xf32> to vector<256x64xf32>
    %59 = arith.mulf %56, %58 : vector<256x64xf32>
    %60 = arith.truncf %59 : vector<256x64xf32> to vector<256x64xbf16>
    %c248_i32 = arith.constant 248 : i32
    %61 = tpu.dynamic_rotate %28 by %c248_i32 dim 0 : vector<256x64xf32>, i32 -> vector<256x64xf32>
    %62 = vector.extract_strided_slice %29 {offsets = [0, 7], sizes = [256, 1], strides = [1, 1]} : vector<256x9xf32> to vector<256x1xf32>
    %63 = vector.broadcast %62 : vector<256x1xf32> to vector<256x64xf32>
    %64 = arith.mulf %61, %63 : vector<256x64xf32>
    %65 = arith.truncf %64 : vector<256x64xf32> to vector<256x64xbf16>
    %c247_i32 = arith.constant 247 : i32
    %66 = tpu.dynamic_rotate %28 by %c247_i32 dim 0 : vector<256x64xf32>, i32 -> vector<256x64xf32>
    %67 = vector.extract_strided_slice %29 {offsets = [0, 8], sizes = [256, 1], strides = [1, 1]} : vector<256x9xf32> to vector<256x1xf32>
    %68 = vector.broadcast %67 : vector<256x1xf32> to vector<256x64xf32>
    %69 = arith.mulf %66, %68 : vector<256x64xf32>
    %70 = arith.truncf %69 : vector<256x64xf32> to vector<256x64xbf16>
    %71 = tpu.concatenate %34, %39, %44, %49, %50, %55, %60, %65, %70 in 1 : vector<256x64xbf16>, vector<256x64xbf16>, vector<256x64xbf16>, vector<256x64xbf16>, vector<256x64xbf16>, vector<256x64xbf16>, vector<256x64xbf16>, vector<256x64xbf16>, vector<256x64xbf16> -> vector<256x576xbf16>
    %c0_12 = arith.constant 0 : index
    %c0_13 = arith.constant 0 : index
    %72 = vector.load %arg4[%c0_12, %c0_13] : memref<576x32xbf16, #tpu.memory_space<vmem>>, vector<576x32xbf16>
    %cst_14 = arith.constant dense<0.000000e+00> : vector<256x32xf32>
    %73 = tpu.matmul %71, %72, %cst_14 {dimension_numbers = #tpu.dot_dimension_numbers<[1], [0], [0], [1], [0, 0, 1, 1], [], []>} : vector<256x576xbf16>, vector<576x32xbf16>, vector<256x32xf32> -> vector<256x32xf32>
    %c0_15 = arith.constant 0 : index
    %c0_16 = arith.constant 0 : index
    %74 = vector.load %arg8[%c0_15, %c0_16] : memref<12x384xf32, #tpu.memory_space<vmem>>, vector<12x384xf32>
    %75 = vector.extract_strided_slice %74 {offsets = [3, 0], sizes = [1, 32], strides = [1, 1]} : vector<12x384xf32> to vector<1x32xf32>
    %76 = vector.extract_strided_slice %74 {offsets = [3, 32], sizes = [1, 32], strides = [1, 1]} : vector<12x384xf32> to vector<1x32xf32>
    %77 = vector.broadcast %75 : vector<1x32xf32> to vector<256x32xf32>
    %78 = arith.mulf %73, %77 : vector<256x32xf32>
    %79 = vector.broadcast %76 : vector<1x32xf32> to vector<256x32xf32>
    %80 = arith.addf %78, %79 : vector<256x32xf32>
    %cst_17 = arith.constant 0.000000e+00 : f32
    %81 = vector.broadcast %cst_17 : f32 to vector<256x32xf32>
    %82 = arith.maximumf %80, %81 : vector<256x32xf32>
    %c255_i32_18 = arith.constant 255 : i32
    %83 = tpu.dynamic_rotate %82 by %c255_i32_18 dim 0 : vector<256x32xf32>, i32 -> vector<256x32xf32>
    %84 = arith.maximumf %82, %83 : vector<256x32xf32>
    %c248_i32_19 = arith.constant 248 : i32
    %85 = tpu.dynamic_rotate %82 by %c248_i32_19 dim 0 : vector<256x32xf32>, i32 -> vector<256x32xf32>
    %c247_i32_20 = arith.constant 247 : i32
    %86 = tpu.dynamic_rotate %82 by %c247_i32_20 dim 0 : vector<256x32xf32>, i32 -> vector<256x32xf32>
    %87 = arith.maximumf %85, %86 : vector<256x32xf32>
    %88 = arith.maximumf %84, %87 : vector<256x32xf32>
    %89 = vector.extract_strided_slice %88 {offsets = [0, 0], sizes = [128, 32], strides = [1, 1]} : vector<256x32xf32> to vector<128x32xf32>
    %90 = vector.extract_strided_slice %88 {offsets = [128, 0], sizes = [128, 32], strides = [1, 1]} : vector<256x32xf32> to vector<128x32xf32>
    %91 = arith.subf %89, %90 : vector<128x32xf32>
    %92 = math.absf %91 : vector<128x32xf32>
    %93 = vector.extract_strided_slice %92 {offsets = [0, 0], sizes = [1, 32], strides = [1, 1]} : vector<128x32xf32> to vector<1x32xf32>
    %94 = vector.extract_strided_slice %92 {offsets = [64, 0], sizes = [1, 32], strides = [1, 1]} : vector<128x32xf32> to vector<1x32xf32>
    %95 = tpu.concatenate %93, %94 in 0 : vector<1x32xf32>, vector<1x32xf32> -> vector<2x32xf32>
    %96 = vector.extract_strided_slice %92 {offsets = [2, 0], sizes = [1, 32], strides = [1, 1]} : vector<128x32xf32> to vector<1x32xf32>
    %97 = vector.extract_strided_slice %92 {offsets = [66, 0], sizes = [1, 32], strides = [1, 1]} : vector<128x32xf32> to vector<1x32xf32>
    %98 = tpu.concatenate %96, %97 in 0 : vector<1x32xf32>, vector<1x32xf32> -> vector<2x32xf32>
    %99 = vector.extract_strided_slice %92 {offsets = [4, 0], sizes = [1, 32], strides = [1, 1]} : vector<128x32xf32> to vector<1x32xf32>
    %100 = vector.extract_strided_slice %92 {offsets = [68, 0], sizes = [1, 32], strides = [1, 1]} : vector<128x32xf32> to vector<1x32xf32>
    %101 = tpu.concatenate %99, %100 in 0 : vector<1x32xf32>, vector<1x32xf32> -> vector<2x32xf32>
    %102 = vector.extract_strided_slice %92 {offsets = [6, 0], sizes = [1, 32], strides = [1, 1]} : vector<128x32xf32> to vector<1x32xf32>
    %103 = vector.extract_strided_slice %92 {offsets = [70, 0], sizes = [1, 32], strides = [1, 1]} : vector<128x32xf32> to vector<1x32xf32>
    %104 = tpu.concatenate %102, %103 in 0 : vector<1x32xf32>, vector<1x32xf32> -> vector<2x32xf32>
    %105 = vector.extract_strided_slice %92 {offsets = [16, 0], sizes = [1, 32], strides = [1, 1]} : vector<128x32xf32> to vector<1x32xf32>
    %106 = vector.extract_strided_slice %92 {offsets = [80, 0], sizes = [1, 32], strides = [1, 1]} : vector<128x32xf32> to vector<1x32xf32>
    %107 = tpu.concatenate %105, %106 in 0 : vector<1x32xf32>, vector<1x32xf32> -> vector<2x32xf32>
    %108 = vector.extract_strided_slice %92 {offsets = [18, 0], sizes = [1, 32], strides = [1, 1]} : vector<128x32xf32> to vector<1x32xf32>
    %109 = vector.extract_strided_slice %92 {offsets = [82, 0], sizes = [1, 32], strides = [1, 1]} : vector<128x32xf32> to vector<1x32xf32>
    %110 = tpu.concatenate %108, %109 in 0 : vector<1x32xf32>, vector<1x32xf32> -> vector<2x32xf32>
    %111 = vector.extract_strided_slice %92 {offsets = [20, 0], sizes = [1, 32], strides = [1, 1]} : vector<128x32xf32> to vector<1x32xf32>
    %112 = vector.extract_strided_slice %92 {offsets = [84, 0], sizes = [1, 32], strides = [1, 1]} : vector<128x32xf32> to vector<1x32xf32>
    %113 = tpu.concatenate %111, %112 in 0 : vector<1x32xf32>, vector<1x32xf32> -> vector<2x32xf32>
    %114 = vector.extract_strided_slice %92 {offsets = [22, 0], sizes = [1, 32], strides = [1, 1]} : vector<128x32xf32> to vector<1x32xf32>
    %115 = vector.extract_strided_slice %92 {offsets = [86, 0], sizes = [1, 32], strides = [1, 1]} : vector<128x32xf32> to vector<1x32xf32>
    %116 = tpu.concatenate %114, %115 in 0 : vector<1x32xf32>, vector<1x32xf32> -> vector<2x32xf32>
    %117 = vector.extract_strided_slice %92 {offsets = [32, 0], sizes = [1, 32], strides = [1, 1]} : vector<128x32xf32> to vector<1x32xf32>
    %118 = vector.extract_strided_slice %92 {offsets = [96, 0], sizes = [1, 32], strides = [1, 1]} : vector<128x32xf32> to vector<1x32xf32>
    %119 = tpu.concatenate %117, %118 in 0 : vector<1x32xf32>, vector<1x32xf32> -> vector<2x32xf32>
    %120 = vector.extract_strided_slice %92 {offsets = [34, 0], sizes = [1, 32], strides = [1, 1]} : vector<128x32xf32> to vector<1x32xf32>
    %121 = vector.extract_strided_slice %92 {offsets = [98, 0], sizes = [1, 32], strides = [1, 1]} : vector<128x32xf32> to vector<1x32xf32>
    %122 = tpu.concatenate %120, %121 in 0 : vector<1x32xf32>, vector<1x32xf32> -> vector<2x32xf32>
    %123 = vector.extract_strided_slice %92 {offsets = [36, 0], sizes = [1, 32], strides = [1, 1]} : vector<128x32xf32> to vector<1x32xf32>
    %124 = vector.extract_strided_slice %92 {offsets = [100, 0], sizes = [1, 32], strides = [1, 1]} : vector<128x32xf32> to vector<1x32xf32>
    %125 = tpu.concatenate %123, %124 in 0 : vector<1x32xf32>, vector<1x32xf32> -> vector<2x32xf32>
    %126 = vector.extract_strided_slice %92 {offsets = [38, 0], sizes = [1, 32], strides = [1, 1]} : vector<128x32xf32> to vector<1x32xf32>
    %127 = vector.extract_strided_slice %92 {offsets = [102, 0], sizes = [1, 32], strides = [1, 1]} : vector<128x32xf32> to vector<1x32xf32>
    %128 = tpu.concatenate %126, %127 in 0 : vector<1x32xf32>, vector<1x32xf32> -> vector<2x32xf32>
    %129 = vector.extract_strided_slice %92 {offsets = [48, 0], sizes = [1, 32], strides = [1, 1]} : vector<128x32xf32> to vector<1x32xf32>
    %130 = vector.extract_strided_slice %92 {offsets = [112, 0], sizes = [1, 32], strides = [1, 1]} : vector<128x32xf32> to vector<1x32xf32>
    %131 = tpu.concatenate %129, %130 in 0 : vector<1x32xf32>, vector<1x32xf32> -> vector<2x32xf32>
    %132 = vector.extract_strided_slice %92 {offsets = [50, 0], sizes = [1, 32], strides = [1, 1]} : vector<128x32xf32> to vector<1x32xf32>
    %133 = vector.extract_strided_slice %92 {offsets = [114, 0], sizes = [1, 32], strides = [1, 1]} : vector<128x32xf32> to vector<1x32xf32>
    %134 = tpu.concatenate %132, %133 in 0 : vector<1x32xf32>, vector<1x32xf32> -> vector<2x32xf32>
    %135 = vector.extract_strided_slice %92 {offsets = [52, 0], sizes = [1, 32], strides = [1, 1]} : vector<128x32xf32> to vector<1x32xf32>
    %136 = vector.extract_strided_slice %92 {offsets = [116, 0], sizes = [1, 32], strides = [1, 1]} : vector<128x32xf32> to vector<1x32xf32>
    %137 = tpu.concatenate %135, %136 in 0 : vector<1x32xf32>, vector<1x32xf32> -> vector<2x32xf32>
    %138 = vector.extract_strided_slice %92 {offsets = [54, 0], sizes = [1, 32], strides = [1, 1]} : vector<128x32xf32> to vector<1x32xf32>
    %139 = vector.extract_strided_slice %92 {offsets = [118, 0], sizes = [1, 32], strides = [1, 1]} : vector<128x32xf32> to vector<1x32xf32>
    %140 = tpu.concatenate %138, %139 in 0 : vector<1x32xf32>, vector<1x32xf32> -> vector<2x32xf32>
    %141 = tpu.concatenate %95, %98, %101, %104, %107, %110, %113, %116, %119, %122, %125, %128, %131, %134, %137, %140 in 1 : vector<2x32xf32>, vector<2x32xf32>, vector<2x32xf32>, vector<2x32xf32>, vector<2x32xf32>, vector<2x32xf32>, vector<2x32xf32>, vector<2x32xf32>, vector<2x32xf32>, vector<2x32xf32>, vector<2x32xf32>, vector<2x32xf32>, vector<2x32xf32>, vector<2x32xf32>, vector<2x32xf32>, vector<2x32xf32> -> vector<2x512xf32>
    %142 = arith.truncf %141 : vector<2x512xf32> to vector<2x512xbf16>
    %143 = vector.extract_strided_slice %74 {offsets = [0, 0], sizes = [1, 384], strides = [1, 1]} : vector<12x384xf32> to vector<1x384xf32>
    %144 = vector.extract_strided_slice %74 {offsets = [1, 0], sizes = [1, 192], strides = [1, 1]} : vector<12x384xf32> to vector<1x192xf32>
    %145 = vector.extract_strided_slice %74 {offsets = [2, 0], sizes = [1, 128], strides = [1, 1]} : vector<12x384xf32> to vector<1x128xf32>
    %146 = vector.extract_strided_slice %74 {offsets = [4, 0], sizes = [8, 384], strides = [1, 1]} : vector<12x384xf32> to vector<8x384xf32>
    %c0_21 = arith.constant 0 : index
    %c0_22 = arith.constant 0 : index
    %147 = vector.load %arg5[%c0_21, %c0_22] : memref<512x384xbf16, #tpu.memory_space<vmem>>, vector<512x384xbf16>
    %cst_23 = arith.constant dense<0.000000e+00> : vector<2x384xf32>
    %148 = tpu.matmul %142, %147, %cst_23 {dimension_numbers = #tpu.dot_dimension_numbers<[1], [0], [0], [1], [0, 0, 1, 1], [], []>} : vector<2x512xbf16>, vector<512x384xbf16>, vector<2x384xf32> -> vector<2x384xf32>
    %c0_24 = arith.constant 0 : index
    %c0_25 = arith.constant 0 : index
    %149 = vector.load %arg1[%c0_24, %c0_25] : memref<2x8xf32, #tpu.memory_space<vmem>>, vector<2x8xf32>
    %cst_26 = arith.constant dense<0.000000e+00> : vector<2x384xf32>
    %150 = tpu.matmul %149, %146, %cst_26 {dimension_numbers = #tpu.dot_dimension_numbers<[1], [0], [0], [1], [0, 0, 1, 1], [], []>} : vector<2x8xf32>, vector<8x384xf32>, vector<2x384xf32> -> vector<2x384xf32>
    %151 = arith.addf %148, %150 : vector<2x384xf32>
    %152 = vector.broadcast %143 : vector<1x384xf32> to vector<2x384xf32>
    %153 = arith.addf %151, %152 : vector<2x384xf32>
    %cst_27 = arith.constant 0.000000e+00 : f32
    %154 = vector.broadcast %cst_27 : f32 to vector<2x384xf32>
    %155 = arith.maximumf %153, %154 : vector<2x384xf32>
    %156 = arith.truncf %155 : vector<2x384xf32> to vector<2x384xbf16>
    %c0_28 = arith.constant 0 : index
    %c0_29 = arith.constant 0 : index
    %157 = vector.load %arg6[%c0_28, %c0_29] : memref<384x192xbf16, #tpu.memory_space<vmem>>, vector<384x192xbf16>
    %cst_30 = arith.constant dense<0.000000e+00> : vector<2x192xf32>
    %158 = tpu.matmul %156, %157, %cst_30 {dimension_numbers = #tpu.dot_dimension_numbers<[1], [0], [0], [1], [0, 0, 1, 1], [], []>} : vector<2x384xbf16>, vector<384x192xbf16>, vector<2x192xf32> -> vector<2x192xf32>
    %159 = vector.broadcast %144 : vector<1x192xf32> to vector<2x192xf32>
    %160 = arith.addf %158, %159 : vector<2x192xf32>
    %cst_31 = arith.constant 0.000000e+00 : f32
    %161 = vector.broadcast %cst_31 : f32 to vector<2x192xf32>
    %162 = arith.maximumf %160, %161 : vector<2x192xf32>
    %163 = arith.truncf %162 : vector<2x192xf32> to vector<2x192xbf16>
    %c0_32 = arith.constant 0 : index
    %c0_33 = arith.constant 0 : index
    %164 = vector.load %arg7[%c0_32, %c0_33] : memref<192x128xbf16, #tpu.memory_space<vmem>>, vector<192x128xbf16>
    %cst_34 = arith.constant dense<0.000000e+00> : vector<2x128xf32>
    %165 = tpu.matmul %163, %164, %cst_34 {dimension_numbers = #tpu.dot_dimension_numbers<[1], [0], [0], [1], [0, 0, 1, 1], [], []>} : vector<2x192xbf16>, vector<192x128xbf16>, vector<2x128xf32> -> vector<2x128xf32>
    %166 = vector.broadcast %145 : vector<1x128xf32> to vector<2x128xf32>
    %167 = arith.addf %165, %166 : vector<2x128xf32>
    %c0_35 = arith.constant 0 : index
    %c0_36 = arith.constant 0 : index
    %168 = vector.load %arg9[%c0_35, %c0_36] : memref<2x128xf32, #tpu.memory_space<vmem>>, vector<2x128xf32>
    tpu.vector_store %arg9[%c0_35, %c0_36], %167 {strides = array<i32>} : memref<2x128xf32, #tpu.memory_space<vmem>>, vector<2x128xf32>,
    return
  }
}

</mosaic_0001>

<bundles_post_ra>
// kernel: siamese_forward.1
= control target key start
LH: loop header
LB: loop body
LE: loop exit
PB: predicated region body
PF: predicated region fallthrough
CT: control target
= control target key end

     0   :  { %v10196_v0 = vmov 1   ;;  %v6313_v2 = vmov 0.0|0.0   ;;  %vm6314_vm0 = vmmov 0   ;;  %v10194_v5 = vmov 0.0   ;;  %s6323_s14 = smov 64   ;;  %s6325_s20 = smov 96   ;;  %s10184_s3 = inlined_call_operand.vmem [shape: f32[256,9], index: 3, kind: input, shape index: {}]   ;;  %s10185_s2 = inlined_call_operand.vmem [shape: f32[70,64], index: 2, kind: input, shape index: {}]   ;;  %s10186_s0 = inlined_call_operand.vmem [shape: f32[256,64], index: 0, kind: input, shape index: {}]   ;;  %s10187_s4 = inlined_call_operand.vmem [shape: bf16[576,32], index: 4, kind: input, shape index: {}]   ;;  %s10188_s8 = inlined_call_operand.vmem [shape: f32[12,384], index: 8, kind: input, shape index: {}]   ;;  %s10189_s5 = inlined_call_operand.vmem [shape: bf16[512,384], index: 5, kind: input, shape index: {}]   ;;  %s10190_s1 = inlined_call_operand.vmem [shape: f32[2,8], index: 1, kind: input, shape index: {}]   ;;  %s10191_s6 = inlined_call_operand.vmem [shape: bf16[384,192], index: 6, kind: input, shape index: {}]   ;;  %s10192_s7 = inlined_call_operand.vmem [shape: bf16[192,128], index: 7, kind: input, shape index: {}]   ;;  %s10193_s9 = inlined_call_operand.vmem [shape: f32[2,128], index: 9, kind: output, shape index: {}]  }
   0x1   :  { %5822 = vset.pattern.permute.xlu1 %v10196_v0  ;;  %v6381_v1 = vld [vmem:[%s10184_s3] sm:$0xff]  ;;  %5789 = vmatprep.subr.bf16.mxu0 %v6313_v2  ;;  %v66_v4 = vld [vmem:[%s10185_s2 + $0x8] sm:$0xff]  ;;  %v67_v8 = vld [vmem:[%s10185_s2 + $0x10] sm:$0xff]  ;;  %vm74_vm1 = vcmask 523264   ;;  %v10204_v11 = vmov 5   ;;  %v10198_v38 = vmov 3  }
   0x2   :  { %724 = vperm.xlu1 %5822, %v6381_v1   ;;  %v65_v3 = vld [vmem:[%s10185_s2] sm:$0xff]  ;;  %5736 = vmatprep.mubr.msk.f32.mxu0 %vm6314_vm0, %v10194_v5  ;;  %v6396_v6 = vld [vmem:[%s10184_s3 + $0x8] sm:$0xff]  ;;  %v68_v9 = vld [vmem:[%s10185_s2 + $0x18] sm:$0xff]  ;;  %vm172_vm2 = vcmask 1041409   ;;  %vm174_vm3 = vcmask 1042434   ;;  %vm176_vm4 = vcmask 1043459  }
   0x3   :  { %v5790_v7 = vpack.c.bf16 %v66_v4, %v65_v3  ;;  %v69_v10 = vld [vmem:[%s10185_s2 + $0x20] sm:$0xff]  ;;  %5841 = vset.pattern.permute.xlu0 %v10204_v11  ;;  %v5793_v12 = vpack.c.bf16 %v68_v9, %v67_v8  ;;  %v70_v13 = vld [vmem:[%s10185_s2 + $0x28] sm:$0xff]  ;;  %v6422_v16 = vld [vmem:[%s10184_s3 + $0x18] sm:$0xff]  ;;  %vm259_vm5 = vcmask 1043456   ;;  %vm255_vm6 = vcmask 31744  }
   0x4   :  { %v33_v14 = vld [vmem:[%s10186_s0] sm:$0xff]  ;;  %v34_v15 = vld [vmem:[%s10186_s0 + $0x8] sm:$0xff]  ;;  %1337 = vperm.xlu0 %5841, %v6396_v6   ;;  %v35_v17 = vld [vmem:[%s10186_s0 + $0x10] sm:$0xff]  ;;  %v5796_v26 = vpack.c.bf16 %v70_v13, %v69_v10  ;;  %vm3835_vm9 = vcmask 64512   ;;  %vm3544_vm10 = vcmask 1040384   ;;  %vm3670_vm11 = vcmask 261120  }
   0x5   :  { %5791 = vmatpush3.bf16.msra.mxu0 %v5790_v7  ;;  %v36_v18 = vld [vmem:[%s10186_s0 + $0x18] sm:$0xff]  ;;  %v75_v19 = vsel %vm74_vm1, %v33_v14, 0.0  ;;  %v76_v20 = vsel %vm74_vm1, %v34_v15, 0.0  ;;  %v6436_v21 = vld [vmem:[%s10185_s2 + $0x30] sm:$0xff]  ;;  %v37_v23 = vld [vmem:[%s10186_s0 + $0x20] sm:$0xff]  ;;  %v78_v25 = vsel %vm74_vm1, %v35_v17, 0.0 }
   0x6   :  { %728 = vperm.xlu1 %5822, %v6396_v6   ;;  %5792 = vmatprep.subr.bf16.mxu0 %v6313_v2  ;;  %v6441_v22 = vld [vmem:[%s10185_s2 + $0x38] sm:$0xff]  ;;  %v77_v24 = vadd.f32 %v76_v20, %v75_v19  ;;  %v41_v27 = vld [vmem:[%s10186_s0 + $0x40] sm:$0xff]  ;;  %v42_v28 = vld [vmem:[%s10186_s0 + $0x48] sm:$0xff]  ;;  %v80_v30 = vsel %vm74_vm1, %v36_v18, 0.0  ;;  %v82_v42 = vsel %vm74_vm1, %v37_v23, 0.0  ;;  %vm3673_vm12 = vcmask 785408  }
   0x7   :  { %v43_v29 = vld [vmem:[%s10186_s0 + $0x50] sm:$0xff]  ;;  %v38_v31 = vld [vmem:[%s10186_s0 + $0x28] sm:$0xff]  ;;  %v44_v33 = vld [vmem:[%s10186_s0 + $0x58] sm:$0xff]  ;;  %v96_v35 = vsel %vm74_vm1, %v41_v27, 0.0  ;;  %v97_v36 = vsel %vm74_vm1, %v42_v28, 0.0  ;;  %v5799_v44 = vpack.c.bf16 %v6441_v22, %v6436_v21 }
   0x8   :  { %v39_v32 = vld [vmem:[%s10186_s0 + $0x30] sm:$0xff]  ;;  %v79_v34 = vadd.f32 %v78_v25, %v77_v24  ;;  %v99_v37 = vsel %vm74_vm1, %v43_v29, 0.0  ;;  %1345 = vperm.xlu0 %5841, %v6422_v16   ;;  %v45_v39 = vld [vmem:[%s10186_s0 + $0x60] sm:$0xff]  ;;  %v46_v40 = vld [vmem:[%s10186_s0 + $0x68] sm:$0xff]  ;;  %v98_v43 = vadd.f32 %v97_v36, %v96_v35  ;;  %v101_v49 = vsel %vm74_vm1, %v44_v33, 0.0 }
   0x9   :  { %5794 = vmatpush3.bf16.msra.mxu0 %v5793_v12  ;;  %v49_v41 = vld [vmem:[%s10186_s0 + $0x80] sm:$0xff]  ;;  %v50_v45 = vld [vmem:[%s10186_s0 + $0x88] sm:$0xff]  ;;  %v51_v46 = vld [vmem:[%s10186_s0 + $0x90] sm:$0xff]  ;;  %v84_v52 = vsel %vm74_vm1, %v38_v31, 0.0  ;;  %v86_v60 = vsel %vm74_vm1, %v39_v32, 0.0  ;;  %v103_v61 = vsel %vm74_vm1, %v45_v39, 0.0 }
   0xa   :  { %5823 = vset.pattern.permute.xlu1 %v10198_v38  ;;  %5795 = vmatprep.subr.bf16.mxu0 %v6313_v2  ;;  %v52_v47 = vld [vmem:[%s10186_s0 + $0x98] sm:$0xff]  ;;  %v81_v48 = vadd.f32 %v80_v30, %v79_v34  ;;  %v117_v50 = vsel %vm74_vm1, %v49_v41, 0.0  ;;  %v100_v53 = vadd.f32 %v99_v37, %v98_v43  ;;  %v118_v54 = vsel %vm74_vm1, %v50_v45, 0.0  ;;  %v53_v56 = vld [vmem:[%s10186_s0 + $0xa0] sm:$0xff]  ;;  %v58_v58 = vld [vmem:[%s10186_s0 + $0xc8] sm:$0xff] }
   0xb   :  { %1153 = vperm.xlu1 %5823, %v6422_v16   ;;  %v40_v51 = vld [vmem:[%s10186_s0 + $0x38] sm:$0xff]  ;;  %v120_v55 = vsel %vm74_vm1, %v51_v46, 0.0  ;;  %v57_v57 = vld [vmem:[%s10186_s0 + $0xc0] sm:$0xff]  ;;  %v119_v62 = vadd.f32 %v118_v54, %v117_v50  ;;  %v47_v63 = vld [vmem:[%s10186_s0 + $0x70] sm:$0xff]  ;;  %v105_v8 = vsel %vm74_vm1, %v46_v40, 0.0  ;;  %v122_v9 = vsel %vm74_vm1, %v52_v47, 0.0 }
   0xc   :  { %v83_v59 = vadd.f32 %v82_v42, %v81_v48  ;;  %5848 = vset.pattern.permute.xlu0 %v10196_v0  ;;  %v59_v3 = vld [vmem:[%s10186_s0 + $0xd0] sm:$0xff]  ;;  %v60_v4 = vld [vmem:[%s10186_s0 + $0xd8] sm:$0xff]  ;;  %v102_v7 = vadd.f32 %v101_v49, %v100_v53  ;;  %v138_v10 = vsel %vm74_vm1, %v57_v57, 0.0  ;;  %v139_v14 = vsel %vm74_vm1, %v58_v58, 0.0  ;;  %v61_v18 = vld [vmem:[%s10186_s0 + $0xe0] sm:$0xff] }
   0xd   :  { %5797 = vmatpush3.bf16.msra.mxu0 %v5796_v26  ;;  %v121_v13 = vadd.f32 %v120_v55, %v119_v62  ;;  %v141_v15 = vsel %vm74_vm1, %v59_v3, 0.0  ;;  %v48_v17 = vld [vmem:[%s10186_s0 + $0x78] sm:$0xff]  ;;  %v88_v19 = vsel %vm74_vm1, %v40_v51, 0.0  ;;  %v124_v21 = vsel %vm74_vm1, %v53_v56, 0.0  ;;  %v55_v23 = vld [vmem:[%s10186_s0 + $0xb0] sm:$0xff]  ;;  %v6550_v28 = vld [vmem:[%s10184_s3 + $0x20] sm:$0xff] }
   0xe   :  { %5798 = vmatprep.subr.bf16.mxu0 %v6313_v2  ;;  %v54_v2 = vld [vmem:[%s10186_s0 + $0xa8] sm:$0xff]  ;;  %v85_v12 = vadd.f32 %v84_v52, %v83_v59  ;;  %v104_v20 = vadd.f32 %v103_v61, %v102_v7  ;;  %v140_v22 = vadd.f32 %v139_v14, %v138_v10  ;;  %v107_v25 = vsel %vm74_vm1, %v47_v63, 0.0  ;;  %v56_v33 = vld [vmem:[%s10186_s0 + $0xb8] sm:$0xff]  ;;  %v6565_v39 = vld [vmem:[%s10184_s3 + $0x10] sm:$0xff] }
   0xf   :  { %5824 = vset.pattern.permute.xlu1 %v10196_v0  ;;  %v123_v26 = vadd.f32 %v122_v9, %v121_v13  ;;  %v143_v27 = vsel %vm74_vm1, %v60_v4, 0.0  ;;  %v62_v29 = vld [vmem:[%s10186_s0 + $0xe8] sm:$0xff]  ;;  %v126_v31 = vsel %vm74_vm1, %v54_v2, 0.0  ;;  %v109_v35 = vsel %vm74_vm1, %v48_v17, 0.0  ;;  %v63_v40 = vld [vmem:[%s10186_s0 + $0xf0] sm:$0xff]  ;;  %732 = vperm.xlu0 %5848, %v6565_v39   ;;  %v64_v47 = vld [vmem:[%s10186_s0 + $0xf8] sm:$0xff] }
  0x10   :  { %736 = vperm.xlu1 %5824, %v6422_v16   ;;  %v87_v24 = vadd.f32 %v86_v60, %v85_v12  ;;  %v106_v30 = vadd.f32 %v105_v8, %v104_v20  ;;  %v142_v32 = vadd.f32 %v141_v15, %v140_v22  ;;  %v145_v37 = vsel %vm74_vm1, %v61_v18, 0.0  ;;  %v6586_v61 = vld [vmem:[%s10184_s3 + $0x28] sm:$0xff]  ;;  %v6592_v15 = vld [vmem:[%s10184_s3 + $0x38] sm:$0xff] }
  0x11   :  { %5800 = vmatpush3.bf16.msra.mxu0 %v5799_v44  ;;  %v125_v36 = vadd.f32 %v124_v21, %v123_v26  ;;  %v128_v42 = vsel %vm74_vm1, %v55_v23, 0.0  ;;  %v147_v46 = vsel %vm74_vm1, %v62_v29, 0.0  ;;  %v130_v49 = vsel %vm74_vm1, %v56_v33, 0.0 }
  0x12   :  { %5739 = vmatprep.subr.mxu0 %v10194_v5  ;;  %v89_v34 = vadd.f32 %v88_v19, %v87_v24  ;;  %v108_v41 = vadd.f32 %v107_v25, %v106_v30  ;;  %v144_v43 = vadd.f32 %v143_v27, %v142_v32  ;;  %v149_v53 = vsel %vm74_vm1, %v63_v40, 0.0  ;;  %v6601_v32 = vld [vmem:[%s10184_s3 + $0x40] sm:$0xff]  ;;  %v6642_v40 = vld [vmem:[%s10184_s3 + $0x68] sm:$0xff] }
  0x13   :  { %v127_v45 = vadd.f32 %v126_v31, %v125_v36  ;;  %v151_v58 = vsel %vm74_vm1, %v64_v47, 0.0  ;;  %v6628_v36 = vld [vmem:[%s10184_s3 + $0x60] sm:$0xff] }
  0x14   :  { %5825 = vset.pattern.permute.xlu1 %v10198_v38  ;;  %v90_v44 = vrot.slane %v89_v34, 4  ;;  %v110_v48 = vadd.f32 %v109_v35, %v108_v41  ;;  %v146_v50 = vadd.f32 %v145_v37, %v144_v43  ;;  %v6619_v35 = vld [vmem:[%s10184_s3 + $0x58] sm:$0xff]  ;;  %v6637_v37 = vld [vmem:[%s10184_s3 + $0x30] sm:$0xff]  ;;  %v10202_v43 = vmov 0   ;;  %v6678_v47 = vld [vmem:[%s10184_s3 + $0x80] sm:$0xff] }
  0x15   :  { %1157 = vperm.xlu1 %5825, %v6550_v28   ;;  %v129_v52 = vadd.f32 %v128_v42, %v127_v45  ;;  %748 = vperm.xlu0 %5848, %v6637_v37   ;;  %v6649_v41 = vld [vmem:[%s10184_s3 + $0x78] sm:$0xff]  ;;  %v10200_v42 = vmov 2   ;;  %v10206_v45 = vmov 7  }
  0x16   :  { %v91_v51 = vadd.f32 %v90_v44, %v89_v34  ;;  %v111_v54 = vrot.slane %v110_v48, 4  ;;  %v148_v55 = vadd.f32 %v147_v46, %v146_v50  ;;  %v6613_v34 = vld [vmem:[%s10184_s3 + $0x48] sm:$0xff]  ;;  %v6663_v44 = vld [vmem:[%s10184_s3 + $0x50] sm:$0xff] }
  0x17   :  { %v131_v57 = vadd.f32 %v130_v49, %v129_v52  ;;  %v6671_v46 = vld [vmem:[%s10184_s3 + $0x70] sm:$0xff]  ;;  %v6693_v49 = vld [vmem:[%s10184_s3 + $0x88] sm:$0xff] }
  0x18   :  { %v92_v56 = vrot.slane %v91_v51, 2  ;;  %v112_v59 = vadd.f32 %v111_v54, %v110_v48  ;;  %v150_v60 = vadd.f32 %v149_v53, %v148_v55  ;;  %v6685_v48 = vld [vmem:[%s10184_s3 + $0x98] sm:$0xff]  ;;  %v6698_v50 = vld [vmem:[%s10184_s3 + $0xa8] sm:$0xff]  ;;  %v6717_v53 = vld [vmem:[%s10185_s2 + $0x40] sm:$0x3f] }
  0x19   :  { %5826 = vset.pattern.permute.xlu1 %v10196_v0  ;;  %v132_v63 = vrot.slane %v131_v57, 4  ;;  %764 = vperm.xlu0 %5848, %v6663_v44   ;;  %v6726_v55 = vld [vmem:[%s10184_s3 + $0xc8] sm:$0xff] }
  0x1a   :  { %740 = vperm.xlu1 %5826, %v6550_v28   ;;  %v93_v62 = vadd.f32 %v92_v56, %v91_v51  ;;  %v113_v3 = vrot.slane %v112_v59, 2  ;;  %v152_v4 = vadd.f32 %v151_v58, %v150_v60  ;;  %v6705_v51 = vld [vmem:[%s10184_s3 + $0xb8] sm:$0xff]  ;;  %v6742_v58 = vld [vmem:[%s10184_s3 + $0xe8] sm:$0xff] }
  0x1b   :  { %v133_v8 = vadd.f32 %v132_v63, %v131_v57  ;;  %v6733_v56 = vld [vmem:[%s10184_s3 + $0xd8] sm:$0xff] }
  0x1c   :  { %v94_v7 = vrot.slane %v93_v62, 1  ;;  %v114_v9 = vadd.f32 %v113_v3, %v112_v59  ;;  %v153_v10 = vrot.slane %v152_v4, 4  ;;  %v6767_v3 = vld [vmem:[%s10184_s3 + $0x90] sm:$0xff] }
  0x1d   :  { %v134_v12 = vrot.slane %v133_v8, 2  ;;  %780 = vperm.xlu0 %5848, %v6671_v46  }
  0x1e   :  { %744 = vperm.xlu1 %5826, %v6586_v61   ;;  %v95_v2 = vadd.f32 %v94_v7, %v93_v62  ;;  %v115_v13 = vrot.slane %v114_v9, 1  ;;  %v154_v14 = vadd.f32 %v153_v10, %v152_v4 }
  0x1f   :  { %v135_v17 = vadd.f32 %v134_v12, %v133_v8 }
  0x20   :  { %v116_v18 = vadd.f32 %v115_v13, %v114_v9  ;;  %v155_v19 = vrot.slane %v154_v14, 2  ;;  %v160_v20 = vmul.f32 0.015625, %v95_v2 }
  0x21   :  { %v136_v21 = vrot.slane %v135_v17, 1  ;;  %788 = vperm.xlu0 %5848, %v6678_v47  }
  0x22   :  { %5827 = vset.pattern.permute.xlu1 %v10198_v38  ;;  %v156_v22 = vadd.f32 %v155_v19, %v154_v14  ;;  %v161_v23 = vmul.f32 0.015625, %v116_v18 }
  0x23   :  { %1169 = vperm.xlu1 %5827, %v6592_v15   ;;  %v137_v24 = vadd.f32 %v136_v21, %v135_v17 }
  0x24   :  { %v157_v25 = vrot.slane %v156_v22, 1  ;;  %v173_v26 = vsel %vm172_vm2, %v161_v23, %v160_v20  ;;  %v6845_v20 = vld [vmem:[%s10184_s3 + $0xb0] sm:$0xff] }
  0x25   :  { %v162_v27 = vmul.f32 0.015625, %v137_v24  ;;  %800 = vperm.xlu0 %5848, %v6685_v48   ;;  %v6864_v24 = vld [vmem:[%s10184_s3 + $0xd0] sm:$0xff] }
  0x26   :  { %v158_v29 = vadd.f32 %v157_v25, %v156_v22  ;;  %v6854_v22 = vld [vmem:[%s10184_s3 + $0xc0] sm:$0xff] }
  0x27   :  { %5828 = vset.pattern.permute.xlu1 %v10196_v0  ;;  %v175_v30 = vsel %vm174_vm3, %v162_v27, %v173_v26  ;;  %v6873_v26 = vld [vmem:[%s10184_s3 + $0xe0] sm:$0xff]  ;;  %v6880_v27 = vld [vmem:[%s10184_s3 + $0xf8] sm:$0xff] }
  0x28   :  { %752 = vperm.xlu1 %5828, %v6592_v15   ;;  %v163_v31 = vmul.f32 0.015625, %v158_v29  ;;  %10378 = vst [vmem:[#allocation8_spill] sm:$0xff] %v6880_v27 }
  0x29   :  { %808 = vperm.xlu0 %5848, %v6698_v50  }
  0x2a   :  { %v177_v33 = vsel %vm176_vm4, %v163_v31, %v175_v30  ;;  %v164_v30 = vlaneseq }
  0x2b   :  { %5737 = vmatmul.mubr.msk.f32.vlgmr.msra.gmra.mrb[0].mxu0 %vm74_vm1, %v177_v33 }
  0x2c   :  { %5829 = vset.pattern.permute.xlu1 %v10198_v38  ;;  %5741 = vmatprep.mubr.msk.f32.mxu0 %vm6314_vm0, %v10194_v5  ;;  %v6891_v33 = vshrl.u32 %v164_v30, 7 }
  0x2d   :  { %1173 = vperm.xlu1 %5829, %v6601_v32   ;;  %816 = vperm.xlu0 %5848, %v6705_v51  }
  0x2e   :  { %5740 = vmatpush3.msk.msra.mxu0 %vm259_vm5, %v6717_v53  ;;  %v166_v5 = vsub.s32 4, %v6891_v33  ;;  %vm482_vm7 = vcmp.lt.s32.totalorder %v6891_v33, 1  ;;  %vm931_vm8 = vcmp.lt.s32.totalorder %v6891_v33, 7 }
  0x31   :  { %5830 = vset.pattern.permute.xlu1 %v10196_v0  ;;  %824 = vperm.xlu0 %5848, %v6726_v55  }
  0x32   :  { %756 = vperm.xlu1 %5830, %v6601_v32  }
  0x35   :  { %832 = vperm.xlu0 %5848, %v6733_v56  }
  0x36   :  { %760 = vperm.xlu1 %5830, %v6613_v34  }
  0x39   :  { %840 = vperm.xlu0 %5848, %v6742_v58  }
  0x3a   :  { %5831 = vset.pattern.permute.xlu1 %v10198_v38 }
  0x3b   :  { %1185 = vperm.xlu1 %5831, %v6619_v35  }
  0x3d   :  { %5881 = vset.pattern.permute.xlu0 %v10206_v45 }
  0x3e   :  { %1685 = vperm.xlu0 %5881, %v6381_v1  }
  0x3f   :  { %5832 = vset.pattern.permute.xlu1 %v10196_v0 }
  0x40   :  { %768 = vperm.xlu1 %5832, %v6619_v35  }
  0x42   :  { %1693 = vperm.xlu0 %5881, %v6565_v39  }
  0x44   :  { %5833 = vset.pattern.permute.xlu1 %v10198_v38 }
  0x45   :  { %1189 = vperm.xlu1 %5833, %v6628_v36  }
  0x46   :  { %1705 = vperm.xlu0 %5881, %v6586_v61  }
  0x49   :  { %5834 = vset.pattern.permute.xlu1 %v10196_v0 }
  0x4a   :  { %772 = vperm.xlu1 %5834, %v6628_v36   ;;  %1713 = vperm.xlu0 %5881, %v6592_v15  }
  0x4e   :  { %776 = vperm.xlu1 %5834, %v6642_v40   ;;  %1721 = vperm.xlu0 %5881, %v6613_v34  }
  0x52   :  { %5835 = vset.pattern.permute.xlu1 %v10198_v38  ;;  %1729 = vperm.xlu0 %5881, %v6619_v35  }
  0x53   :  { %1201 = vperm.xlu1 %5835, %v6649_v41  }
  0x56   :  { %1737 = vperm.xlu0 %5881, %v6642_v40  }
  0x57   :  { %5836 = vset.pattern.permute.xlu1 %v10196_v0 }
  0x58   :  { %784 = vperm.xlu1 %5836, %v6649_v41  }
  0x5a   :  { %1745 = vperm.xlu0 %5881, %v6649_v41  }
  0x5c   :  { %5837 = vset.pattern.permute.xlu1 %v10200_v42 }
  0x5d   :  { %965 = vperm.xlu1 %5837, %v6381_v1  }
  0x5e   :  { %5885 = vset.pattern.permute.xlu0 %v10198_v38 }
  0x5f   :  { %1141 = vperm.xlu0 %5885, %v6381_v1  }
  0x61   :  { %5838 = vset.pattern.permute.xlu1 %v10202_v43 }
  0x62   :  { %517 = vperm.xlu1 %5838, %v6381_v1  }
  0x63   :  { %1145 = vperm.xlu0 %5885, %v6396_v6  }
  0x66   :  { %522 = vperm.xlu1 %5838, %v6396_v6  }
  0x67   :  { %1149 = vperm.xlu0 %5885, %v6565_v39  }
  0x6a   :  { %5839 = vset.pattern.permute.xlu1 %v10206_v45 }
  0x6b   :  { %1689 = vperm.xlu1 %5839, %v6396_v6   ;;  %1161 = vperm.xlu0 %5885, %v6586_v61  }
  0x6f   :  { %5840 = vset.pattern.permute.xlu1 %v10204_v11  ;;  %1165 = vperm.xlu0 %5885, %v6637_v37  }
  0x70   :  { %1333 = vperm.xlu1 %5840, %v6381_v1  }
  0x73   :  { %1177 = vperm.xlu0 %5885, %v6613_v34  }
  0x74   :  { %5842 = vset.pattern.permute.xlu1 %v10198_v38 }
  0x75   :  { %1205 = vperm.xlu1 %5842, %v6678_v47  }
  0x77   :  { %1181 = vperm.xlu0 %5885, %v6663_v44  }
  0x79   :  { %1209 = vperm.xlu1 %5842, %v6693_v49  }
  0x7b   :  { %1193 = vperm.xlu0 %5885, %v6642_v40  }
  0x7d   :  { %5843 = vset.pattern.permute.xlu1 %v10196_v0 }
  0x7e   :  { %792 = vperm.xlu1 %5843, %v6693_v49  }
  0x7f   :  { %1197 = vperm.xlu0 %5885, %v6671_v46  }
  0x81   :  { %v6710_v52 = vpop.permute.xlu1 %724 }
  0x82   :  { %10372 = vst [vmem:[#allocation2_spill] sm:$0xff] %v6710_v52  ;;  %5844 = vset.pattern.permute.xlu1 %v10200_v42 }
  0x83   :  { %973 = vperm.xlu1 %5844, %v6565_v39   ;;  %1213 = vperm.xlu0 %5885, %v6767_v3  }
  0x85   :  { %v6721_v54 = vpop.permute.xlu1 %728 }
  0x86   :  { %10373 = vst [vmem:[#allocation3_spill] sm:$0xff] %v6721_v54 }
  0x87   :  { %5845 = vset.pattern.permute.xlu1 %v10202_v43 }
  0x88   :  { %527 = vperm.xlu1 %5845, %v6565_v39  }
  0x8a   :  { %v6736_v57 = vpop.permute.xlu1 %1153 }
  0x8c   :  { %532 = vperm.xlu1 %5845, %v6422_v16  }
  0x8f   :  { %v6746_v59 = vpop.permute.xlu1 %736 }
  0x90   :  { %5846 = vset.pattern.permute.xlu1 %v10206_v45 }
  0x91   :  { %1697 = vperm.xlu1 %5846, %v6422_v16  }
  0x94   :  { %v6752_v60 = vpop.permute.xlu1 %1157 }
  0x95   :  { %5847 = vset.pattern.permute.xlu1 %v10204_v11 }
  0x96   :  { %1341 = vperm.xlu1 %5847, %v6565_v39  }
  0x99   :  { %v6757_v62 = vpop.permute.xlu1 %740 }
  0x9a   :  { %5849 = vset.pattern.permute.xlu1 %v10198_v38 }
  0x9b   :  { %1217 = vperm.xlu1 %5849, %v6685_v48  }
  0x9d   :  { %v6762_v63 = vpop.permute.xlu1 %744 }
  0x9f   :  { %5850 = vset.pattern.permute.xlu1 %v10196_v0 }
  0xa0   :  { %796 = vperm.xlu1 %5850, %v6767_v3  }
  0xa2   :  { %v6772_v4 = vpop.permute.xlu1 %1169 }
  0xa4   :  { %5851 = vset.pattern.permute.xlu1 %v10200_v42 }
  0xa5   :  { %981 = vperm.xlu1 %5851, %v6550_v28  }
  0xa7   :  { %v6777_v7 = vpop.permute.xlu1 %752 }
  0xa9   :  { %985 = vperm.xlu1 %5851, %v6586_v61  }
  0xac   :  { %v6782_v8 = vpop.permute.xlu1 %1173 }
  0xad   :  { %5852 = vset.pattern.permute.xlu1 %v10202_v43 }
  0xae   :  { %542 = vperm.xlu1 %5852, %v6586_v61  }
  0xb1   :  { %v6787_v9 = vpop.permute.xlu1 %756 }
  0xb2   :  { %5853 = vset.pattern.permute.xlu1 %v10206_v45 }
  0xb3   :  { %1701 = vperm.xlu1 %5853, %v6550_v28  }
  0xb5   :  { %v6793_v10 = vpop.permute.xlu1 %760 }
  0xb7   :  { %5854 = vset.pattern.permute.xlu1 %v10204_v11 }
  0xb8   :  { %1349 = vperm.xlu1 %5854, %v6550_v28   ;;  %v6810_v28 = vld [vmem:[%s10184_s3 + $0xa0] sm:$0xff] }
  0xb9   :  { %1221 = vperm.xlu0 %5885, %v6810_v28  }
  0xba   :  { %v6798_v2 = vpop.permute.xlu1 %1185 }
  0xbc   :  { %1353 = vperm.xlu1 %5854, %v6586_v61  }
  0xbd   :  { %1229 = vperm.xlu0 %5885, %v6845_v20  }
  0xbf   :  { %v6802_v12 = vpop.permute.xlu1 %768 }
  0xc0   :  { %5855 = vset.pattern.permute.xlu1 %v10198_v38 }
  0xc1   :  { %1225 = vperm.xlu1 %5855, %v6698_v50   ;;  %1237 = vperm.xlu0 %5885, %v6854_v22  }
  0xc4   :  { %v6812_v13 = vpop.permute.xlu1 %1189 }
  0xc5   :  { %5856 = vset.pattern.permute.xlu1 %v10196_v0  ;;  %1245 = vperm.xlu0 %5885, %v6864_v24  }
  0xc6   :  { %804 = vperm.xlu1 %5856, %v6810_v28  }
  0xc9   :  { %v6818_v39 = vpop.permute.xlu1 %772  ;;  %1253 = vperm.xlu0 %5885, %v6873_v26  }
  0xca   :  { %5857 = vset.pattern.permute.xlu1 %v10200_v42 }
  0xcb   :  { %989 = vperm.xlu1 %5857, %v6637_v37  }
  0xcd   :  { %v6823_v14 = vpop.permute.xlu1 %776  ;;  %1265 = vperm.xlu0 %5885, %v6880_v27  }
  0xcf   :  { %993 = vperm.xlu1 %5857, %v6592_v15  }
  0xd1   :  { %5889 = vset.pattern.permute.xlu0 %v10200_v42 }
  0xd2   :  { %v6827_v17 = vpop.permute.xlu1 %1201  ;;  %969 = vperm.xlu0 %5889, %v6396_v6  }
  0xd3   :  { %10374 = vst [vmem:[#allocation4_spill] sm:$0xff] %v6827_v17  ;;  %5858 = vset.pattern.permute.xlu1 %v10202_v43 }
  0xd4   :  { %552 = vperm.xlu1 %5858, %v6592_v15  }
  0xd6   :  { %977 = vperm.xlu0 %5889, %v6422_v16  }
  0xd7   :  { %v6832_v18 = vpop.permute.xlu1 %784 }
  0xd8   :  { %5859 = vset.pattern.permute.xlu1 %v10206_v45 }
  0xd9   :  { %1709 = vperm.xlu1 %5859, %v6637_v37  }
  0xda   :  { %1029 = vperm.xlu0 %5889, %v6678_v47  }
  0xdc   :  { %v6837_v19 = vpop.permute.xlu1 %965 }
  0xdd   :  { %10375 = vst [vmem:[#allocation5_spill] sm:$0xff] %v6837_v19  ;;  %5860 = vset.pattern.permute.xlu1 %v10204_v11 }
  0xde   :  { %1357 = vperm.xlu1 %5860, %v6637_v37   ;;  %1041 = vperm.xlu0 %5889, %v6685_v48  }
  0xe1   :  { %v6848_v21 = vpop.permute.xlu1 %517 }
  0xe2   :  { %10376 = vst [vmem:[#allocation6_spill] sm:$0xff] %v6848_v21  ;;  %1361 = vperm.xlu1 %5860, %v6592_v15   ;;  %1049 = vperm.xlu0 %5889, %v6698_v50  }
  0xe5   :  { %v6857_v23 = vpop.permute.xlu1 %522 }
  0xe6   :  { %10377 = vst [vmem:[#allocation7_spill] sm:$0xff] %v6857_v23  ;;  %5861 = vset.pattern.permute.xlu1 %v10198_v38  ;;  %v10383_v23 = vmov 5   ;;  %1057 = vperm.xlu0 %5889, %v6705_v51  }
  0xe7   :  { %1233 = vperm.xlu1 %5861, %v6705_v51  }
  0xea   :  { %v6867_v25 = vpop.permute.xlu1 %1689  ;;  %1065 = vperm.xlu0 %5889, %v6726_v55  }
  0xeb   :  { %5862 = vset.pattern.permute.xlu1 %v10196_v0  ;;  %v167_v0 = vrot.slane %v6717_v53, %v166_v5 }
  0xec   :  { %812 = vperm.xlu1 %5862, %v6845_v20  }
  0xef   :  { %v6882_v29 = vpop.permute.xlu1 %1333 }
  0xf0   :  { %10379 = vst [vmem:[#allocation9_spill] sm:$0xff] %v6882_v29  ;;  %5863 = vset.pattern.permute.xlu1 %v10200_v42 }
  0xf1   :  { %997 = vperm.xlu1 %5863, %v6601_v32  }
  0xf4   :  { %v6887_v31 = vpop.permute.xlu1 %1205 }
  0xf5   :  { %10380 = vst [vmem:[#allocation10_spill] sm:$0xff] %v6887_v31  ;;  %1001 = vperm.xlu1 %5863, %v6613_v34  }
  0xf8   :  { %v6894_v37 = vpop.permute.xlu1 %1209 }
  0xf9   :  { %10381 = vst [vmem:[#allocation11_spill] sm:$0xff] %v6894_v37  ;;  %5864 = vset.pattern.permute.xlu1 %v10202_v43 }
  0xfa   :  { %562 = vperm.xlu1 %5864, %v6613_v34  }
  0xfd   :  { %v6901_v38 = vpop.permute.xlu1 %792 }
  0xfe   :  { %5865 = vset.pattern.permute.xlu1 %v10206_v45  ;;  %v246_v6 = vpop.f32.mrb[0].mxu0 }
  0xff   :  { %1717 = vperm.xlu1 %5865, %v6601_v32   ;;  %v247_v30 = vadd.f32 %v246_v6, %v167_v0  ;;  %v5738_v42 = vpop.f32.mrb[1].mxu0 }
 0x100   :  { %v10386_v42 = vmov 3  }
 0x101   :  { %v250_v11 = vmax.f32 %v247_v30, 0.0  ;;  %v10389_v30 = vmov 2  }
 0x102   :  { %v6907_v43 = vpop.permute.xlu1 %973 }
 0x103   :  { %10382 = vst [vmem:[#allocation12_spill] sm:$0xff] %v6907_v43  ;;  %5866 = vset.pattern.permute.xlu1 %v10383_v23  ;;  %5742 = vmatmul.mubr.msk.f32.vlgmr.msra.gmra.mrb[2].mxu0 %vm255_vm6, %v250_v11 }
 0x104   :  { %1365 = vperm.xlu1 %5866, %v6601_v32   ;;  %v10387_v32 = vmov 1  }
 0x107   :  { %v6912_v5 = vpop.permute.xlu1 %527 }
 0x108   :  { %10384 = vst [vmem:[#allocation13_spill] sm:$0xff] %v6912_v5  ;;  %1369 = vperm.xlu1 %5866, %v6613_v34  }
 0x10b   :  { %v6916_v0 = vpop.permute.xlu1 %532 }
 0x10c   :  { %10385 = vst [vmem:[#allocation14_spill] sm:$0xff] %v6916_v0  ;;  %5867 = vset.pattern.permute.xlu1 %v10386_v42  ;;  %v10391_v0 = vmov 0  }
 0x10d   :  { %1241 = vperm.xlu1 %5867, %v6726_v55   ;;  %v10392_v55 = vmov 7  }
 0x110   :  { %v6921_v6 = vpop.permute.xlu1 %1697 }
 0x111   :  { %5868 = vset.pattern.permute.xlu1 %v10387_v32 }
 0x112   :  { %820 = vperm.xlu1 %5868, %v6854_v22  }
 0x115   :  { %v6925_v11 = vpop.permute.xlu1 %1341 }
 0x116   :  { %10388 = vst [vmem:[#allocation15_spill] sm:$0xff] %v6925_v11  ;;  %5869 = vset.pattern.permute.xlu1 %v10389_v30 }
 0x117   :  { %1005 = vperm.xlu1 %5869, %v6663_v44  }
 0x11a   :  { %v6929_v45 = vpop.permute.xlu1 %1217 }
 0x11b   :  { %10390 = vst [vmem:[#allocation16_spill] sm:$0xff] %v6929_v45  ;;  %1009 = vperm.xlu1 %5869, %v6619_v35  }
 0x11f   :  { %5870 = vset.pattern.permute.xlu1 %v10391_v0  ;;  %v6933_v5 = vpop.permute.xlu1 %796 }
 0x120   :  { %572 = vperm.xlu1 %5870, %v6619_v35  }
 0x124   :  { %5871 = vset.pattern.permute.xlu1 %v10392_v55  ;;  %v6937_v43 = vpop.permute.xlu1 %981 }
 0x125   :  { %10393 = vst [vmem:[#allocation17_spill] sm:$0xff] %v6937_v43  ;;  %1725 = vperm.xlu1 %5871, %v6663_v44  }
 0x128   :  { %v6940_v21 = vpop.permute.xlu1 %985 }
 0x129   :  { %10394 = vst [vmem:[#allocation18_spill] sm:$0xff] %v6940_v21  ;;  %5872 = vset.pattern.permute.xlu1 %v10383_v23 }
 0x12a   :  { %1373 = vperm.xlu1 %5872, %v6663_v44  }
 0x12d   :  { %v6944_v19 = vpop.permute.xlu1 %542 }
 0x12e   :  { %10395 = vst [vmem:[#allocation19_spill] sm:$0xff] %v6944_v19  ;;  %1377 = vperm.xlu1 %5872, %v6619_v35  }
 0x132   :  { %5873 = vset.pattern.permute.xlu1 %v10386_v42  ;;  %v6948_v45 = vpop.permute.xlu1 %1701 }
 0x133   :  { %1249 = vperm.xlu1 %5873, %v6733_v56  }
 0x137   :  { %5874 = vset.pattern.permute.xlu1 %v10387_v32  ;;  %v6952_v43 = vpop.permute.xlu1 %1349 }
 0x138   :  { %10396 = vst [vmem:[#allocation20_spill] sm:$0xff] %v6952_v43  ;;  %828 = vperm.xlu1 %5874, %v6864_v24  }
 0x13b   :  { %v6955_v21 = vpop.permute.xlu1 %1353 }
 0x13c   :  { %10397 = vst [vmem:[#allocation21_spill] sm:$0xff] %v6955_v21  ;;  %5875 = vset.pattern.permute.xlu1 %v10389_v30 }
 0x13d   :  { %1013 = vperm.xlu1 %5875, %v6628_v36  }
 0x140   :  { %v6959_v44 = vpop.permute.xlu1 %1225 }
 0x141   :  { %10398 = vst [vmem:[#allocation22_spill] sm:$0xff] %v6959_v44  ;;  %1017 = vperm.xlu1 %5875, %v6642_v40  }
 0x145   :  { %5876 = vset.pattern.permute.xlu1 %v10391_v0  ;;  %v6963_v35 = vpop.permute.xlu1 %804 }
 0x146   :  { %582 = vperm.xlu1 %5876, %v6642_v40  }
 0x14a   :  { %5877 = vset.pattern.permute.xlu1 %v10392_v55  ;;  %v6967_v19 = vpop.permute.xlu1 %989 }
 0x14b   :  { %10399 = vst [vmem:[#allocation23_spill] sm:$0xff] %v6967_v19  ;;  %1733 = vperm.xlu1 %5877, %v6628_v36  }
 0x14e   :  { %v6970_v24 = vpop.permute.xlu1 %993 }
 0x14f   :  { %10400 = vst [vmem:[#allocation24_spill] sm:$0xff] %v6970_v24  ;;  %5878 = vset.pattern.permute.xlu1 %v10383_v23 }
 0x150   :  { %1381 = vperm.xlu1 %5878, %v6628_v36  }
 0x153   :  { %v6974_v44 = vpop.permute.xlu1 %552 }
 0x154   :  { %10401 = vst [vmem:[#allocation25_spill] sm:$0xff] %v6974_v44  ;;  %1385 = vperm.xlu1 %5878, %v6642_v40  }
 0x158   :  { %5879 = vset.pattern.permute.xlu1 %v10386_v42  ;;  %v6978_v31 = vpop.permute.xlu1 %1709 }
 0x159   :  { %1257 = vperm.xlu1 %5879, %v6742_v58  }
 0x15d   :  { %5880 = vset.pattern.permute.xlu1 %v10387_v32  ;;  %v6982_v19 = vpop.permute.xlu1 %1357 }
 0x15e   :  { %10402 = vst [vmem:[#allocation26_spill] sm:$0xff] %v6982_v19  ;;  %836 = vperm.xlu1 %5880, %v6873_v26  }
 0x161   :  { %v6985_v24 = vpop.permute.xlu1 %1361 }
 0x162   :  { %10403 = vst [vmem:[#allocation27_spill] sm:$0xff] %v6985_v24  ;;  %5882 = vset.pattern.permute.xlu1 %v10389_v30 }
 0x163   :  { %1021 = vperm.xlu1 %5882, %v6671_v46  }
 0x166   :  { %v6989_v36 = vpop.permute.xlu1 %1233 }
 0x167   :  { %10404 = vst [vmem:[#allocation28_spill] sm:$0xff] %v6989_v36  ;;  %1025 = vperm.xlu1 %5882, %v6649_v41   ;;  %v10208_v36 = vmov 6  }
 0x16b   :  { %5883 = vset.pattern.permute.xlu1 %v10391_v0  ;;  %v6993_v40 = vpop.permute.xlu1 %812 }
 0x16c   :  { %10405 = vst [vmem:[#allocation29_spill] sm:$0xff] %v6993_v40  ;;  %592 = vperm.xlu1 %5883, %v6649_v41  }
 0x170   :  { %5884 = vset.pattern.permute.xlu1 %v10392_v55  ;;  %v6997_v58 = vpop.permute.xlu1 %997 }
 0x171   :  { %10406 = vst [vmem:[#allocation30_spill] sm:$0xff] %v6997_v58  ;;  %1741 = vperm.xlu1 %5884, %v6671_v46   ;;  %v446_v58 = vld [vmem:[%s10184_s3 + $0xf0] sm:$0xff] }
 0x174   :  { %v7000_v26 = vpop.permute.xlu1 %1001 }
 0x175   :  { %10407 = vst [vmem:[#allocation31_spill] sm:$0xff] %v7000_v26  ;;  %5886 = vset.pattern.permute.xlu1 %v10383_v23 }
 0x176   :  { %1389 = vperm.xlu1 %5886, %v6671_v46  }
 0x179   :  { %v7004_v44 = vpop.permute.xlu1 %562 }
 0x17a   :  { %10408 = vst [vmem:[#allocation32_spill] sm:$0xff] %v7004_v44  ;;  %1393 = vperm.xlu1 %5886, %v6649_v41   ;;  %v7020_v41 = vpop.permute.xlu0 %1337 }
 0x17b   :  { %10411 = vst [vmem:[#allocation35_spill] sm:$0xff] %v7020_v41 }
 0x17e   :  { %5887 = vset.pattern.permute.xlu1 %v10208_v36  ;;  %v7008_v40 = vpop.permute.xlu1 %1717  ;;  %v7028_v44 = vpop.permute.xlu0 %1345 }
 0x17f   :  { %1509 = vperm.xlu1 %5887, %v6381_v1   ;;  %10414 = vst [vmem:[#allocation38_spill] sm:$0xff] %v7028_v44 }
 0x183   :  { %5888 = vset.pattern.permute.xlu1 %v10386_v42  ;;  %v7015_v26 = vpop.permute.xlu1 %1365 }
 0x184   :  { %10409 = vst [vmem:[#allocation33_spill] sm:$0xff] %v7015_v26  ;;  %1261 = vperm.xlu1 %5888, %v446_v58   ;;  %v10418_v26 = vmov 6  }
 0x187   :  { %v7017_v46 = vpop.permute.xlu1 %1369 }
 0x188   :  { %10410 = vst [vmem:[#allocation34_spill] sm:$0xff] %v7017_v46  ;;  %5890 = vset.pattern.permute.xlu1 %v10387_v32  ;;  %v7035_v32 = vpop.permute.xlu0 %732 }
 0x189   :  { %844 = vperm.xlu1 %5890, %v446_v58  }
 0x18c   :  { %v7022_v36 = vpop.permute.xlu1 %1241 }
 0x18d   :  { %10412 = vst [vmem:[#allocation36_spill] sm:$0xff] %v7022_v36  ;;  %848 = vperm.xlu1 %5890, %v6880_v27   ;;  %v7041_v36 = vpop.permute.xlu0 %748 }
 0x191   :  { %5891 = vset.pattern.permute.xlu1 %v10389_v30  ;;  %v7026_v1 = vpop.permute.xlu1 %820  ;;  %v7046_v46 = vpop.permute.xlu0 %764 }
 0x192   :  { %10413 = vst [vmem:[#allocation37_spill] sm:$0xff] %v7026_v1  ;;  %1033 = vperm.xlu1 %5891, %v6693_v49  }
 0x195   :  { %v7055_v19 = vpop.permute.xlu0 %780 }
 0x196   :  { %5892 = vset.pattern.permute.xlu1 %v10391_v0  ;;  %v7032_v42 = vpop.permute.xlu1 %1005 }
 0x197   :  { %10415 = vst [vmem:[#allocation39_spill] sm:$0xff] %v7032_v42  ;;  %597 = vperm.xlu1 %5892, %v6678_v47  }
 0x19a   :  { %v7037_v58 = vpop.permute.xlu1 %1009 }
 0x19b   :  { %10416 = vst [vmem:[#allocation40_spill] sm:$0xff] %v7037_v58  ;;  %5893 = vset.pattern.permute.xlu1 %v10392_v55 }
 0x19c   :  { %1749 = vperm.xlu1 %5893, %v6678_v47  }
 0x19f   :  { %v7043_v1 = vpop.permute.xlu1 %572 }
 0x1a0   :  { %10417 = vst [vmem:[#allocation41_spill] sm:$0xff] %v7043_v1  ;;  %1753 = vperm.xlu1 %5893, %v6693_v49   ;;  %v7062_v1 = vpop.permute.xlu0 %788 }
 0x1a4   :  { %5894 = vset.pattern.permute.xlu1 %v10383_v23  ;;  %v7049_v42 = vpop.permute.xlu1 %1725 }
 0x1a5   :  { %1401 = vperm.xlu1 %5894, %v6693_v49   ;;  %v7068_v49 = vpop.permute.xlu0 %800 }
 0x1a9   :  { %5895 = vset.pattern.permute.xlu1 %v10418_v26  ;;  %v7053_v58 = vpop.permute.xlu1 %1373 }
 0x1aa   :  { %10419 = vst [vmem:[#allocation42_spill] sm:$0xff] %v7053_v58  ;;  %1521 = vperm.xlu1 %5895, %v6422_v16   ;;  %v7074_v16 = vpop.permute.xlu0 %808 }
 0x1ad   :  { %v7058_v47 = vpop.permute.xlu1 %1377 }
 0x1ae   :  { %10420 = vst [vmem:[#allocation43_spill] sm:$0xff] %v7058_v47  ;;  %5896 = vset.pattern.permute.xlu1 %v10389_v30 }
 0x1af   :  { %1037 = vperm.xlu1 %5896, %v6767_v3  }
 0x1b2   :  { %v7064_v24 = vpop.permute.xlu1 %1249 }
 0x1b3   :  { %10421 = vst [vmem:[#allocation44_spill] sm:$0xff] %v7064_v24  ;;  %5897 = vset.pattern.permute.xlu1 %v10391_v0  ;;  %v7082_v24 = vpop.permute.xlu0 %816 }
 0x1b4   :  { %607 = vperm.xlu1 %5897, %v6767_v3   ;;  %10425 = vst [vmem:[#allocation48_spill] sm:$0xff] %v7082_v24 }
 0x1b7   :  { %v7070_v58 = vpop.permute.xlu1 %828 }
 0x1b8   :  { %10422 = vst [vmem:[#allocation45_spill] sm:$0xff] %v7070_v58  ;;  %5898 = vset.pattern.permute.xlu1 %v10392_v55 }
 0x1b9   :  { %1757 = vperm.xlu1 %5898, %v6767_v3   ;;  %v7089_v3 = vpop.permute.xlu0 %824 }
 0x1ba   :  { %10427 = vst [vmem:[#allocation50_spill] sm:$0xff] %v7089_v3 }
 0x1bc   :  { %v7076_v47 = vpop.permute.xlu1 %1013 }
 0x1bd   :  { %10423 = vst [vmem:[#allocation46_spill] sm:$0xff] %v7076_v47  ;;  %1761 = vperm.xlu1 %5898, %v6685_v48   ;;  %v7095_v47 = vpop.permute.xlu0 %832 }
 0x1be   :  { %10429 = vst [vmem:[#allocation52_spill] sm:$0xff] %v7095_v47 }
 0x1c0   :  { %v7079_v37 = vpop.permute.xlu1 %1017 }
 0x1c1   :  { %10424 = vst [vmem:[#allocation47_spill] sm:$0xff] %v7079_v37  ;;  %5899 = vset.pattern.permute.xlu1 %v10383_v23 }
 0x1c2   :  { %1409 = vperm.xlu1 %5899, %v6685_v48  }
 0x1c5   :  { %v7085_v17 = vpop.permute.xlu1 %582 }
 0x1c6   :  { %10426 = vst [vmem:[#allocation49_spill] sm:$0xff] %v7085_v17  ;;  %5900 = vset.pattern.permute.xlu1 %v10418_v26  ;;  %v7103_v17 = vpop.permute.xlu0 %840 }
 0x1c7   :  { %1529 = vperm.xlu1 %5900, %v6586_v61   ;;  %10432 = vst [vmem:[#allocation55_spill] sm:$0xff] %v7103_v17  ;;  %v253_v61 = vsub.s32 5, %v6891_v33 }
 0x1ca   :  { %v7091_v58 = vpop.permute.xlu1 %1733  ;;  %v7110_v54 = vpop.permute.xlu0 %1685 }
 0x1cb   :  { %10428 = vst [vmem:[#allocation51_spill] sm:$0xff] %v7091_v58  ;;  %5901 = vset.pattern.permute.xlu1 %v10389_v30 }
 0x1cc   :  { %1045 = vperm.xlu1 %5901, %v6810_v28  }
 0x1ce   :  { %v7118_v17 = vpop.permute.xlu0 %1693 }
 0x1cf   :  { %v7097_v37 = vpop.permute.xlu1 %1381 }
 0x1d0   :  { %10430 = vst [vmem:[#allocation53_spill] sm:$0xff] %v7097_v37  ;;  %5902 = vset.pattern.permute.xlu1 %v10391_v0  ;;  %v254_v37 = vrot.slane %v6717_v53, %v253_v61 }
 0x1d1   :  { %617 = vperm.xlu1 %5902, %v6810_v28  }
 0x1d3   :  { %v7101_v48 = vpop.permute.xlu1 %1385 }
 0x1d4   :  { %10431 = vst [vmem:[#allocation54_spill] sm:$0xff] %v7101_v48 }
 0x1d5   :  { %5903 = vset.pattern.permute.xlu1 %v10392_v55 }
 0x1d6   :  { %1765 = vperm.xlu1 %5903, %v6810_v28   ;;  %v329_v3 = vpop.f32.mrb[2].mxu0 }
 0x1d7   :  { %v5743_v47 = vpop.f32.mrb[3].mxu0  ;;  %v330_v28 = vadd.f32 %v329_v3, %v254_v37 }
 0x1d8   :  { %v7108_v24 = vpop.permute.xlu1 %1257 }
 0x1d9   :  { %10433 = vst [vmem:[#allocation56_spill] sm:$0xff] %v7108_v24  ;;  %v333_v47 = vsub.f32 0.0, %v330_v28  ;;  %v7124_v24 = vpop.permute.xlu0 %1705 }
 0x1da   :  { %1769 = vperm.xlu1 %5903, %v6698_v50  }
 0x1db   :  { %v334_v53 = vmul.f32 1.442695, %v333_v47 }
 0x1dd   :  { %v7114_v27 = vpop.permute.xlu1 %836  ;;  %v7132_v61 = vpop.permute.xlu0 %1713  ;;  %6228 = vpow2.f32 %v334_v53 }
 0x1de   :  { %10434 = vst [vmem:[#allocation57_spill] sm:$0xff] %v7114_v27  ;;  %5904 = vset.pattern.permute.xlu1 %v10383_v23 }
 0x1df   :  { %1417 = vperm.xlu1 %5904, %v6698_v50  }
 0x1e2   :  { %v7120_v48 = vpop.permute.xlu1 %1021 }
 0x1e3   :  { %10435 = vst [vmem:[#allocation58_spill] sm:$0xff] %v7120_v48  ;;  %5905 = vset.pattern.permute.xlu1 %v10418_v26  ;;  %v6322_v48 = vmov 1966171168  }
 0x1e4   :  { %1537 = vperm.xlu1 %5905, %v6592_v15   ;;  %v7138_v15 = vpop.permute.xlu0 %1721  ;;  %v341_v27 = vunpack.c.l.s4 %v6322_v48 }
 0x1e6   :  { %v7126_v52 = vpop.permute.xlu1 %1025 }
 0x1e7   :  { %10436 = vst [vmem:[#allocation59_spill] sm:$0xff] %v7126_v52  ;;  %v6229_v28 = vpop.eup %6228 }
 0x1e8   :  { %5906 = vset.pattern.permute.xlu1 %v10389_v30  ;;  %v7145_v47 = vpop.permute.xlu0 %1729  ;;  %v336_v53 = vadd.f32 1.0, %v6229_v28 }
 0x1e9   :  { %1053 = vperm.xlu1 %5906, %v6845_v20  }
 0x1ea   :  { %6230 = vrcp.f32 %v336_v53 }
 0x1eb   :  { %v7130_v50 = vpop.permute.xlu1 %592 }
 0x1ec   :  { %10437 = vst [vmem:[#allocation60_spill] sm:$0xff] %v7130_v50  ;;  %v7151_v52 = vpop.permute.xlu0 %1737 }
 0x1ed   :  { %5907 = vset.pattern.permute.xlu1 %v10391_v0  ;;  %10441 = vst [vmem:[#allocation64_spill] sm:$0xff] %v7151_v52 }
 0x1ee   :  { %627 = vperm.xlu1 %5907, %v6845_v20  }
 0x1f0   :  { %v7136_v37 = vpop.permute.xlu1 %1741  ;;  %v7159_v28 = vpop.permute.xlu0 %1745 }
 0x1f1   :  { %10438 = vst [vmem:[#allocation61_spill] sm:$0xff] %v7136_v37  ;;  %10444 = vst [vmem:[#allocation67_spill] sm:$0xff] %v7159_v28 }
 0x1f2   :  { %5908 = vset.pattern.permute.xlu1 %v10392_v55  ;;  %v6234_v55 = vld [vmem:[%s10186_s0 + $0x18] sm:$0xff] }
 0x1f3   :  { %1773 = vperm.xlu1 %5908, %v6845_v20  }
 0x1f4   :  { %v6231_v53 = vpop.eup %6230  ;;  %v7166_v48 = vpop.permute.xlu0 %1141 }
 0x1f5   :  { %v7142_v3 = vpop.permute.xlu1 %1389  ;;  %10446 = vst [vmem:[#allocation69_spill] sm:$0xff] %v7166_v48 }
 0x1f6   :  { %10439 = vst [vmem:[#allocation62_spill] sm:$0xff] %v7142_v3  ;;  %v342_v3 = vunpack.c.0.s8 %v341_v27 }
 0x1f7   :  { %1777 = vperm.xlu1 %5908, %v6705_v51  }
 0x1f8   :  { %v7176_v28 = vpop.permute.xlu0 %1145 }
 0x1f9   :  { %v7147_v50 = vpop.permute.xlu1 %1393  ;;  %10449 = vst [vmem:[#allocation72_spill] sm:$0xff] %v7176_v28 }
 0x1fa   :  { %10440 = vst [vmem:[#allocation63_spill] sm:$0xff] %v7147_v50 }
 0x1fb   :  { %5909 = vset.pattern.permute.xlu1 %v10383_v23  ;;  %v6233_v23 = vld [vmem:[%s10186_s0 + $0x10] sm:$0xff] }
 0x1fc   :  { %1425 = vperm.xlu1 %5909, %v6705_v51   ;;  %v345_v51 = vsub.s32 %v342_v3, %v6891_v33 }
 0x1fe   :  { %v7153_v20 = vpop.permute.xlu1 %1509 }
 0x1ff   :  { %10442 = vst [vmem:[#allocation65_spill] sm:$0xff] %v7153_v20  ;;  %v346_v20 = vrot.slane %v6231_v53, %v345_v51  ;;  %v6232_v53 = vld [vmem:[%s10186_s0 + $0x8] sm:$0xff] }
 0x200   :  { %5910 = vset.pattern.permute.xlu1 %v10418_v26 }
 0x201   :  { %1545 = vperm.xlu1 %5910, %v6613_v34   ;;  %v7171_v27 = vrot.slane %v346_v20, %v345_v51  ;;  %v347_v26 = vcombine.high %v346_v20, %v346_v20  ;;  %v6235_v20 = vld [vmem:[%s10186_s0 + $0x20] sm:$0xff] }
 0x203   :  { %v7157_v37 = vpop.permute.xlu1 %1261 }
 0x204   :  { %10443 = vst [vmem:[#allocation66_spill] sm:$0xff] %v7157_v37  ;;  %v7174_v37 = vsub.s32 0, %v6891_v33 }
 0x205   :  { %5911 = vset.pattern.permute.xlu1 %v10389_v30 }
 0x206   :  { %1061 = vperm.xlu1 %5911, %v6854_v22   ;;  %10448 = vst [vmem:[#allocation71_spill] sm:$0xff] %v7174_v37  ;;  %v7182_v22 = vrot.slane %v7171_v27, %v7174_v37 }
 0x208   :  { %v7164_v50 = vpop.permute.xlu1 %844  ;;  %v7202_v48 = vmul.f32 %v6234_v55, %v7182_v22 }
 0x209   :  { %10445 = vst [vmem:[#allocation68_spill] sm:$0xff] %v7164_v50  ;;  %v1150_v50 = vpop.permute.xlu0 %1149 }
 0x20a   :  { %5912 = vset.pattern.permute.xlu1 %v10391_v0  ;;  %10454 = vst [vmem:[#allocation77_spill] sm:$0xff] %v7202_v48  ;;  %v7214_v0 = vrot.slane %v347_v26, %v345_v51  ;;  %v1814_v43 = vmul.f32 %v7118_v17, %v7202_v48  ;;  %v6237_v17 = vld [vmem:[%s10186_s0 + $0x30] sm:$0xff] }
 0x20c   :  { %v7169_v34 = vpop.permute.xlu1 %848 }
 0x20d   :  { %10447 = vst [vmem:[#allocation70_spill] sm:$0xff] %v7169_v34  ;;  %v7188_v34 = vmul.f32 %v6232_v53, %v7182_v22 }
 0x20f   :  { %10451 = vst [vmem:[#allocation74_spill] sm:$0xff] %v7188_v34  ;;  %v1812_v53 = vmul.f32 %v7110_v54, %v7188_v34  ;;  %v853_v52 = vmul.f32 %v7035_v32, %v7188_v34 }
 0x211   :  { %v7178_v3 = vpop.permute.xlu1 %1033 }
 0x212   :  { %10450 = vst [vmem:[#allocation73_spill] sm:$0xff] %v7178_v3  ;;  %v7196_v3 = vmul.f32 %v6233_v23, %v7182_v22  ;;  %v1162_v23 = vpop.permute.xlu0 %1161 }
 0x214   :  { %10453 = vst [vmem:[#allocation76_spill] sm:$0xff] %v7196_v3  ;;  %v1813_v21 = vmul.f32 %v6867_v25, %v7196_v3  ;;  %v6236_v25 = vld [vmem:[%s10186_s0 + $0x28] sm:$0xff] }
 0x216   :  { %v7190_v30 = vpop.permute.xlu1 %597  ;;  %v1844_v55 = vpack.c.bf16 %v1813_v21, %v1812_v53  ;;  %v7233_v21 = vmul.f32 %v6236_v25, %v7182_v22  ;;  %v1166_v26 = vpop.permute.xlu0 %1165  ;;  %v6238_v25 = vld [vmem:[%s10186_s0 + $0x38] sm:$0xff] }
 0x217   :  { %10452 = vst [vmem:[#allocation75_spill] sm:$0xff] %v7190_v30  ;;  %v7210_v30 = vmul.f32 %v6235_v20, %v7182_v22  ;;  %v7226_v20 = vrot.slane %v7214_v0, %v7174_v37 }
 0x218   :  { %2196 = vrot.lane.b32.xlu0 %v1844_v55, %s6323_s14  ;;  %10458 = vst [vmem:[#allocation81_spill] sm:$0xff] %v7233_v21  ;;  %v1816_v53 = vmul.f32 %v6948_v45, %v7233_v21 }
 0x219   :  { %10455 = vst [vmem:[#allocation78_spill] sm:$0xff] %v7210_v30  ;;  %v1815_v54 = vmul.f32 %v6921_v6, %v7210_v30  ;;  %v7239_v6 = vmul.f32 %v6237_v17, %v7182_v22  ;;  %v6239_v17 = vld [vmem:[%s10186_s0 + $0x40] sm:$0xff]  ;;  %v452_v32 = vrot.slane %v7210_v30, 7 }
 0x21a   :  { %v1178_v58 = vpop.permute.xlu0 %1177 }
 0x21b   :  { %v7212_v28 = vpop.permute.xlu1 %1749  ;;  %10459 = vst [vmem:[#allocation82_spill] sm:$0xff] %v7239_v6  ;;  %v1845_v51 = vpack.c.bf16 %v1815_v54, %v1814_v43  ;;  %v1817_v55 = vmul.f32 %v7124_v24, %v7239_v6  ;;  %v7256_v43 = vmul.f32 %v6239_v17, %v7226_v20  ;;  %v854_v24 = vmul.f32 %v6746_v59, %v7196_v3 }
 0x21c   :  { %10456 = vst [vmem:[#allocation79_spill] sm:$0xff] %v7212_v28  ;;  %v7250_v28 = vmul.f32 %v6238_v25, %v7182_v22  ;;  %v450_v25 = vrot.slane %v7196_v3, 7 }
 0x21d   :  { %2198 = vrot.lane.b32.xlu0 %v1845_v51, %s6323_s14  ;;  %10461 = vst [vmem:[#allocation84_spill] sm:$0xff] %v7256_v43  ;;  %v1846_v54 = vpack.c.bf16 %v1817_v55, %v1816_v53  ;;  %v1819_v51 = vmul.f32 %v7132_v61, %v7256_v43  ;;  %v10463_v61 = vrot.slane %v7188_v34, 7  ;;  %v884_v41 = vpack.c.bf16 %v854_v24, %v853_v52 }
 0x21e   :  { %10460 = vst [vmem:[#allocation83_spill] sm:$0xff] %v7250_v28  ;;  %v1818_v17 = vmul.f32 %v6978_v31, %v7250_v28  ;;  %v454_v52 = vrot.slane %v7239_v6, 7 }
 0x21f   :  { %v7222_v44 = vpop.permute.xlu1 %1753  ;;  %v7281_v55 = vsel %vm482_vm7, %v10463_v61, %v450_v25  ;;  %v855_v61 = vmul.f32 %v6757_v62, %v7202_v48  ;;  %2054 = vrot.lane.b32.xlu1 %v884_v41, %s6323_s14 }
 0x220   :  { %10457 = vst [vmem:[#allocation80_spill] sm:$0xff] %v7222_v44  ;;  %v451_v44 = vrot.slane %v7202_v48, 7  ;;  %v1847_v31 = vpack.c.bf16 %v1819_v51, %v1818_v17  ;;  %v1270_v11 = vmul.f32 %v1150_v50, %v7281_v55  ;;  %v856_v51 = vmul.f32 %v6762_v63, %v7210_v30 }
 0x221   :  { %2200 = vrot.lane.b32.xlu0 %v1846_v54, %s6323_s14  ;;  %v453_v54 = vrot.slane %v7233_v21, 7  ;;  %v455_v17 = vrot.slane %v7250_v28, 7  ;;  %v857_v63 = vmul.f32 %v7041_v36, %v7233_v21  ;;  %v6241_v36 = vld [vmem:[%s10186_s0 + $0x68] sm:$0xff] }
 0x222   :  { %v7275_v53 = vsel %vm482_vm7, %v450_v25, %v451_v44  ;;  %v7296_v25 = vsel %vm482_vm7, %v451_v44, %v452_v32  ;;  %v885_v44 = vpack.c.bf16 %v856_v51, %v855_v61  ;;  %v6242_v61 = vld [vmem:[%s10186_s0 + $0x60] sm:$0xff] }
 0x223   :  { %v1271_v59 = vmul.f32 %v6736_v57, %v7275_v53  ;;  %v7292_v29 = vsel %vm482_vm7, %v452_v32, %v453_v54  ;;  %v1272_v57 = vmul.f32 %v6752_v60, %v7296_v25  ;;  %v1182_v32 = vpop.permute.xlu0 %1181  ;;  %v7311_v62 = vsel %vm482_vm7, %v453_v54, %v454_v52  ;;  %v6240_v60 = vld [vmem:[%s10186_s0 + $0x48] sm:$0xff] }
 0x224   :  { %v7258_v45 = vpop.permute.xlu1 %1401  ;;  %10465 = vst [vmem:[#allocation87_spill] sm:$0xff] %v7292_v29  ;;  %v1273_v24 = vmul.f32 %v1162_v23, %v7292_v29  ;;  %10466 = vst [vmem:[#allocation88_spill] sm:$0xff] %v7311_v62  ;;  %v7321_v41 = vmul.f32 %v6240_v60, %v7226_v20  ;;  %v456_v54 = vrot.slane %v7256_v43, 7  ;;  %2056 = vrot.lane.b32.xlu1 %v885_v44, %s6323_s14 }
 0x225   :  { %10462 = vst [vmem:[#allocation85_spill] sm:$0xff] %v7258_v45  ;;  %2202 = vrot.lane.b32.xlu0 %v1847_v31, %s6323_s14  ;;  %v1301_v50 = vpack.c.bf16 %v1271_v59, %v1270_v11  ;;  %v858_v11 = vmul.f32 %v6777_v7, %v7239_v6  ;;  %v7327_v31 = vsel %vm482_vm7, %v454_v52, %v455_v17 }
 0x226   :  { %10467 = vst [vmem:[#allocation89_spill] sm:$0xff] %v7321_v41  ;;  %10469 = vst [vmem:[#allocation91_spill] sm:$0xff] %v7327_v31  ;;  %v7334_v7 = vmul.f32 %v6241_v36, %v7226_v20  ;;  %v457_v59 = vrot.slane %v7321_v41, 7  ;;  %v7343_v51 = vmul.f32 %v6242_v61, %v7226_v20  ;;  %v1302_v52 = vpack.c.bf16 %v1273_v24, %v1272_v57  ;;  %v6243_v57 = vld [vmem:[%s10186_s0 + $0x50] sm:$0xff]  ;;  %v6244_v24 = vld [vmem:[%s10186_s0 + $0x58] sm:$0xff] }
 0x227   :  { %v1274_v60 = vmul.f32 %v1166_v26, %v7311_v62  ;;  %v7348_v36 = vsel %vm482_vm7, %v455_v17, %v456_v54  ;;  %v886_v44 = vpack.c.bf16 %v858_v11, %v857_v63  ;;  %v7362_v26 = vmul.f32 %v6243_v57, %v7226_v20  ;;  %v1194_v63 = vpop.permute.xlu0 %1193 }
 0x228   :  { %10470 = vst [vmem:[#allocation92_spill] sm:$0xff] %v7334_v7  ;;  %10471 = vst [vmem:[#allocation93_spill] sm:$0xff] %v7343_v51  ;;  %v859_v61 = vmul.f32 %v6787_v9, %v7250_v28 }
 0x229   :  { %v7285_v45 = vpop.permute.xlu1 %1521  ;;  %2102 = vrot.lane.b32.xlu0 %v1301_v50, %s6323_s14  ;;  %10472 = vst [vmem:[#allocation94_spill] sm:$0xff] %v7348_v36  ;;  %v1275_v50 = vmul.f32 %v6772_v4, %v7327_v31  ;;  %10474 = vst [vmem:[#allocation96_spill] sm:$0xff] %v7362_v26  ;;  %v7368_v4 = vmul.f32 %v6244_v24, %v7226_v20  ;;  %2058 = vrot.lane.b32.xlu1 %v886_v44, %s6323_s14  ;;  %v458_v24 = vrot.slane %v7362_v26, 7 }
 0x22a   :  { %10464 = vst [vmem:[#allocation86_spill] sm:$0xff] %v7285_v45  ;;  %v7354_v45 = vsel %vm482_vm7, %v456_v54, %v457_v59  ;;  %v1276_v54 = vmul.f32 %v6782_v8, %v7348_v36  ;;  %v862_v44 = vmul.f32 %v6802_v12, %v7362_v26 }
 0x22b   :  { %10473 = vst [vmem:[#allocation95_spill] sm:$0xff] %v7354_v45  ;;  %10475 = vst [vmem:[#allocation97_spill] sm:$0xff] %v7368_v4  ;;  %v1277_v57 = vmul.f32 %v1178_v58, %v7354_v45  ;;  %v1303_v31 = vpack.c.bf16 %v1275_v50, %v1274_v60  ;;  %v7395_v9 = vsel %vm482_vm7, %v457_v59, %v458_v24  ;;  %v10481_v59 = vrot.slane %v7334_v7, 7 }
 0x22c   :  { %10478 = vst [vmem:[#allocation100_spill] sm:$0xff] %v7395_v9 }
 0x22d   :  { %2104 = vrot.lane.b32.xlu0 %v1302_v52, %s6323_s14  ;;  %v861_v52 = vmul.f32 %v7046_v46, %v7321_v41  ;;  %v1304_v60 = vpack.c.bf16 %v1277_v57, %v1276_v54 }
 0x22e   :  { %v7323_v23 = vpop.permute.xlu1 %1037 }
 0x22f   :  { %10468 = vst [vmem:[#allocation90_spill] sm:$0xff] %v7323_v23  ;;  %v860_v23 = vmul.f32 %v6793_v10, %v7256_v43  ;;  %v362_v10 = vcombine.high %v7171_v27, %v7171_v27  ;;  %v460_v27 = vrot.slane %v7343_v51, 7  ;;  %v888_v54 = vpack.c.bf16 %v862_v44, %v861_v52 }
 0x231   :  { %v887_v11 = vpack.c.bf16 %v860_v23, %v859_v61  ;;  %v7398_v58 = vrot.slane %v362_v10, %v7174_v37  ;;  %v6245_v23 = vld [vmem:[%s10186_s0 + $0x70] sm:$0xff]  ;;  %2106 = vrot.lane.b32.xlu0 %v1303_v31, %s6323_s14  ;;  %v7414_v50 = vsel %vm482_vm7, %v460_v27, %v10481_v59  ;;  %v863_v10 = vmul.f32 %v6818_v39, %v7368_v4  ;;  %v6246_v39 = vld [vmem:[%s10186_s0 + $0x78] sm:$0xff] }
 0x232   :  { %v7404_v46 = vmul.f32 %v6245_v23, %v7226_v20  ;;  %10482 = vst [vmem:[#allocation103_spill] sm:$0xff] %v7414_v50  ;;  %v864_v61 = vmul.f32 %v6823_v14, %v7343_v51  ;;  %v1278_v31 = vmul.f32 %v1182_v32, %v7395_v9  ;;  %v7435_v14 = vmul.f32 %v6246_v39, %v7226_v20 }
 0x233   :  { %v7370_v17 = vpop.permute.xlu1 %607  ;;  %2060 = vrot.lane.b32.xlu1 %v887_v11, %s6323_s14  ;;  %v865_v23 = vmul.f32 %v7055_v19, %v7334_v7  ;;  %v6249_v19 = vld [vmem:[%s10186_s0 + $0x88] sm:$0xff] }
 0x234   :  { %10476 = vst [vmem:[#allocation98_spill] sm:$0xff] %v7370_v17  ;;  %v459_v17 = vrot.slane %v7368_v4, 7  ;;  %10479 = vst [vmem:[#allocation101_spill] sm:$0xff] %v7404_v46  ;;  %v889_v44 = vpack.c.bf16 %v864_v61, %v863_v10  ;;  %v866_v20 = vmul.f32 %v6832_v18, %v7404_v46  ;;  %v7466_v18 = vmul.f32 %v6249_v19, %v7398_v58 }
 0x235   :  { %2108 = vrot.lane.b32.xlu0 %v1304_v60, %s6323_s14  ;;  %10484 = vst [vmem:[#allocation105_spill] sm:$0xff] %v7435_v14  ;;  %v1821_v61 = vmul.f32 %v7138_v15, %v7362_v26  ;;  %v867_v39 = vmul.f32 %v7062_v1, %v7435_v14  ;;  %v906_v15 = vrot.slane %v7250_v28, 1  ;;  %v10528_v28 = vmov 0  }
 0x236   :  { %v7391_v8 = vsel %vm482_vm7, %v458_v24, %v459_v17  ;;  %v7420_v24 = vpop.permute.xlu0 %1197  ;;  %v7427_v57 = vsel %vm482_vm7, %v459_v17, %v460_v27  ;;  %v1281_v27 = vmul.f32 %v1194_v63, %v7414_v50  ;;  %10488 = vst [vmem:[#allocation109_spill] sm:$0xff] %v7466_v18  ;;  %v6250_v63 = vld [vmem:[%s10186_s0 + $0x90] sm:$0xff] }
 0x237   :  { %10477 = vst [vmem:[#allocation99_spill] sm:$0xff] %v7391_v8  ;;  %v1279_v11 = vmul.f32 %v6798_v2, %v7391_v8  ;;  %10483 = vst [vmem:[#allocation104_spill] sm:$0xff] %v7427_v57  ;;  %2062 = vrot.lane.b32.xlu1 %v888_v54, %s6323_s14  ;;  %v6247_v2 = vld [vmem:[%s10186_s0 + $0x80] sm:$0xff]  ;;  %v1280_v17 = vmul.f32 %v6812_v13, %v7427_v57  ;;  %v7472_v10 = vmul.f32 %v6250_v63, %v7398_v58 }
 0x238   :  { %v7408_v12 = vpop.permute.xlu1 %1757  ;;  %v7441_v32 = vmul.f32 %v6247_v2, %v7398_v58  ;;  %v6248_v54 = vld [vmem:[%s10186_s0] sm:$0xff]  ;;  %v869_v63 = vmul.f32 %v6933_v5, %v7466_v18  ;;  %v465_v8 = vrot.slane %v7466_v18, 7 }
 0x239   :  { %10480 = vst [vmem:[#allocation102_spill] sm:$0xff] %v7408_v12  ;;  %v1305_v52 = vpack.c.bf16 %v1279_v11, %v1278_v31  ;;  %v7458_v13 = vmul.f32 %v6248_v54, %v7182_v22  ;;  %10489 = vst [vmem:[#allocation110_spill] sm:$0xff] %v7472_v10  ;;  %v1820_v22 = vmul.f32 %v7008_v40, %v7321_v41 }
 0x23a   :  { %10485 = vst [vmem:[#allocation106_spill] sm:$0xff] %v7441_v32  ;;  %v7452_v59 = vpop.permute.xlu0 %1213  ;;  %v1306_v31 = vpack.c.bf16 %v1281_v27, %v1280_v17  ;;  %v890_v11 = vpack.c.bf16 %v866_v20, %v865_v23  ;;  %v868_v2 = vmul.f32 %v6901_v38, %v7441_v32  ;;  %v6251_v17 = vld [vmem:[%s10186_s0 + $0x98] sm:$0xff]  ;;  %v6252_v38 = vld [vmem:[%s10186_s0 + $0xa0] sm:$0xff]  ;;  %v900_v23 = vrot.slane %v7188_v34, 1 }
 0x23b   :  { %10487 = vst [vmem:[#allocation108_spill] sm:$0xff] %v7458_v13  ;;  %2110 = vrot.lane.b32.xlu0 %v1305_v52, %s6323_s14  ;;  %2064 = vrot.lane.b32.xlu1 %v889_v44, %s6323_s14  ;;  %v905_v52 = vrot.slane %v7239_v6, 1  ;;  %v7493_v1 = vmul.f32 %v6251_v17, %v7398_v58  ;;  %v7499_v27 = vmul.f32 %v6252_v38, %v7398_v58  ;;  %v10218_v44 = vrot.slane %v7458_v13, 1 }
 0x23c   :  { %v7450_v60 = vpop.permute.xlu1 %1761  ;;  %v1848_v54 = vpack.c.bf16 %v1821_v61, %v1820_v22  ;;  %v891_v19 = vpack.c.bf16 %v868_v2, %v867_v39  ;;  %v907_v17 = vrot.slane %v7256_v43, 1  ;;  %v908_v22 = vrot.slane %v7321_v41, 1  ;;  %v6255_v41 = vld [vmem:[%s10186_s0 + $0xa8] sm:$0xff] }
 0x23d   :  { %10486 = vst [vmem:[#allocation107_spill] sm:$0xff] %v7450_v60  ;;  %10491 = vst [vmem:[#allocation112_spill] sm:$0xff] %v7493_v1  ;;  %v7513_v38 = vsel %vm931_vm8, %v905_v52, %v906_v15  ;;  %v7522_v5 = vsel %vm931_vm8, %v10218_v44, %v900_v23  ;;  %v1822_v61 = vmul.f32 %v7049_v42, %v7368_v4  ;;  %v903_v42 = vrot.slane %v7210_v30, 1 }
 0x23e   :  { %10492 = vst [vmem:[#allocation113_spill] sm:$0xff] %v7499_v27  ;;  %v7503_v20 = vpop.permute.xlu0 %1221  ;;  %10493 = vst [vmem:[#allocation114_spill] sm:$0xff] %v7513_v38  ;;  %v7529_v39 = vsel %vm931_vm8, %v906_v15, %v907_v17  ;;  %v1823_v2 = vmul.f32 %v7145_v47, %v7343_v51  ;;  %v872_v44 = vmul.f32 %v7074_v16, %v7499_v27  ;;  %v909_v15 = vrot.slane %v7362_v26, 1 }
 0x23f   :  { %2112 = vrot.lane.b32.xlu0 %v1306_v31, %s6323_s14  ;;  %2066 = vrot.lane.b32.xlu1 %v890_v11, %s6323_s14  ;;  %v870_v31 = vmul.f32 %v7068_v49, %v7472_v10  ;;  %v901_v11 = vrot.slane %v7196_v3, 1  ;;  %10494 = vst [vmem:[#allocation115_spill] sm:$0xff] %v7522_v5  ;;  %v902_v49 = vrot.slane %v7202_v48, 1  ;;  %10495 = vst [vmem:[#allocation116_spill] sm:$0xff] %v7529_v39  ;;  %v467_v26 = vrot.slane %v7493_v1, 7 }
 0x240   :  { %v7547_v47 = vsel %vm931_vm8, %v907_v17, %v908_v22  ;;  %v363_v16 = vcombine.high %v7214_v0, %v7214_v0  ;;  %v7564_v17 = vsel %vm931_vm8, %v908_v22, %v909_v15 }
 0x241   :  { %v7486_v40 = vpop.permute.xlu1 %1409  ;;  %v7541_v48 = vsel %vm931_vm8, %v900_v23, %v901_v11  ;;  %10498 = vst [vmem:[#allocation119_spill] sm:$0xff] %v7547_v47  ;;  %v10499_v23 = vld [vmem:[#allocation9_spill] sm:$0xff]  ;;  %10501 = vst [vmem:[#allocation120_spill] sm:$0xff] %v7564_v17 }
 0x242   :  { %10490 = vst [vmem:[#allocation111_spill] sm:$0xff] %v7486_v40  ;;  %10497 = vst [vmem:[#allocation118_spill] sm:$0xff] %v7541_v48  ;;  %v1849_v40 = vpack.c.bf16 %v1823_v2, %v1822_v61  ;;  %v7584_v22 = vrot.slane %v363_v16, %v7174_v37  ;;  %v10506_v61 = vld [vmem:[#allocation15_spill] sm:$0xff]  ;;  %v10514_v37 = vld [vmem:[#allocation21_spill] sm:$0xff] }
 0x243   :  { %2204 = vrot.lane.b32.xlu0 %v1848_v54, %s6323_s14  ;;  %2068 = vrot.lane.b32.xlu1 %v891_v19, %s6323_s14  ;;  %v892_v54 = vpack.c.bf16 %v870_v31, %v869_v63  ;;  %v871_v19 = vmul.f32 %v6963_v35, %v7493_v1  ;;  %v7549_v63 = vpop.permute.xlu0 %1229  ;;  %v10221_v35 = vrot.slane %v7368_v4, 1  ;;  %v1460_v31 = vmul.f32 %v10499_v23, %v7522_v5 }
 0x244   :  { %v7576_v23 = vsel %vm931_vm8, %v902_v49, %v903_v42 }
 0x245   :  { %v7572_v0 = vsel %vm931_vm8, %v909_v15, %v10221_v35  ;;  %10504 = vst [vmem:[#allocation121_spill] sm:$0xff] %v7576_v23  ;;  %v10507_v15 = vld [vmem:[#allocation51_spill] sm:$0xff] }
 0x246   :  { %v7537_v3 = vpop.permute.xlu1 %1529 }
 0x247   :  { %10496 = vst [vmem:[#allocation117_spill] sm:$0xff] %v7537_v3  ;;  %1073 = vperm.xlu0 %5889, %v6733_v56   ;;  %2070 = vrot.lane.b32.xlu1 %v892_v54, %s6323_s14  ;;  %v7560_v3 = vsel %vm931_vm8, %v901_v11, %v902_v49  ;;  %v893_v56 = vpack.c.bf16 %v872_v44, %v871_v19  ;;  %v10502_v54 = vld [vmem:[#allocation35_spill] sm:$0xff]  ;;  %v904_v11 = vrot.slane %v7233_v21, 1  ;;  %v7588_v19 = vpop.permute.xlu0 %1237 }
 0x248   :  { %10500 = vst [vmem:[#allocation9_spill] sm:$0xff] %v7560_v3  ;;  %v1461_v12 = vmul.f32 %v10502_v54, %v7541_v48  ;;  %10503 = vst [vmem:[#allocation35_spill] sm:$0xff] %v7572_v0  ;;  %v1462_v2 = vmul.f32 %v10506_v61, %v7560_v3  ;;  %v1824_v49 = vmul.f32 %v10507_v15, %v7334_v7  ;;  %v10508_v54 = vld [vmem:[#allocation64_spill] sm:$0xff]  ;;  %v7607_v61 = vld [vmem:[%s10184_s3 + $0xe8] sm:$0xff] }
 0x249   :  { %v1825_v35 = vmul.f32 %v10508_v54, %v7404_v46  ;;  %v7602_v16 = vsel %vm931_vm8, %v903_v42, %v904_v11  ;;  %v10513_v54 = vld [vmem:[#allocation20_spill] sm:$0xff] }
 0x24a   :  { %v1492_v60 = vpack.c.bf16 %v1461_v12, %v1460_v31  ;;  %10511 = vst [vmem:[#allocation51_spill] sm:$0xff] %v7602_v16  ;;  %v462_v12 = vrot.slane %v7404_v46, 7  ;;  %v463_v31 = vrot.slane %v7435_v14, 7 }
 0x24b   :  { %2206 = vrot.lane.b32.xlu0 %v1849_v40, %s6323_s14  ;;  %2072 = vrot.lane.b32.xlu1 %v893_v56, %s6323_s14  ;;  %v7581_v44 = vpop.permute.xlu1 %1045  ;;  %v10509_v40 = vld [vmem:[#allocation38_spill] sm:$0xff]  ;;  %v7625_v57 = vpop.permute.xlu0 %1245 }
 0x24c   :  { %10505 = vst [vmem:[#allocation122_spill] sm:$0xff] %v7581_v44  ;;  %v1463_v56 = vmul.f32 %v10509_v40, %v7576_v23  ;;  %v7598_v44 = vsel %vm931_vm8, %v904_v11, %v905_v52  ;;  %v6254_v52 = vld [vmem:[%s10186_s0 + $0xf8] sm:$0xff]  ;;  %v1850_v11 = vpack.c.bf16 %v1825_v35, %v1824_v49  ;;  %v1464_v40 = vmul.f32 %v10513_v54, %v7602_v16  ;;  %v10523_v35 = vld [vmem:[#allocation4_spill] sm:$0xff] }
 0x24d   :  { %10510 = vst [vmem:[#allocation15_spill] sm:$0xff] %v7598_v44  ;;  %v7617_v42 = vmul.f32 %v6254_v52, %v7584_v22  ;;  %v1465_v50 = vmul.f32 %v10514_v37, %v7598_v44  ;;  %v10517_v37 = vld [vmem:[#allocation2_spill] sm:$0xff]  ;;  %v464_v54 = vrot.slane %v7441_v32, 7 }
 0x24e   :  { %v1493_v15 = vpack.c.bf16 %v1463_v56, %v1462_v2  ;;  %v7634_v2 = vsel %vm482_vm7, %v462_v12, %v463_v31 }
 0x24f   :  { %1081 = vperm.xlu0 %5889, %v7607_v61   ;;  %2148 = vrot.lane.b32.xlu1 %v1492_v60, %s6323_s14  ;;  %10512 = vst [vmem:[#allocation64_spill] sm:$0xff] %v7617_v42  ;;  %10516 = vst [vmem:[#allocation20_spill] sm:$0xff] %v7634_v2  ;;  %v1494_v49 = vpack.c.bf16 %v1465_v50, %v1464_v40  ;;  %v851_v56 = vmul.f32 %v10517_v37, %v7617_v42  ;;  %v10520_v40 = vld [vmem:[#allocation8_spill] sm:$0xff]  ;;  %v10521_v37 = vld [vmem:[#allocation3_spill] sm:$0xff]  ;;  %v466_v50 = vrot.slane %v7472_v10, 7 }
 0x250   :  { %v7623_v60 = vpop.permute.xlu1 %617  ;;  %v852_v52 = vmul.f32 %v10521_v37, %v7458_v13  ;;  %v1283_v43 = vmul.f32 %v10523_v35, %v7634_v2  ;;  %v5981_v37 = vld [vmem:[%s10187_s4] sm:$0xff]   ;;  %v7679_v35 = vsel %vm482_vm7, %v464_v54, %v465_v8  ;;  %v448_v2 = vrot.slane %v7458_v13, 7 }
 0x251   :  { %10515 = vst [vmem:[#allocation38_spill] sm:$0xff] %v7623_v60  ;;  %10526 = vst [vmem:[#allocation4_spill] sm:$0xff] %v7679_v35  ;;  %v7708_v60 = vsel %vm482_vm7, %v465_v8, %v466_v50  ;;  %v7724_v8 = vld [vmem:[%s10184_s3 + $0x30] sm:$0xff] }
 0x252   :  { %10533 = vst [vmem:[#allocation124_spill] sm:$0xff] %v7708_v60 }
 0x253   :  { %2208 = vrot.lane.b32.xlu0 %v1850_v11, %s6323_s14  ;;  %2150 = vrot.lane.b32.xlu1 %v1493_v15, %s6323_s14  ;;  %v10518_v11 = vrot.slane %v7334_v7, 7 }
 0x255   :  { %v7644_v15 = vsel %vm482_vm7, %v10518_v11, %v462_v12  ;;  %v7655_v6 = vpop.permute.xlu1 %1765  ;;  %v5980_v12 = vld [vmem:[%s10187_s4 + $0x40] sm:$0xff]  }
 0x256   :  { %10519 = vst [vmem:[#allocation21_spill] sm:$0xff] %v7644_v15  ;;  %10522 = vst [vmem:[#allocation2_spill] sm:$0xff] %v7655_v6  ;;  %v1282_v11 = vmul.f32 %v7420_v24, %v7644_v15  ;;  %v7675_v24 = vmul.f32 %v6255_v41, %v7398_v58  ;;  %5430 = vmatprep.subr.bf16.mxu1 %v5980_v12  ;;  %v7693_v41 = vld [vmem:[%s10184_s3 + $0x20] sm:$0xff] }
 0x257   :  { %1089 = vperm.xlu0 %5889, %v10520_v40   ;;  %2152 = vrot.lane.b32.xlu1 %v1494_v49, %s6323_s14  ;;  %v7665_v40 = vpop.permute.xlu0 %1253  ;;  %v883_v49 = vpack.c.bf16 %v852_v52, %v851_v56  ;;  %v7683_v56 = vsel %vm482_vm7, %v463_v31, %v464_v54  ;;  %v5982_v52 = vld [vmem:[%s10187_s4 + $0x48] sm:$0xff]   ;;  %v10530_v12 = vld [vmem:[#allocation10_spill] sm:$0xff] }
 0x258   :  { %10524 = vst [vmem:[#allocation8_spill] sm:$0xff] %v7665_v40  ;;  %10525 = vst [vmem:[#allocation3_spill] sm:$0xff] %v7675_v24  ;;  %5431 = vmatpush3.bf16.msra.mxu1 %v5981_v37  ;;  %v1307_v30 = vpack.c.bf16 %v1283_v43, %v1282_v11  ;;  %v10529_v31 = vld [vmem:[#allocation11_spill] sm:$0xff]  ;;  %v1284_v21 = vmul.f32 %v10530_v12, %v7683_v56  ;;  %v468_v37 = vrot.slane %v7499_v27, 7  ;;  %v10535_v12 = vld [vmem:[#allocation16_spill] sm:$0xff] }
 0x259   :  { %10527 = vst [vmem:[#allocation123_spill] sm:$0xff] %v7683_v56  ;;  %v1285_v54 = vmul.f32 %v10529_v31, %v7679_v35  ;;  %v7700_v6 = vpop.permute.xlu1 %1769  ;;  %5432 = vmatprep.subr.bf16.mxu1 %v5982_v52  ;;  %v5983_v11 = vld [vmem:[%s10187_s4 + $0x8] sm:$0xff]   ;;  %v5984_v52 = vld [vmem:[%s10187_s4 + $0x50] sm:$0xff]   ;;  %v10536_v35 = vrot.slane %v7675_v24, 7 }
 0x25a   :  { %10531 = vst [vmem:[#allocation11_spill] sm:$0xff] %v7700_v6  ;;  %v7739_v27 = vsel %vm482_vm7, %v467_v26, %v468_v37  ;;  %v5999_v40 = vld [vmem:[%s10187_s4 + $0x88] sm:$0xff]  }
 0x25b   :  { %5927 = vset.pattern.permute.xlu0 %v10528_v28  ;;  %2052 = vrot.lane.b32.xlu1 %v883_v49, %s6323_s14  ;;  %v7704_v49 = vsel %vm482_vm7, %v466_v50, %v467_v26  ;;  %v7718_v31 = vpop.permute.xlu0 %1265  ;;  %v1286_v50 = vmul.f32 %v7452_v59, %v7708_v60  ;;  %v1308_v6 = vpack.c.bf16 %v1285_v54, %v1284_v21  ;;  %v5985_v59 = vld [vmem:[%s10187_s4 + $0x10] sm:$0xff]   ;;  %v5986_v21 = vld [vmem:[%s10187_s4 + $0x58] sm:$0xff]   ;;  %v7755_v26 = vld [vmem:[%s10184_s3 + $0x40] sm:$0xff] }
 0x25c   :  { %537 = vperm.xlu0 %5927, %v7693_v41   ;;  %10532 = vst [vmem:[#allocation10_spill] sm:$0xff] %v7704_v49  ;;  %10534 = vst [vmem:[#allocation125_spill] sm:$0xff] %v7718_v31  ;;  %5433 = vmatpush3.bf16.msra.mxu1 %v5983_v11  ;;  %v1287_v43 = vmul.f32 %v10535_v12, %v7704_v49  ;;  %v10569_v31 = vmov 5  }
 0x25d   :  { %5434 = vmatprep.subr.bf16.mxu1 %v5984_v52  ;;  %10538 = vst [vmem:[#allocation126_spill] sm:$0xff] %v7739_v27  ;;  %10540 = vst [vmem:[#allocation128_spill] sm:$0xff] %v7755_v26  ;;  %v10541_v52 = vld [vmem:[#allocation22_spill] sm:$0xff] }
 0x25e   :  { %v1309_v54 = vpack.c.bf16 %v1287_v43, %v1286_v50  ;;  %v10542_v43 = vrot.slane %v7188_v34, 7  ;;  %v7780_v50 = vld [vmem:[%s10184_s3 + $0x50] sm:$0xff] }
 0x25f   :  { %2114 = vrot.lane.b32.xlu1 %v1307_v30, %s6323_s14  ;;  %v7735_v30 = vsel %vm482_vm7, %v468_v37, %v10536_v35  ;;  %v7750_v35 = vpop.permute.xlu1 %1417  ;;  %v1288_v37 = vmul.f32 %v7503_v20, %v7739_v27  ;;  %v7762_v11 = vpop.permute.xlu0 %969  ;;  %v5989_v27 = vld [vmem:[%s10187_s4 + $0x20] sm:$0xff]  }
 0x260   :  { %547 = vperm.xlu0 %5927, %v7724_v8   ;;  %10537 = vst [vmem:[#allocation16_spill] sm:$0xff] %v7735_v30  ;;  %10539 = vst [vmem:[#allocation127_spill] sm:$0xff] %v7750_v35  ;;  %5435 = vmatpush3.bf16.msra.mxu1 %v5985_v59  ;;  %v1289_v12 = vmul.f32 %v10541_v52, %v7735_v30  ;;  %v5988_v35 = vld [vmem:[%s10187_s4 + $0x60] sm:$0xff]   ;;  %v7775_v20 = vsel %vm482_vm7, %v448_v2, %v10542_v43  ;;  %v10543_v59 = vrot.slane %v7617_v42, 7  ;;  %v10545_v52 = vld [vmem:[#allocation72_spill] sm:$0xff] }
 0x261   :  { %5436 = vmatprep.subr.bf16.mxu1 %v5986_v21  ;;  %v1269_v34 = vmul.f32 %v10545_v52, %v7775_v20  ;;  %v10546_v43 = vld [vmem:[#allocation69_spill] sm:$0xff]  ;;  %v5991_v52 = vld [vmem:[%s10187_s4 + $0x28] sm:$0xff]  }
 0x262   :  { %v7787_v21 = vsel %vm482_vm7, %v10543_v59, %v448_v2  ;;  %v5990_v2 = vld [vmem:[%s10187_s4 + $0x68] sm:$0xff]  }
 0x263   :  { %2116 = vrot.lane.b32.xlu1 %v1308_v6, %s6323_s14  ;;  %v5987_v6 = vld [vmem:[%s10187_s4 + $0x18] sm:$0xff]   ;;  %10544 = vst [vmem:[#allocation22_spill] sm:$0xff] %v7787_v21  ;;  %v1268_v30 = vmul.f32 %v10546_v43, %v7787_v21  ;;  %v7793_v49 = vpop.permute.xlu1 %1537  ;;  %v7801_v59 = vpop.permute.xlu0 %977  ;;  %v10550_v43 = vld [vmem:[#allocation26_spill] sm:$0xff] }
 0x264   :  { %557 = vperm.xlu0 %5927, %v7755_v26   ;;  %5437 = vmatpush3.bf16.msra.mxu1 %v5987_v6  ;;  %10547 = vst [vmem:[#allocation72_spill] sm:$0xff] %v7793_v49  ;;  %v1466_v49 = vmul.f32 %v10550_v43, %v7513_v38  ;;  %v6264_v43 = vld [vmem:[%s10186_s0 + $0xb0] sm:$0xff] }
 0x265   :  { %5438 = vmatprep.subr.bf16.mxu1 %v5988_v35  ;;  %v1300_v35 = vpack.c.bf16 %v1269_v34, %v1268_v30  ;;  %v7826_v34 = vld [vmem:[%s10184_s3 + $0x70] sm:$0xff] }
 0x267   :  { %2118 = vrot.lane.b32.xlu1 %v1309_v54, %s6323_s14  ;;  %v1310_v54 = vpack.c.bf16 %v1289_v12, %v1288_v37  ;;  %v7807_v37 = vld [vmem:[%s10184_s3 + $0x60] sm:$0xff]  ;;  %v10549_v12 = vld [vmem:[#allocation27_spill] sm:$0xff] }
 0x268   :  { %567 = vperm.xlu0 %5927, %v7780_v50   ;;  %10548 = vst [vmem:[#allocation69_spill] sm:$0xff] %v7807_v37  ;;  %5439 = vmatpush3.bf16.msra.mxu1 %v5989_v27  ;;  %v1467_v6 = vmul.f32 %v10549_v12, %v7529_v39  ;;  %v7821_v60 = vpop.permute.xlu1 %1053  ;;  %v7829_v27 = vpop.permute.xlu0 %1029  ;;  %v7841_v12 = vld [vmem:[%s10184_s3 + $0x88] sm:$0xff] }
 0x269   :  { %5440 = vmatprep.subr.bf16.mxu1 %v5990_v2  ;;  %10551 = vst [vmem:[#allocation27_spill] sm:$0xff] %v7821_v60  ;;  %10552 = vst [vmem:[#allocation26_spill] sm:$0xff] %v7829_v27  ;;  %v5993_v2 = vld [vmem:[%s10187_s4 + $0x30] sm:$0xff]   ;;  %v10560_v60 = vmov 7   ;;  %v7904_v27 = vld [vmem:[%s10184_s3 + $0xb8] sm:$0xff] }
 0x26a   :  { %v1495_v30 = vpack.c.bf16 %v1467_v6, %v1466_v49  ;;  %10553 = vst [vmem:[#allocation129_spill] sm:$0xff] %v7841_v12  ;;  %v5995_v6 = vld [vmem:[%s10187_s4 + $0x38] sm:$0xff]   ;;  %v5998_v39 = vld [vmem:[%s10187_s4 + $0xc8] sm:$0xff]  }
 0x26b   :  { %2120 = vrot.lane.b32.xlu1 %v1310_v54, %s6323_s14  ;;  %v5992_v54 = vld [vmem:[%s10187_s4 + $0x70] sm:$0xff]  }
 0x26c   :  { %577 = vperm.xlu0 %5927, %v7807_v37   ;;  %5441 = vmatpush3.bf16.msra.mxu1 %v5991_v52  ;;  %v7849_v52 = vpop.permute.xlu0 %1041 }
 0x26d   :  { %5442 = vmatprep.subr.bf16.mxu1 %v5992_v54  ;;  %v7844_v49 = vpop.permute.xlu1 %627  ;;  %10555 = vst [vmem:[#allocation131_spill] sm:$0xff] %v7849_v52  ;;  %v7854_v54 = vld [vmem:[%s10184_s3 + $0xc0] sm:$0xff] }
 0x26e   :  { %10554 = vst [vmem:[#allocation130_spill] sm:$0xff] %v7844_v49  ;;  %10556 = vst [vmem:[#allocation132_spill] sm:$0xff] %v7854_v54  ;;  %v7872_v49 = vld [vmem:[%s10184_s3 + $0x98] sm:$0xff] }
 0x26f   :  { %2100 = vrot.lane.b32.xlu1 %v1300_v35, %s6323_s14  ;;  %v5994_v35 = vld [vmem:[%s10187_s4 + $0x78] sm:$0xff]   ;;  %10559 = vst [vmem:[#allocation135_spill] sm:$0xff] %v7872_v49 }
 0x270   :  { %587 = vperm.xlu0 %5927, %v7826_v34   ;;  %5443 = vmatpush3.bf16.msra.mxu1 %v5993_v2  ;;  %v6265_v2 = vld [vmem:[%s10186_s0 + $0xb8] sm:$0xff] }
 0x271   :  { %5444 = vmatprep.subr.bf16.mxu1 %v5994_v35  ;;  %v7867_v35 = vmul.f32 %v6265_v2, %v7398_v58  ;;  %v7887_v2 = vpop.permute.xlu0 %1049 }
 0x272   :  { %v7876_v52 = vpop.permute.xlu1 %1773  ;;  %10562 = vst [vmem:[#allocation137_spill] sm:$0xff] %v7887_v2  ;;  %v7910_v2 = vld [vmem:[%s10184_s3 + $0xc8] sm:$0xff] }
 0x273   :  { %2154 = vrot.lane.b32.xlu1 %v1495_v30, %s6323_s14  ;;  %v7861_v30 = vmul.f32 %v6264_v43, %v7398_v58  ;;  %10558 = vst [vmem:[#allocation134_spill] sm:$0xff] %v7867_v35  ;;  %10561 = vst [vmem:[#allocation136_spill] sm:$0xff] %v7876_v52  ;;  %v10256_v56 = vrot.slane %v7867_v35, 7  ;;  %v7883_v58 = vld [vmem:[%s10184_s3 + $0xa8] sm:$0xff]  ;;  %v10564_v52 = vrot.slane %v7675_v24, 7 }
 0x274   :  { %602 = vperm.xlu0 %5927, %v7841_v12   ;;  %5445 = vmatpush3.bf16.msra.mxu1 %v5995_v6  ;;  %v5996_v12 = vld [vmem:[%s10187_s4 + $0xc0] sm:$0xff]  }
 0x275   :  { %10557 = vst [vmem:[#allocation133_spill] sm:$0xff] %v7861_v30  ;;  %v470_v43 = vrot.slane %v7861_v30, 7  ;;  %v7919_v15 = vpop.permute.xlu0 %1057  ;;  %5542 = vmatprep.subr.bf16.mxu0 %v5996_v12 }
 0x277   :  { %637 = vperm.xlu1 %5912, %v7854_v54   ;;  %v7893_v6 = vsel %vm482_vm7, %v470_v43, %v10256_v56  ;;  %v7899_v1 = vsel %vm482_vm7, %v10564_v52, %v470_v43  ;;  %v7913_v56 = vpop.permute.xlu1 %1777  ;;  %v10567_v43 = vld [vmem:[#allocation28_spill] sm:$0xff] }
 0x278   :  { %612 = vperm.xlu0 %5927, %v7872_v49   ;;  %10563 = vst [vmem:[#allocation138_spill] sm:$0xff] %v7893_v6  ;;  %10565 = vst [vmem:[#allocation139_spill] sm:$0xff] %v7899_v1  ;;  %v1290_v52 = vmul.f32 %v7549_v63, %v7899_v1  ;;  %v1291_v49 = vmul.f32 %v10567_v43, %v7893_v6  ;;  %v10572_v43 = vmov 6   ;;  %v10573_v6 = vld [vmem:[#allocation29_spill] sm:$0xff] }
 0x279   :  { %10566 = vst [vmem:[#allocation140_spill] sm:$0xff] %v7913_v56  ;;  %10568 = vst [vmem:[#allocation28_spill] sm:$0xff] %v7919_v15  ;;  %v7929_v56 = vld [vmem:[%s10184_s3 + $0xd8] sm:$0xff]  ;;  %v7932_v63 = vpop.permute.xlu0 %1065  ;;  %v873_v1 = vmul.f32 %v10573_v6, %v7675_v24 }
 0x27a   :  { %v1311_v9 = vpack.c.bf16 %v1291_v49, %v1290_v52  ;;  %10571 = vst [vmem:[#allocation142_spill] sm:$0xff] %v7932_v63  ;;  %v10574_v49 = vld [vmem:[#allocation48_spill] sm:$0xff]  ;;  %v7946_v15 = vld [vmem:[%s10184_s3 + $0x58] sm:$0xff] }
 0x27b   :  { %5913 = vset.pattern.permute.xlu1 %v10560_v60  ;;  %v7924_v45 = vpop.permute.xlu1 %1425  ;;  %v874_v52 = vmul.f32 %v10574_v49, %v7861_v30  ;;  %10576 = vst [vmem:[#allocation48_spill] sm:$0xff] %v7946_v15  ;;  %v7954_v6 = vld [vmem:[%s10184_s3 + $0xf8] sm:$0xff] }
 0x27c   :  { %622 = vperm.xlu0 %5927, %v7883_v58   ;;  %1781 = vperm.xlu1 %5913, %v7854_v54   ;;  %10570 = vst [vmem:[#allocation141_spill] sm:$0xff] %v7924_v45  ;;  %10578 = vst [vmem:[#allocation144_spill] sm:$0xff] %v7954_v6  ;;  %v10581_v30 = vld [vmem:[#allocation33_spill] sm:$0xff] }
 0x27d   :  { %v894_v63 = vpack.c.bf16 %v874_v52, %v873_v1  ;;  %v1468_v24 = vmul.f32 %v10581_v30, %v7547_v47  ;;  %v6274_v30 = vld [vmem:[%s10184_s3 + $0xd0] sm:$0xff] }
 0x280   :  { %632 = vperm.xlu0 %5927, %v7904_v27   ;;  %1785 = vperm.xlu1 %5913, %v7910_v2  }
 0x284   :  { %642 = vperm.xlu0 %5927, %v7910_v2   ;;  %5914 = vset.pattern.permute.xlu1 %v10569_v31 }
 0x285   :  { %1433 = vperm.xlu1 %5914, %v7910_v2  }
 0x288   :  { %652 = vperm.xlu0 %5927, %v7929_v56  }
 0x289   :  { %2122 = vrot.lane.b32.xlu1 %v1311_v9, %s6323_s14  ;;  %v7949_v9 = vpop.permute.xlu1 %1545 }
 0x28a   :  { %5915 = vset.pattern.permute.xlu1 %v10572_v43  ;;  %v7941_v45 = vpop.permute.xlu0 %2196  ;;  %10577 = vst [vmem:[#allocation143_spill] sm:$0xff] %v7949_v9 }
 0x28b   :  { %10575 = vst [vmem:[#allocation29_spill] sm:$0xff] %v7941_v45  ;;  %v10580_v45 = vmov 2  }
 0x28c   :  { %662 = vperm.xlu0 %5927, %v7607_v61  }
 0x28d   :  { %1553 = vperm.xlu1 %5915, %v7946_v15   ;;  %v10582_v15 = vld [vmem:[#allocation34_spill] sm:$0xff]  ;;  %v7965_v1 = vpop.permute.xlu1 %1061 }
 0x28e   :  { %v1469_v9 = vmul.f32 %v10582_v15, %v7564_v17  ;;  %10583 = vst [vmem:[#allocation33_spill] sm:$0xff] %v7965_v1  ;;  %v7984_v1 = vld [vmem:[%s10184_s3 + $0x90] sm:$0xff]  ;;  %v6278_v17 = vld [vmem:[%s10186_s0 + $0xc8] sm:$0xff] }
 0x28f   :  { %v7957_v49 = vpop.permute.xlu0 %2198  ;;  %v8012_v36 = vmul.f32 %v6278_v17, %v7584_v22 }
 0x290   :  { %672 = vperm.xlu0 %5927, %v7954_v6   ;;  %10579 = vst [vmem:[#allocation145_spill] sm:$0xff] %v7957_v49  ;;  %v7973_v49 = vld [vmem:[%s10184_s3 + $0x80] sm:$0xff]  ;;  %v10597_v6 = vld [vmem:[#allocation36_spill] sm:$0xff] }
 0x291   :  { %2074 = vrot.lane.b32.xlu1 %v894_v63, %s6323_s14  ;;  %10585 = vst [vmem:[#allocation146_spill] sm:$0xff] %v7973_v49  ;;  %v1496_v63 = vpack.c.bf16 %v1469_v9, %v1468_v24  ;;  %v7997_v24 = vld [vmem:[%s10184_s3 + $0xa0] sm:$0xff]  ;;  %10590 = vst [vmem:[#allocation151_spill] sm:$0xff] %v8012_v36  ;;  %v10291_v62 = vrot.slane %v8012_v36, 7 }
 0x292   :  { %5916 = vset.pattern.permute.xlu1 %v10580_v45  ;;  %10587 = vst [vmem:[#allocation148_spill] sm:$0xff] %v7997_v24 }
 0x293   :  { %v7968_v52 = vpop.permute.xlu0 %2200 }
 0x294   :  { %5929 = vset.pattern.permute.xlu0 %v10569_v31  ;;  %10584 = vst [vmem:[#allocation34_spill] sm:$0xff] %v7968_v52  ;;  %v7988_v52 = vpop.permute.xlu1 %2054 }
 0x295   :  { %1397 = vperm.xlu0 %5929, %v7973_v49   ;;  %1069 = vperm.xlu1 %5916, %v6274_v30  }
 0x297   :  { %v7979_v15 = vpop.permute.xlu0 %2202 }
 0x298   :  { %10586 = vst [vmem:[#allocation147_spill] sm:$0xff] %v7979_v15  ;;  %v8000_v9 = vpop.permute.xlu1 %2056 }
 0x299   :  { %1405 = vperm.xlu0 %5929, %v7984_v1   ;;  %2156 = vrot.lane.b32.xlu1 %v1496_v63, %s6323_s14  ;;  %10588 = vst [vmem:[#allocation149_spill] sm:$0xff] %v8000_v9  ;;  %v6277_v63 = vld [vmem:[%s10186_s0 + $0xc0] sm:$0xff]  ;;  %v6000_v9 = vld [vmem:[%s10187_s4 + $0xd0] sm:$0xff]  }
 0x29a   :  { %5917 = vset.pattern.permute.xlu1 %v10528_v28  ;;  %v8006_v15 = vmul.f32 %v6277_v63, %v7584_v22  ;;  %v8025_v63 = vld [vmem:[%s10184_s3 + $0xb0] sm:$0xff] }
 0x29b   :  { %v8014_v47 = vpop.permute.xlu0 %2102  ;;  %10591 = vst [vmem:[#allocation152_spill] sm:$0xff] %v8025_v63 }
 0x29c   :  { %10589 = vst [vmem:[#allocation150_spill] sm:$0xff] %v8006_v15  ;;  %v8029_v17 = vpop.permute.xlu1 %2058  ;;  %v472_v12 = vrot.slane %v8006_v15, 7 }
 0x29d   :  { %1413 = vperm.xlu0 %5929, %v7997_v24   ;;  %647 = vperm.xlu1 %5917, %v6274_v30   ;;  %v5997_v24 = vld [vmem:[%s10187_s4 + $0x80] sm:$0xff]   ;;  %10592 = vst [vmem:[#allocation153_spill] sm:$0xff] %v8029_v17 }
 0x29e   :  { %5543 = vmatpush3.bf16.msra.mxu0 %v5997_v24  ;;  %v8048_v24 = vsel %vm482_vm7, %v472_v12, %v10291_v62 }
 0x29f   :  { %5544 = vmatprep.subr.bf16.mxu0 %v5998_v39  ;;  %10594 = vst [vmem:[#allocation155_spill] sm:$0xff] %v8048_v24  ;;  %v10595_v39 = vrot.slane %v7867_v35, 7  ;;  %v1293_v38 = vmul.f32 %v10597_v6, %v8048_v24 }
 0x2a1   :  { %1421 = vperm.xlu0 %5929, %v8025_v63   ;;  %5918 = vset.pattern.permute.xlu1 %v10560_v60  ;;  %v8039_v63 = vpop.permute.xlu0 %2104  ;;  %v8054_v29 = vsel %vm482_vm7, %v10595_v39, %v472_v12 }
 0x2a2   :  { %1789 = vperm.xlu1 %5918, %v6274_v30   ;;  %10596 = vst [vmem:[#allocation156_spill] sm:$0xff] %v8054_v29  ;;  %5545 = vmatpush3.bf16.msra.mxu0 %v5999_v40  ;;  %v1292_v62 = vmul.f32 %v7588_v19, %v8054_v29  ;;  %v6003_v40 = vld [vmem:[%s10187_s4 + $0x98] sm:$0xff]   ;;  %v6004_v19 = vld [vmem:[%s10187_s4 + $0xe0] sm:$0xff]   ;;  %v6007_v29 = vld [vmem:[%s10187_s4 + $0xa8] sm:$0xff]  }
 0x2a3   :  { %5546 = vmatprep.subr.bf16.mxu0 %v6000_v9  ;;  %v6005_v9 = vld [vmem:[%s10187_s4 + $0xa0] sm:$0xff]  }
 0x2a4   :  { %v1312_v6 = vpack.c.bf16 %v1293_v38, %v1292_v62  ;;  %v6006_v62 = vld [vmem:[%s10187_s4 + $0xe8] sm:$0xff]  }
 0x2a5   :  { %1429 = vperm.xlu0 %5929, %v7854_v54   ;;  %v8042_v17 = vpop.permute.xlu1 %2060  ;;  %v6001_v54 = vld [vmem:[%s10187_s4 + $0x90] sm:$0xff]   ;;  %v8069_v39 = vpop.permute.xlu0 %2106 }
 0x2a6   :  { %10593 = vst [vmem:[#allocation154_spill] sm:$0xff] %v8042_v17  ;;  %1793 = vperm.xlu1 %5918, %v7929_v56   ;;  %v6002_v17 = vld [vmem:[%s10187_s4 + $0xd8] sm:$0xff]   ;;  %5547 = vmatpush3.bf16.msra.mxu0 %v6001_v54 }
 0x2a7   :  { %5548 = vmatprep.subr.bf16.mxu0 %v6002_v17  ;;  %v8100_v17 = vld [vmem:[%s10184_s3 + $0xf0] sm:$0xff] }
 0x2a9   :  { %1437 = vperm.xlu0 %5929, %v6274_v30   ;;  %v8067_v12 = vpop.permute.xlu1 %2062  ;;  %v8082_v30 = vld [vmem:[%s10184_s3 + $0xe0] sm:$0xff]  ;;  %v8094_v38 = vpop.permute.xlu0 %2108 }
 0x2aa   :  { %10598 = vst [vmem:[#allocation36_spill] sm:$0xff] %v8067_v12  ;;  %5919 = vset.pattern.permute.xlu1 %v10569_v31  ;;  %10599 = vst [vmem:[#allocation157_spill] sm:$0xff] %v8082_v30  ;;  %5549 = vmatpush3.bf16.msra.mxu0 %v6003_v40  ;;  %v10602_v40 = vld [vmem:[#allocation50_spill] sm:$0xff]  ;;  %v10605_v12 = vld [vmem:[#allocation37_spill] sm:$0xff] }
 0x2ab   :  { %1441 = vperm.xlu1 %5919, %v7929_v56   ;;  %5550 = vmatprep.subr.bf16.mxu0 %v6004_v19  ;;  %10601 = vst [vmem:[#allocation159_spill] sm:$0xff] %v8094_v38  ;;  %v876_v24 = vmul.f32 %v10602_v40, %v8006_v15  ;;  %v875_v38 = vmul.f32 %v10605_v12, %v7867_v35  ;;  %v6008_v40 = vld [vmem:[%s10187_s4 + $0xf0] sm:$0xff]   ;;  %v10607_v12 = vrot.slane %v7343_v51, 1 }
 0x2ad   :  { %1445 = vperm.xlu0 %5929, %v8082_v30   ;;  %v8085_v54 = vpop.permute.xlu1 %2064  ;;  %v8125_v15 = vpop.permute.xlu0 %2110 }
 0x2ae   :  { %10600 = vst [vmem:[#allocation158_spill] sm:$0xff] %v8085_v54  ;;  %5551 = vmatpush3.bf16.msra.mxu0 %v6005_v9  ;;  %v8114_v54 = vld [vmem:[%s10184_s3 + $0x68] sm:$0xff]  ;;  %v895_v9 = vpack.c.bf16 %v876_v24, %v875_v38  ;;  %v6009_v24 = vld [vmem:[%s10187_s4 + $0xb0] sm:$0xff]   ;;  %v6010_v38 = vld [vmem:[%s10187_s4 + $0xf8] sm:$0xff]  }
 0x2af   :  { %2124 = vrot.lane.b32.xlu1 %v1312_v6, %s6323_s14  ;;  %10604 = vst [vmem:[#allocation160_spill] sm:$0xff] %v8114_v54  ;;  %5552 = vmatprep.subr.bf16.mxu0 %v6006_v62  ;;  %v10608_v62 = vrot.slane %v7368_v4, 1  ;;  %v10610_v4 = vld [vmem:[#allocation42_spill] sm:$0xff] }
 0x2b0   :  { %5920 = vset.pattern.permute.xlu1 %v10572_v43  ;;  %v1470_v35 = vmul.f32 %v10610_v4, %v7572_v0 }
 0x2b1   :  { %1453 = vperm.xlu0 %5929, %v8100_v17   ;;  %v8105_v6 = vpop.permute.xlu1 %2066  ;;  %v8165_v4 = vpop.permute.xlu0 %2112 }
 0x2b2   :  { %10603 = vst [vmem:[#allocation50_spill] sm:$0xff] %v8105_v6  ;;  %v8130_v6 = vld [vmem:[%s10184_s3 + $0x8] sm:$0xff]  ;;  %5553 = vmatpush3.bf16.msra.mxu0 %v6007_v29 }
 0x2b3   :  { %1561 = vperm.xlu1 %5920, %v8114_v54   ;;  %v8139_v54 = vsel %vm931_vm8, %v10608_v62, %v10607_v12  ;;  %5554 = vmatprep.subr.bf16.mxu0 %v6008_v40  ;;  %v10611_v12 = vld [vmem:[#allocation43_spill] sm:$0xff]  ;;  %v6011_v40 = vld [vmem:[%s10187_s4 + $0xb8] sm:$0xff]  }
 0x2b4   :  { %10609 = vst [vmem:[#allocation161_spill] sm:$0xff] %v8139_v54  ;;  %v1471_v62 = vmul.f32 %v10611_v12, %v8139_v54 }
 0x2b5   :  { %5931 = vset.pattern.permute.xlu0 %v10572_v43  ;;  %v8123_v19 = vpop.permute.xlu1 %2068 }
 0x2b6   :  { %10606 = vst [vmem:[#allocation37_spill] sm:$0xff] %v8123_v19  ;;  %1513 = vperm.xlu0 %5931, %v8130_v6   ;;  %v8158_v19 = vld [vmem:[%s10184_s3 + $0x10] sm:$0xff]  ;;  %5555 = vmatpush3.bf16.msra.mxu0 %v6009_v24 }
 0x2b7   :  { %2076 = vrot.lane.b32.xlu1 %v895_v9, %s6323_s14  ;;  %10613 = vst [vmem:[#allocation43_spill] sm:$0xff] %v8158_v19  ;;  %5556 = vmatprep.subr.bf16.mxu0 %v6010_v38  ;;  %v1497_v9 = vpack.c.bf16 %v1471_v62, %v1470_v35  ;;  %v6285_v35 = vld [vmem:[%s10186_s0 + $0xd8] sm:$0xff]  ;;  %v6286_v62 = vld [vmem:[%s10186_s0 + $0xd0] sm:$0xff] }
 0x2b8   :  { %5921 = vset.pattern.permute.xlu1 %v10580_v45  ;;  %v8182_v38 = vmul.f32 %v6285_v35, %v7584_v22 }
 0x2b9   :  { %v8153_v29 = vpop.permute.xlu1 %2070 }
 0x2ba   :  { %10612 = vst [vmem:[#allocation42_spill] sm:$0xff] %v8153_v29  ;;  %1517 = vperm.xlu0 %5931, %v8158_v19   ;;  %5557 = vmatpush3.bf16.msra.mxu0 %v6011_v40  ;;  %v8174_v29 = vpop.permute.xlu0 %2204  ;;  %v8188_v40 = vmul.f32 %v6286_v62, %v7584_v22  ;;  %v10307_v35 = vrot.slane %v8182_v38, 7 }
 0x2bb   :  { %1077 = vperm.xlu1 %5921, %v8082_v30   ;;  %10616 = vst [vmem:[#allocation164_spill] sm:$0xff] %v8174_v29 }
 0x2bc   :  { %10617 = vst [vmem:[#allocation165_spill] sm:$0xff] %v8188_v40  ;;  %v474_v29 = vrot.slane %v8188_v40, 7 }
 0x2bd   :  { %v8167_v12 = vpop.permute.xlu1 %2072 }
 0x2be   :  { %10614 = vst [vmem:[#allocation162_spill] sm:$0xff] %v8167_v12  ;;  %1525 = vperm.xlu0 %5931, %v7693_v41  }
 0x2bf   :  { %2158 = vrot.lane.b32.xlu1 %v1497_v9, %s6323_s14 }
 0x2c0   :  { %5922 = vset.pattern.permute.xlu1 %v10528_v28 }
 0x2c1   :  { %v8172_v24 = vpop.permute.xlu1 %2148 }
 0x2c2   :  { %10615 = vst [vmem:[#allocation163_spill] sm:$0xff] %v8172_v24  ;;  %1533 = vperm.xlu0 %5931, %v7724_v8  }
 0x2c3   :  { %657 = vperm.xlu1 %5922, %v8082_v30  }
 0x2c5   :  { %v8190_v9 = vpop.permute.xlu1 %2150 }
 0x2c6   :  { %10618 = vst [vmem:[#allocation166_spill] sm:$0xff] %v8190_v9  ;;  %1541 = vperm.xlu0 %5931, %v7755_v26   ;;  %v8193_v8 = vpop.permute.xlu0 %1073  ;;  %v8208_v9 = vsel %vm482_vm7, %v474_v29, %v10307_v35  ;;  %v10626_v35 = vld [vmem:[#allocation44_spill] sm:$0xff] }
 0x2c7   :  { %10619 = vst [vmem:[#allocation167_spill] sm:$0xff] %v8193_v8  ;;  %5923 = vset.pattern.permute.xlu1 %v10560_v60  ;;  %10622 = vst [vmem:[#allocation170_spill] sm:$0xff] %v8208_v9  ;;  %v10623_v8 = vrot.slane %v8012_v36, 7 }
 0x2c8   :  { %1797 = vperm.xlu1 %5923, %v8082_v30  }
 0x2c9   :  { %v8199_v24 = vpop.permute.xlu1 %2152  ;;  %v8214_v12 = vsel %vm482_vm7, %v10623_v8, %v474_v29  ;;  %v6287_v8 = vld [vmem:[%s10186_s0 + $0xf0] sm:$0xff] }
 0x2ca   :  { %10620 = vst [vmem:[#allocation168_spill] sm:$0xff] %v8199_v24  ;;  %1549 = vperm.xlu0 %5931, %v7780_v50   ;;  %v8202_v62 = vpop.permute.xlu0 %2206  ;;  %10624 = vst [vmem:[#allocation171_spill] sm:$0xff] %v8214_v12  ;;  %v1295_v24 = vmul.f32 %v10626_v35, %v8208_v9  ;;  %v10630_v35 = vld [vmem:[#allocation61_spill] sm:$0xff] }
 0x2cb   :  { %10621 = vst [vmem:[#allocation169_spill] sm:$0xff] %v8202_v62  ;;  %v1294_v62 = vmul.f32 %v7625_v57, %v8214_v12  ;;  %v1826_v9 = vmul.f32 %v10630_v35, %v7435_v14  ;;  %v10631_v12 = vld [vmem:[#allocation67_spill] sm:$0xff] }
 0x2cc   :  { %1801 = vperm.xlu1 %5923, %v7607_v61   ;;  %v1827_v19 = vmul.f32 %v10631_v12, %v7441_v32  ;;  %v10635_v12 = vld [vmem:[#allocation52_spill] sm:$0xff] }
 0x2cd   :  { %v8217_v30 = vpop.permute.xlu1 %2052  ;;  %v1313_v57 = vpack.c.bf16 %v1295_v24, %v1294_v62  ;;  %v912_v24 = vrot.slane %v7334_v7, 1  ;;  %v10634_v62 = vld [vmem:[#allocation45_spill] sm:$0xff] }
 0x2ce   :  { %1557 = vperm.xlu0 %5931, %v7807_v37   ;;  %v8220_v50 = vpop.permute.xlu0 %1081  ;;  %v8234_v37 = vmul.f32 %v6287_v8, %v7584_v22  ;;  %v877_v35 = vmul.f32 %v10634_v62, %v8012_v36  ;;  %v10637_v8 = vrot.slane %v7617_v42, 1  ;;  %v8269_v7 = vld [vmem:[%s10184_s3 + $0x78] sm:$0xff] }
 0x2cf   :  { %10625 = vst [vmem:[#allocation172_spill] sm:$0xff] %v8220_v50  ;;  %v10647_v36 = vld [vmem:[#allocation5_spill] sm:$0xff] }
 0x2d0   :  { %5924 = vset.pattern.permute.xlu1 %v10569_v31  ;;  %10628 = vst [vmem:[#allocation173_spill] sm:$0xff] %v8234_v37 }
 0x2d1   :  { %1449 = vperm.xlu1 %5924, %v7607_v61   ;;  %v8228_v29 = vpop.permute.xlu1 %2114 }
 0x2d2   :  { %10627 = vst [vmem:[#allocation44_spill] sm:$0xff] %v8228_v29  ;;  %1565 = vperm.xlu0 %5931, %v7826_v34   ;;  %v8237_v50 = vpop.permute.xlu0 %2208  ;;  %v878_v29 = vmul.f32 %v10635_v12, %v8188_v40  ;;  %v10640_v12 = vrot.slane %v7617_v42, 7 }
 0x2d3   :  { %10629 = vst [vmem:[#allocation174_spill] sm:$0xff] %v8237_v50  ;;  %v1851_v50 = vpack.c.bf16 %v1827_v19, %v1826_v9  ;;  %v10641_v19 = vrot.slane %v8234_v37, 7 }
 0x2d4   :  { %v896_v40 = vpack.c.bf16 %v878_v29, %v877_v35  ;;  %v10651_v35 = vld [vmem:[#allocation7_spill] sm:$0xff] }
 0x2d5   :  { %2126 = vrot.lane.b32.xlu1 %v1313_v57, %s6323_s14  ;;  %v8245_v26 = vpop.permute.xlu1 %2116  ;;  %v8280_v9 = vsel %vm482_vm7, %v10641_v19, %v10640_v12  ;;  %v10648_v19 = vld [vmem:[#allocation80_spill] sm:$0xff] }
 0x2d6   :  { %10632 = vst [vmem:[#allocation61_spill] sm:$0xff] %v8245_v26  ;;  %1573 = vperm.xlu0 %5931, %v7973_v49   ;;  %v8249_v34 = vpop.permute.xlu0 %1089  ;;  %5925 = vset.pattern.permute.xlu1 %v10572_v43  ;;  %v10636_v26 = vrot.slane %v7458_v13, 1  ;;  %10642 = vst [vmem:[#allocation175_spill] sm:$0xff] %v8280_v9  ;;  %v10645_v13 = vrot.slane %v7404_v46, 1 }
 0x2d7   :  { %10633 = vst [vmem:[#allocation67_spill] sm:$0xff] %v8249_v34 }
 0x2d8   :  { %v8264_v34 = vsel %vm931_vm8, %v10637_v8, %v10636_v26  ;;  %v10643_v26 = vrot.slane %v7343_v51, 1  ;;  %v8293_v42 = vsel %vm931_vm8, %v912_v24, %v10645_v13  ;;  %v1829_v51 = vmul.f32 %v10648_v19, %v7472_v10 }
 0x2d9   :  { %10638 = vst [vmem:[#allocation45_spill] sm:$0xff] %v8264_v34  ;;  %1569 = vperm.xlu1 %5925, %v8269_v7   ;;  %v8272_v62 = vpop.permute.xlu1 %2118  ;;  %10646 = vst [vmem:[#allocation177_spill] sm:$0xff] %v8293_v42  ;;  %v1092_v12 = vmul.f32 %v10647_v36, %v8264_v34  ;;  %v676_v13 = vmul.f32 %v10651_v35, %v7787_v21  ;;  %v1095_v36 = vmul.f32 %v7801_v59, %v7560_v3 }
 0x2da   :  { %10639 = vst [vmem:[#allocation52_spill] sm:$0xff] %v8272_v62  ;;  %2210 = vrot.lane.b32.xlu0 %v1851_v50, %s6323_s14  ;;  %v8287_v8 = vsel %vm931_vm8, %v10643_v26, %v912_v24  ;;  %v1093_v50 = vmul.f32 %v7762_v11, %v7522_v5  ;;  %v10649_v26 = vld [vmem:[#allocation6_spill] sm:$0xff]  ;;  %v10652_v24 = vld [vmem:[#allocation12_spill] sm:$0xff]  ;;  %v10653_v11 = vld [vmem:[#allocation79_spill] sm:$0xff] }
 0x2db   :  { %10644 = vst [vmem:[#allocation176_spill] sm:$0xff] %v8287_v8  ;;  %v538_v57 = vpop.permute.xlu0 %537  ;;  %v675_v62 = vmul.f32 %v10649_v26, %v8280_v9  ;;  %v1094_v49 = vmul.f32 %v10652_v24, %v7541_v48  ;;  %v1828_v5 = vmul.f32 %v10653_v11, %v7466_v18  ;;  %v10655_v26 = vld [vmem:[#allocation54_spill] sm:$0xff] }
 0x2dc   :  { %v1473_v34 = vmul.f32 %v10655_v26, %v8293_v42  ;;  %v1124_v21 = vpack.c.bf16 %v1093_v50, %v1092_v12  ;;  %v679_v26 = vmul.f32 %v538_v57, %v7275_v53 }
 0x2dd   :  { %2078 = vrot.lane.b32.xlu1 %v896_v40, %s6323_s14  ;;  %v8304_v29 = vpop.permute.xlu1 %2120  ;;  %v10654_v40 = vld [vmem:[#allocation53_spill] sm:$0xff]  ;;  %v707_v59 = vpack.c.bf16 %v676_v13, %v675_v62  ;;  %v1125_v48 = vpack.c.bf16 %v1095_v36, %v1094_v49  ;;  %v10657_v49 = vld [vmem:[#allocation14_spill] sm:$0xff] }
 0x2de   :  { %10650 = vst [vmem:[#allocation5_spill] sm:$0xff] %v8304_v29  ;;  %1581 = vperm.xlu0 %5931, %v7984_v1   ;;  %5926 = vset.pattern.permute.xlu1 %v10580_v45  ;;  %v1472_v19 = vmul.f32 %v10654_v40, %v8287_v8  ;;  %v1852_v29 = vpack.c.bf16 %v1829_v51, %v1828_v5  ;;  %v10656_v5 = vld [vmem:[#allocation13_spill] sm:$0xff]  ;;  %v10659_v62 = vld [vmem:[#allocation18_spill] sm:$0xff] }
 0x2df   :  { %v548_v35 = vpop.permute.xlu0 %547  ;;  %v2230_v40 = vsel %vm74_vm1, %v707_v59, %v8217_v30  ;;  %v2298_v51 = vsel %vm74_vm1, %v1125_v48, %v8014_v47  ;;  %v677_v12 = vmul.f32 %v10656_v5, %v7775_v20  ;;  %v1097_v50 = vmul.f32 %v10659_v62, %v7602_v16  ;;  %v10664_v5 = vld [vmem:[#allocation114_spill] sm:$0xff] }
 0x2e0   :  { %v1498_v11 = vpack.c.bf16 %v1473_v34, %v1472_v19  ;;  %v10658_v34 = vld [vmem:[#allocation17_spill] sm:$0xff] }
 0x2e1   :  { %1085 = vperm.xlu1 %5926, %v8100_v17   ;;  %v2101_v24 = vpop.permute.xlu1 %2100  ;;  %v1096_v30 = vmul.f32 %v10658_v34, %v7576_v23 }
 0x2e2   :  { %2212 = vrot.lane.b32.xlu0 %v1852_v29, %s6323_s14  ;;  %v2294_v1 = vsel %vm74_vm1, %v1124_v21, %v2101_v24  ;;  %v678_v21 = vmul.f32 %v10657_v49, %v7281_v55  ;;  %v6289_v29 = vld [vmem:[%s10186_s0 + $0xe0] sm:$0xff] }
 0x2e3   :  { %v8323_v45 = vpop.permute.xlu0 %557  ;;  %2852 = vmatprep.mubr.bf16.mxu1 %v2294_v1  ;;  %v8347_v13 = vmul.f32 %v6289_v29, %v7584_v22  ;;  %v1126_v19 = vpack.c.bf16 %v1097_v50, %v1096_v30  ;;  %v10669_v30 = vld [vmem:[#allocation144_spill] sm:$0xff]  ;;  %v10670_v50 = vld [vmem:[#allocation87_spill] sm:$0xff] }
 0x2e4   :  { %2853 = vmatmul.mubr.bf16.vlgmr.msra.gmra.mrb[0].mxu1 %v2230_v40  ;;  %v708_v47 = vpack.c.bf16 %v678_v21, %v677_v12  ;;  %v10665_v12 = vld [vmem:[#allocation24_spill] sm:$0xff] }
 0x2e5   :  { %2160 = vrot.lane.b32.xlu1 %v1498_v11, %s6323_s14  ;;  %2860 = vmatprep.mubr.bf16.mxu1 %v2298_v51  ;;  %10660 = vst [vmem:[#allocation80_spill] sm:$0xff] %v8347_v13  ;;  %v2302_v1 = vsel %vm74_vm1, %v1126_v19, %v8039_v63  ;;  %v10662_v11 = vld [vmem:[#allocation19_spill] sm:$0xff]  ;;  %v1099_v63 = vmul.f32 %v10665_v12, %v10664_v5  ;;  %v8376_v34 = vpop.permute.xlu1 %2154  ;;  %v10676_v12 = vld [vmem:[#allocation116_spill] sm:$0xff] }
 0x2e6   :  { %1593 = vperm.xlu0 %5931, %v7883_v58   ;;  %5928 = vset.pattern.permute.xlu1 %v10528_v28  ;;  %v6290_v58 = vld [vmem:[%s10186_s0 + $0xe8] sm:$0xff]  ;;  %v2234_v59 = vsel %vm74_vm1, %v708_v47, %v7988_v52  ;;  %v680_v40 = vmul.f32 %v10662_v11, %v7296_v25  ;;  %v681_v47 = vmul.f32 %v548_v35, %v10670_v50  ;;  %v10673_v11 = vld [vmem:[#allocation8_spill] sm:$0xff] }
 0x2e7   :  { %v8340_v48 = vpop.permute.xlu0 %567  ;;  %v8353_v36 = vmul.f32 %v6290_v58, %v7584_v22  ;;  %v476_v22 = vrot.slane %v8347_v13, 7  ;;  %v10663_v52 = vld [vmem:[#allocation23_spill] sm:$0xff]  ;;  %v10671_v58 = vld [vmem:[#allocation149_spill] sm:$0xff]  ;;  %v10687_v28 = vld [vmem:[#allocation32_spill] sm:$0xff] }
 0x2e8   :  { %v1098_v57 = vmul.f32 %v10663_v52, %v7598_v44  ;;  %v709_v49 = vpack.c.bf16 %v680_v40, %v679_v26  ;;  %v10675_v52 = vld [vmem:[#allocation25_spill] sm:$0xff] }
 0x2e9   :  { %667 = vperm.xlu1 %5928, %v8100_v17   ;;  %10661 = vst [vmem:[#allocation6_spill] sm:$0xff] %v8353_v36  ;;  %v10331_v51 = vrot.slane %v8353_v36, 7 }
 0x2ea   :  { %1601 = vperm.xlu0 %5931, %v7904_v27   ;;  %v1127_v62 = vpack.c.bf16 %v1099_v63, %v1098_v57  ;;  %v2238_v19 = vsel %vm74_vm1, %v709_v49, %v10671_v58  ;;  %v10677_v63 = vld [vmem:[#allocation30_spill] sm:$0xff] }
 0x2eb   :  { %v8357_v24 = vpop.permute.xlu0 %577  ;;  %v1100_v49 = vmul.f32 %v10677_v63, %v10676_v12  ;;  %v6012_v58 = vld [vmem:[%s10187_s4 + $0x100] sm:$0xff]  }
 0x2ec   :  { %2861 = vmatmul.mubr.bf16.gmra.mrb[4].mxu1 %v2234_v59  ;;  %v2306_v26 = vsel %vm74_vm1, %v1127_v62, %v8069_v39  ;;  %v10672_v59 = vld [vmem:[#allocation56_spill] sm:$0xff]  ;;  %v10678_v39 = vld [vmem:[#allocation119_spill] sm:$0xff]  ;;  %5744 = vmatprep.subr.bf16.mxu1 %v6012_v58 }
 0x2ed   :  { %5930 = vset.pattern.permute.xlu1 %v10560_v60  ;;  %2868 = vmatprep.mubr.bf16.mxu1 %v2302_v1  ;;  %v8382_v60 = vsel %vm482_vm7, %v476_v22, %v10331_v51 }
 0x2ee   :  { %1609 = vperm.xlu0 %5931, %v7910_v2   ;;  %1805 = vperm.xlu1 %5930, %v8100_v17   ;;  %10666 = vst [vmem:[#allocation7_spill] sm:$0xff] %v8382_v60  ;;  %v10667_v2 = vrot.slane %v8182_v38, 7  ;;  %v1297_v1 = vmul.f32 %v10672_v59, %v8382_v60 }
 0x2ef   :  { %v8374_v21 = vpop.permute.xlu0 %587  ;;  %5745 = vmatpush3.bf16.msra.mxu1 %v6012_v58 }
 0x2f0   :  { %v8388_v17 = vsel %vm482_vm7, %v10667_v2, %v476_v22  ;;  %v10674_v22 = vld [vmem:[#allocation88_spill] sm:$0xff]  ;;  %v10679_v2 = vld [vmem:[#allocation31_spill] sm:$0xff] }
 0x2f1   :  { %10668 = vst [vmem:[#allocation12_spill] sm:$0xff] %v8388_v17  ;;  %v1296_v40 = vmul.f32 %v10673_v11, %v8388_v17  ;;  %v682_v57 = vmul.f32 %v10675_v52, %v10674_v22  ;;  %v1101_v62 = vmul.f32 %v10679_v2, %v10678_v39  ;;  %v10680_v52 = vld [vmem:[#allocation91_spill] sm:$0xff]  ;;  %v10746_v17 = vld [vmem:[#allocation146_spill] sm:$0xff] }
 0x2f2   :  { %1617 = vperm.xlu0 %5931, %v7929_v56   ;;  %1809 = vperm.xlu1 %5930, %v10669_v30   ;;  %v683_v63 = vmul.f32 %v8323_v45, %v10680_v52  ;;  %v10685_v45 = vld [vmem:[#allocation55_spill] sm:$0xff] }
 0x2f3   :  { %v8393_v29 = vpop.permute.xlu0 %602  ;;  %v1128_v11 = vpack.c.bf16 %v1101_v62, %v1100_v49  ;;  %v10684_v49 = vld [vmem:[#allocation57_spill] sm:$0xff]  ;;  %v880_v51 = vmul.f32 %v10685_v45, %v8347_v13 }
 0x2f4   :  { %2869 = vmatmul.mubr.bf16.gmra.mrb[8].mxu1 %v2238_v19  ;;  %v710_v19 = vpack.c.bf16 %v682_v57, %v681_v47  ;;  %v10682_v57 = vld [vmem:[#allocation153_spill] sm:$0xff]  ;;  %v879_v62 = vmul.f32 %v10684_v49, %v8182_v38  ;;  %v10693_v49 = vld [vmem:[#allocation39_spill] sm:$0xff] }
 0x2f5   :  { %2876 = vmatprep.mubr.bf16.mxu1 %v2306_v26  ;;  %v10686_v26 = vld [vmem:[#allocation94_spill] sm:$0xff] }
 0x2f6   :  { %1625 = vperm.xlu0 %5931, %v7607_v61   ;;  %v8406_v35 = vpop.permute.xlu1 %637  ;;  %5932 = vset.pattern.permute.xlu1 %v10569_v31  ;;  %v1314_v61 = vpack.c.bf16 %v1297_v1, %v1296_v40  ;;  %v914_v31 = vrot.slane %v7435_v14, 1  ;;  %v2242_v1 = vsel %vm74_vm1, %v710_v19, %v10682_v57  ;;  %v10683_v40 = vld [vmem:[#allocation159_spill] sm:$0xff]  ;;  %v684_v12 = vmul.f32 %v10687_v28, %v10686_v26  ;;  %v10694_v28 = vld [vmem:[#allocation40_spill] sm:$0xff] }
 0x2f7   :  { %v8416_v59 = vpop.permute.xlu0 %612  ;;  %1457 = vperm.xlu1 %5932, %v10669_v30   ;;  %v2310_v58 = vsel %vm74_vm1, %v1128_v11, %v10683_v40  ;;  %v10690_v57 = vrot.slane %v7441_v32, 1  ;;  %v10692_v40 = vld [vmem:[#allocation120_spill] sm:$0xff] }
 0x2f8   :  { %v1102_v45 = vmul.f32 %v10693_v49, %v10692_v40  ;;  %v711_v39 = vpack.c.bf16 %v684_v12, %v683_v63  ;;  %v10698_v49 = vld [vmem:[#allocation63_spill] sm:$0xff]  ;;  %v10719_v14 = vld [vmem:[#allocation128_spill] sm:$0xff] }
 0x2f9   :  { %v8450_v11 = vsel %vm931_vm8, %v914_v31, %v10690_v57  ;;  %v897_v57 = vpack.c.bf16 %v880_v51, %v879_v62  ;;  %v10699_v12 = vld [vmem:[#allocation95_spill] sm:$0xff]  ;;  %v10700_v51 = vld [vmem:[#allocation154_spill] sm:$0xff] }
 0x2fa   :  { %1633 = vperm.xlu0 %5931, %v10669_v30   ;;  %10691 = vst [vmem:[#allocation54_spill] sm:$0xff] %v8450_v11  ;;  %v1475_v40 = vmul.f32 %v10698_v49, %v8450_v11  ;;  %v685_v63 = vmul.f32 %v8340_v48, %v10699_v12  ;;  %v2246_v62 = vsel %vm74_vm1, %v711_v39, %v10700_v51  ;;  %v10704_v49 = vld [vmem:[#allocation41_spill] sm:$0xff] }
 0x2fb   :  { %v8424_v2 = vpop.permute.xlu0 %622  ;;  %v8426_v47 = vpop.permute.xlu1 %1781  ;;  %2128 = vrot.lane.b32.xlu1 %v1314_v61, %s6323_s14  ;;  %v10688_v61 = vrot.slane %v7404_v46, 1 }
 0x2fc   :  { %10681 = vst [vmem:[#allocation79_spill] sm:$0xff] %v8426_v47  ;;  %5933 = vset.pattern.permute.xlu1 %v10572_v43  ;;  %2877 = vmatmul.mubr.bf16.gmra.mrb[12].mxu1 %v2242_v1  ;;  %v10334_v1 = vmov 8   ;;  %v10768_v47 = vld [vmem:[#allocation102_spill] sm:$0xff] }
 0x2fd   :  { %2884 = vmatprep.mubr.bf16.mxu1 %v2310_v58  ;;  %v8444_v19 = vsel %vm931_vm8, %v10688_v61, %v914_v31  ;;  %v1103_v58 = vmul.f32 %v10694_v28, %v7572_v0  ;;  %v6291_v61 = vld [vmem:[%s10184_s3] sm:$0xff]  ;;  %v10696_v31 = vld [vmem:[#allocation129_spill] sm:$0xff] }
 0x2fe   :  { %10689 = vst [vmem:[#allocation53_spill] sm:$0xff] %v8444_v19  ;;  %5948 = vset.pattern.permute.xlu0 %v10334_v1  ;;  %v10697_v1 = vld [vmem:[#allocation62_spill] sm:$0xff] }
 0x2ff   :  { %1861 = vperm.xlu0 %5948, %v6291_v61   ;;  %v8460_v5 = vpop.permute.xlu0 %632  ;;  %v8462_v44 = vpop.permute.xlu1 %1785  ;;  %1577 = vperm.xlu1 %5933, %v10696_v31   ;;  %v1474_v16 = vmul.f32 %v10697_v1, %v8444_v19  ;;  %v1129_v28 = vpack.c.bf16 %v1103_v58, %v1102_v45  ;;  %v6292_v61 = vld [vmem:[%s10184_s3 + $0x18] sm:$0xff]  ;;  %v10702_v31 = vmov 8   ;;  %v10703_v58 = vld [vmem:[#allocation100_spill] sm:$0xff] }
 0x300   :  { %10695 = vst [vmem:[#allocation13_spill] sm:$0xff] %v8462_v44  ;;  %v686_v23 = vmul.f32 %v10704_v49, %v10703_v58 }
 0x301   :  { %v2314_v48 = vsel %vm74_vm1, %v1129_v28, %v8125_v15  ;;  %v1499_v45 = vpack.c.bf16 %v1475_v40, %v1474_v16  ;;  %v10707_v16 = vrot.slane %v8234_v37, 7  ;;  %v10708_v15 = vrot.slane %v8353_v36, 7 }
 0x302   :  { %v712_v39 = vpack.c.bf16 %v686_v23, %v685_v63 }
 0x303   :  { %1873 = vperm.xlu0 %5948, %v6292_v61   ;;  %v8474_v0 = vpop.permute.xlu0 %642  ;;  %2080 = vrot.lane.b32.xlu1 %v897_v57, %s6323_s14  ;;  %v10705_v61 = vld [vmem:[#allocation47_spill] sm:$0xff]  ;;  %v10706_v57 = vld [vmem:[#allocation46_spill] sm:$0xff]  ;;  %v8502_v40 = vsel %vm482_vm7, %v10708_v15, %v10707_v16  ;;  %v10715_v15 = vld [vmem:[#allocation104_spill] sm:$0xff] }
 0x304   :  { %v8479_v1 = vpop.permute.xlu1 %1433  ;;  %5934 = vset.pattern.permute.xlu1 %v10702_v31  ;;  %2885 = vmatmul.mubr.bf16.gmra.mrb[16].mxu1 %v2246_v62  ;;  %v1105_v3 = vmul.f32 %v10705_v61, %v8287_v8  ;;  %v1104_v60 = vmul.f32 %v10706_v57, %v8139_v54  ;;  %10709 = vst [vmem:[#allocation17_spill] sm:$0xff] %v8502_v40  ;;  %v10714_v57 = vld [vmem:[#allocation66_spill] sm:$0xff] }
 0x305   :  { %10701 = vst [vmem:[#allocation14_spill] sm:$0xff] %v8479_v1  ;;  %2892 = vmatprep.mubr.bf16.mxu1 %v2314_v48  ;;  %v10710_v48 = vld [vmem:[#allocation99_spill] sm:$0xff]  ;;  %v1298_v16 = vmul.f32 %v10714_v57, %v8502_v40 }
 0x306   :  { %v1130_v28 = vpack.c.bf16 %v1105_v3, %v1104_v60  ;;  %v687_v23 = vmul.f32 %v8357_v24, %v10710_v48  ;;  %v10713_v24 = vld [vmem:[#allocation125_spill] sm:$0xff] }
 0x307   :  { %1877 = vperm.xlu0 %5948, %v7693_v41   ;;  %v8491_v51 = vpop.permute.xlu0 %652  ;;  %2162 = vrot.lane.b32.xlu1 %v1499_v45, %s6323_s14  ;;  %v6293_v41 = vld [vmem:[%s10184_s3 + $0x38] sm:$0xff]  ;;  %v10712_v45 = vld [vmem:[#allocation36_spill] sm:$0xff]  ;;  %v1299_v60 = vmul.f32 %v10713_v24, %v8280_v9  ;;  %v916_v9 = vrot.slane %v7466_v18, 1  ;;  %v10734_v18 = vld [vmem:[#allocation135_spill] sm:$0xff] }
 0x308   :  { %v8494_v62 = vpop.permute.xlu1 %2122  ;;  %v2250_v49 = vsel %vm74_vm1, %v712_v39, %v10712_v45  ;;  %v2318_v3 = vsel %vm74_vm1, %v1130_v28, %v8165_v4  ;;  %v10718_v39 = vld [vmem:[#allocation59_spill] sm:$0xff] }
 0x309   :  { %v1107_v45 = vmul.f32 %v10718_v39, %v8444_v19  ;;  %v10721_v28 = vld [vmem:[#allocation43_spill] sm:$0xff]  ;;  %v1315_v57 = vpack.c.bf16 %v1299_v60, %v1298_v16  ;;  %v10725_v60 = vld [vmem:[#allocation44_spill] sm:$0xff] }
 0x30b   :  { %1889 = vperm.xlu0 %5948, %v6293_v41   ;;  %v8509_v63 = vpop.permute.xlu0 %662  ;;  %1865 = vperm.xlu1 %5934, %v8130_v6   ;;  %v10716_v41 = vld [vmem:[#allocation49_spill] sm:$0xff]  ;;  %v10717_v6 = vld [vmem:[#allocation58_spill] sm:$0xff] }
 0x30c   :  { %10711 = vst [vmem:[#allocation18_spill] sm:$0xff] %v8509_v63  ;;  %v8514_v61 = vpop.permute.xlu1 %1553  ;;  %2893 = vmatmul.mubr.bf16.gmra.mrb[20].mxu1 %v2250_v49  ;;  %v688_v54 = vmul.f32 %v10716_v41, %v10715_v15  ;;  %v1106_v8 = vmul.f32 %v10717_v6, %v8293_v42  ;;  %v10723_v6 = vld [vmem:[#allocation48_spill] sm:$0xff] }
 0x30d   :  { %2900 = vmatprep.mubr.bf16.mxu1 %v2318_v3  ;;  %v10722_v3 = vld [vmem:[#allocation103_spill] sm:$0xff] }
 0x30e   :  { %v713_v49 = vpack.c.bf16 %v688_v54, %v687_v23  ;;  %v1131_v41 = vpack.c.bf16 %v1107_v45, %v1106_v8  ;;  %v689_v40 = vmul.f32 %v8374_v21, %v10722_v3  ;;  %v10724_v54 = vld [vmem:[#allocation158_spill] sm:$0xff]  ;;  %v10726_v8 = vld [vmem:[#allocation21_spill] sm:$0xff]  ;;  %v10727_v45 = vld [vmem:[#allocation60_spill] sm:$0xff] }
 0x30f   :  { %1893 = vperm.xlu0 %5948, %v10719_v14   ;;  %v8529_v4 = vpop.permute.xlu0 %672  ;;  %1869 = vperm.xlu1 %5934, %v10721_v28   ;;  %v690_v28 = vmul.f32 %v10727_v45, %v10726_v8  ;;  %v10728_v21 = vld [vmem:[#allocation70_spill] sm:$0xff]  ;;  %v10733_v45 = vld [vmem:[#allocation69_spill] sm:$0xff] }
 0x310   :  { %10720 = vst [vmem:[#allocation19_spill] sm:$0xff] %v8529_v4  ;;  %v8532_v24 = vpop.permute.xlu1 %2074  ;;  %v2254_v14 = vsel %vm74_vm1, %v713_v49, %v10724_v54  ;;  %v2322_v16 = vsel %vm74_vm1, %v1131_v41, %v10725_v60  ;;  %v917_v54 = vrot.slane %v7472_v10, 1  ;;  %v10732_v41 = vld [vmem:[#allocation68_spill] sm:$0xff] }
 0x311   :  { %v881_v60 = vmul.f32 %v10732_v41, %v8353_v36  ;;  %v714_v42 = vpack.c.bf16 %v690_v28, %v689_v40  ;;  %v10749_v36 = vld [vmem:[#allocation3_spill] sm:$0xff] }
 0x312   :  { %v8576_v41 = vsel %vm931_vm8, %v916_v9, %v917_v54  ;;  %v920_v13 = vrot.slane %v10749_v36, 1 }
 0x313   :  { %1905 = vperm.xlu0 %5948, %v10723_v6   ;;  %2130 = vrot.lane.b32.xlu1 %v1315_v57, %s6323_s14  ;;  %v882_v6 = vmul.f32 %v10728_v21, %v8234_v37  ;;  %v10729_v57 = vrot.slane %v7441_v32, 1  ;;  %v6013_v21 = vld [vmem:[%s10187_s4 + $0x108] sm:$0xff]   ;;  %10737 = vst [vmem:[#allocation24_spill] sm:$0xff] %v8576_v41 }
 0x314   :  { %v1398_v23 = vpop.permute.xlu0 %1397  ;;  %v8541_v39 = vpop.permute.xlu1 %1069  ;;  %5935 = vset.pattern.permute.xlu1 %v10572_v43  ;;  %2901 = vmatmul.mubr.bf16.gmra.mrb[24].mxu1 %v2254_v14  ;;  %v10731_v14 = vld [vmem:[#allocation73_spill] sm:$0xff] }
 0x315   :  { %v8554_v49 = vsel %vm931_vm8, %v10729_v57, %v916_v9  ;;  %2908 = vmatprep.mubr.bf16.mxu1 %v2322_v16  ;;  %v10735_v57 = vld [vmem:[#allocation26_spill] sm:$0xff]  ;;  %v898_v46 = vpack.c.bf16 %v882_v6, %v881_v60  ;;  %5746 = vmatprep.subr.bf16.mxu1 %v6013_v21  ;;  %v10741_v9 = vld [vmem:[#allocation61_spill] sm:$0xff] }
 0x316   :  { %10730 = vst [vmem:[#allocation23_spill] sm:$0xff] %v8554_v49  ;;  %v1109_v19 = vmul.f32 %v10731_v14, %v8554_v49  ;;  %v1108_v16 = vmul.f32 %v10735_v57, %v8450_v11  ;;  %v10736_v14 = vld [vmem:[#allocation112_spill] sm:$0xff]  ;;  %v1476_v40 = vmul.f32 %v1398_v23, %v8554_v49  ;;  %5747 = vmatpush3.bf16.msra.mxu1 %v6013_v21  ;;  %v10739_v57 = vld [vmem:[#allocation123_spill] sm:$0xff]  ;;  %v10740_v6 = vld [vmem:[#allocation50_spill] sm:$0xff] }
 0x317   :  { %1909 = vperm.xlu0 %5948, %v10733_v45   ;;  %1585 = vperm.xlu1 %5935, %v10734_v18   ;;  %v918_v4 = vrot.slane %v10736_v14, 1  ;;  %v10738_v45 = vld [vmem:[#allocation85_spill] sm:$0xff]  ;;  %v692_v11 = vmul.f32 %v8393_v29, %v10739_v57  ;;  %v2258_v23 = vsel %vm74_vm1, %v714_v42, %v10740_v6  ;;  %v10745_v42 = vld [vmem:[#allocation90_spill] sm:$0xff]  ;;  %v1830_v44 = vmul.f32 %v10768_v47, %v10736_v14  ;;  %v10775_v14 = vld [vmem:[#allocation28_spill] sm:$0xff] }
 0x318   :  { %v8568_v32 = vpop.permute.xlu0 %1405  ;;  %v8570_v10 = vpop.permute.xlu1 %2156  ;;  %v1132_v28 = vpack.c.bf16 %v1109_v19, %v1108_v16  ;;  %v1477_v63 = vmul.f32 %v10738_v45, %v8576_v41  ;;  %v10744_v16 = vld [vmem:[#allocation75_spill] sm:$0xff]  ;;  %v1110_v6 = vmul.f32 %v10745_v42, %v8576_v41 }
 0x319   :  { %v8595_v29 = vsel %vm931_vm8, %v917_v54, %v918_v4  ;;  %v10748_v54 = vld [vmem:[#allocation113_spill] sm:$0xff] }
 0x31a   :  { %v2326_v21 = vsel %vm74_vm1, %v1132_v28, %v10741_v9  ;;  %10742 = vst [vmem:[#allocation144_spill] sm:$0xff] %v8595_v29  ;;  %v1500_v45 = vpack.c.bf16 %v1477_v63, %v1476_v40  ;;  %v919_v37 = vrot.slane %v10748_v54, 1  ;;  %v10751_v40 = vld [vmem:[#allocation124_spill] sm:$0xff] }
 0x31b   :  { %1921 = vperm.xlu0 %5948, %v8269_v7   ;;  %2082 = vrot.lane.b32.xlu1 %v898_v46, %s6323_s14  ;;  %v10743_v7 = vld [vmem:[#allocation20_spill] sm:$0xff] }
 0x31c   :  { %v8586_v60 = vpop.permute.xlu0 %1413  ;;  %v8588_v19 = vpop.permute.xlu1 %647  ;;  %5936 = vset.pattern.permute.xlu1 %v10702_v31  ;;  %2909 = vmatmul.mubr.bf16.gmra.mrb[28].mxu1 %v2258_v23  ;;  %v691_v46 = vmul.f32 %v10744_v16, %v10743_v7  ;;  %v10747_v23 = vld [vmem:[#allocation131_spill] sm:$0xff] }
 0x31d   :  { %2916 = vmatprep.mubr.bf16.mxu1 %v2326_v21  ;;  %v1111_v28 = vmul.f32 %v10747_v23, %v8595_v29  ;;  %v694_v21 = vmul.f32 %v8416_v59, %v10751_v40  ;;  %v10755_v23 = vld [vmem:[#allocation4_spill] sm:$0xff] }
 0x31e   :  { %v715_v49 = vpack.c.bf16 %v692_v11, %v691_v46  ;;  %v10752_v11 = vld [vmem:[#allocation37_spill] sm:$0xff]  ;;  %v6295_v40 = vld [vmem:[%s10184_s3 + $0x30] sm:$0xff] }
 0x31f   :  { %1925 = vperm.xlu0 %5948, %v10746_v17   ;;  %2164 = vrot.lane.b32.xlu1 %v1500_v45, %s6323_s14  ;;  %v1133_v63 = vpack.c.bf16 %v1111_v28, %v1110_v6  ;;  %v6294_v17 = vld [vmem:[%s10184_s3 + $0x28] sm:$0xff]  ;;  %v6014_v45 = vld [vmem:[%s10187_s4 + $0x110] sm:$0xff]   ;;  %v10756_v28 = vld [vmem:[#allocation98_spill] sm:$0xff] }
 0x320   :  { %v8605_v9 = vpop.permute.xlu0 %1421  ;;  %v2262_v46 = vsel %vm74_vm1, %v715_v49, %v10752_v11  ;;  %v10754_v6 = vld [vmem:[#allocation52_spill] sm:$0xff]  ;;  %v8634_v49 = vsel %vm931_vm8, %v918_v4, %v919_v37  ;;  %5748 = vmatprep.subr.bf16.mxu1 %v6014_v45  ;;  %v10761_v4 = vld [vmem:[#allocation137_spill] sm:$0xff] }
 0x321   :  { %v8609_v16 = vpop.permute.xlu1 %1789  ;;  %v2330_v59 = vsel %vm74_vm1, %v1133_v63, %v10754_v6  ;;  %10757 = vst [vmem:[#allocation56_spill] sm:$0xff] %v8634_v49  ;;  %5749 = vmatpush3.bf16.msra.mxu1 %v6014_v45  ;;  %v10760_v6 = vld [vmem:[#allocation148_spill] sm:$0xff]  ;;  %v10764_v45 = vld [vmem:[#allocation134_spill] sm:$0xff] }
 0x322   :  { %10750 = vst [vmem:[#allocation87_spill] sm:$0xff] %v8609_v16 }
 0x323   :  { %1937 = vperm.xlu0 %5948, %v10734_v18   ;;  %1881 = vperm.xlu1 %5936, %v6294_v17   ;;  %v8628_v18 = vsel %vm931_vm8, %v919_v37, %v920_v13  ;;  %v693_v17 = vmul.f32 %v10756_v28, %v10755_v23  ;;  %v6015_v37 = vld [vmem:[%s10187_s4 + $0x118] sm:$0xff]   ;;  %s6326_s4 = smov 32  }
 0x324   :  { %v8622_v42 = vpop.permute.xlu0 %1429  ;;  %2917 = vmatmul.mubr.bf16.gmra.mrb[32].mxu1 %v2262_v46  ;;  %v10759_v46 = vld [vmem:[#allocation122_spill] sm:$0xff]  ;;  %v10763_v23 = vld [vmem:[#allocation133_spill] sm:$0xff]  ;;  %5750 = vmatprep.subr.bf16.mxu1 %v6015_v37 }
 0x325   :  { %10753 = vst [vmem:[#allocation149_spill] sm:$0xff] %v8622_v42  ;;  %v8636_v11 = vpop.permute.xlu1 %1793  ;;  %2924 = vmatprep.mubr.bf16.mxu1 %v2330_v59  ;;  %v1112_v41 = vmul.f32 %v10759_v46, %v8634_v49  ;;  %v716_v63 = vpack.c.bf16 %v694_v21, %v693_v17  ;;  %v1113_v59 = vmul.f32 %v10761_v4, %v8628_v18  ;;  %v921_v46 = vrot.slane %v10763_v23, 1  ;;  %v10765_v17 = vld [vmem:[#allocation107_spill] sm:$0xff]  ;;  %v10767_v4 = vld [vmem:[#allocation42_spill] sm:$0xff] }
 0x326   :  { %10758 = vst [vmem:[#allocation8_spill] sm:$0xff] %v8636_v11  ;;  %v922_v21 = vrot.slane %v10764_v45, 1  ;;  %v1831_v16 = vmul.f32 %v10765_v17, %v10748_v54  ;;  %5751 = vmatpush3.bf16.msra.mxu1 %v6015_v37  ;;  %v10774_v54 = vld [vmem:[#allocation132_spill] sm:$0xff] }
 0x327   :  { %1941 = vperm.xlu0 %5948, %v10760_v6   ;;  %1885 = vperm.xlu1 %5936, %v6295_v40   ;;  %v1134_v11 = vpack.c.bf16 %v1113_v59, %v1112_v41  ;;  %v10766_v40 = vld [vmem:[#allocation126_spill] sm:$0xff]  ;;  %v10770_v41 = vld [vmem:[#allocation5_spill] sm:$0xff] }
 0x328   :  { %v8649_v28 = vpop.permute.xlu0 %1437  ;;  %v696_v42 = vmul.f32 %v8424_v2, %v10766_v40  ;;  %v8672_v2 = vsel %vm931_vm8, %v921_v46, %v922_v21  ;;  %v10772_v59 = vld [vmem:[#allocation38_spill] sm:$0xff]  ;;  %v1853_v47 = vpack.c.bf16 %v1831_v16, %v1830_v44 }
 0x329   :  { %10762 = vst [vmem:[#allocation88_spill] sm:$0xff] %v8649_v28  ;;  %v2266_v28 = vsel %vm74_vm1, %v716_v63, %v10767_v4  ;;  %v2334_v37 = vsel %vm74_vm1, %v1134_v11, %v10770_v41  ;;  %v8678_v63 = vsel %vm931_vm8, %v920_v13, %v921_v46  ;;  %v10773_v4 = vld [vmem:[#allocation27_spill] sm:$0xff]  ;;  %v1115_v40 = vmul.f32 %v10775_v14, %v8672_v2  ;;  %v10777_v44 = vld [vmem:[#allocation150_spill] sm:$0xff] }
 0x32a   :  { %v8655_v1 = vpop.permute.xlu1 %1441  ;;  %v923_v16 = vrot.slane %v10777_v44, 1  ;;  %v10778_v46 = vld [vmem:[#allocation151_spill] sm:$0xff]  ;;  %v10779_v14 = vld [vmem:[#allocation162_spill] sm:$0xff] }
 0x32b   :  { %1953 = vperm.xlu0 %5948, %v7904_v27   ;;  %5937 = vset.pattern.permute.xlu1 %v10572_v43  ;;  %v10771_v27 = vld [vmem:[#allocation10_spill] sm:$0xff] }
 0x32c   :  { %v8665_v7 = vpop.permute.xlu0 %1445  ;;  %1589 = vperm.xlu1 %5937, %v10760_v6   ;;  %2925 = vmatmul.mubr.bf16.gmra.mrb[36].mxu1 %v2266_v28  ;;  %v695_v17 = vmul.f32 %v10772_v59, %v10771_v27  ;;  %v1114_v6 = vmul.f32 %v10773_v4, %v8678_v63  ;;  %v1478_v28 = vmul.f32 %v8568_v32, %v8595_v29  ;;  %v10776_v59 = vld [vmem:[#allocation111_spill] sm:$0xff]  ;;  %v10368_v32 = vrot.slane %v10778_v46, 1  ;;  %v10780_v4 = vld [vmem:[#allocation65_spill] sm:$0xff] }
 0x32d   :  { %10769 = vst [vmem:[#allocation25_spill] sm:$0xff] %v8665_v7  ;;  %2932 = vmatprep.mubr.bf16.mxu1 %v2334_v37  ;;  %v1479_v27 = vmul.f32 %v10776_v59, %v8634_v49  ;;  %v1636_v59 = vmul.f32 %v10780_v4, %v7775_v20  ;;  %v10782_v20 = vld [vmem:[#allocation33_spill] sm:$0xff]  ;;  %v10787_v4 = vld [vmem:[#allocation108_spill] sm:$0xff] }
 0x32e   :  { %v2125_v11 = vpop.permute.xlu1 %2124  ;;  %v717_v41 = vpack.c.bf16 %v696_v42, %v695_v17  ;;  %v1135_v37 = vpack.c.bf16 %v1115_v40, %v1114_v6  ;;  %v8709_v40 = vsel %vm931_vm8, %v923_v16, %v10368_v32 }
 0x32f   :  { %1957 = vperm.xlu0 %5948, %v10774_v54   ;;  %v1501_v42 = vpack.c.bf16 %v1479_v27, %v1478_v28  ;;  %v10781_v27 = vld [vmem:[#allocation139_spill] sm:$0xff] }
 0x330   :  { %v8689_v13 = vpop.permute.xlu0 %1453  ;;  %2214 = vrot.lane.b32.xlu1 %v1853_v47, %s6323_s14  ;;  %v2270_v54 = vsel %vm74_vm1, %v717_v41, %v10779_v14  ;;  %v2338_v47 = vsel %vm74_vm1, %v1135_v37, %v8494_v62  ;;  %v698_v6 = vmul.f32 %v8460_v5, %v10781_v27  ;;  %v10783_v37 = vld [vmem:[#allocation157_spill] sm:$0xff]  ;;  %v10785_v14 = vld [vmem:[#allocation130_spill] sm:$0xff] }
 0x331   :  { %5938 = vset.pattern.permute.xlu1 %v10702_v31 }
 0x332   :  { %v8695_v17 = vpop.permute.xlu1 %1561 }
 0x333   :  { %1969 = vperm.xlu0 %5948, %v7929_v56   ;;  %v8713_v56 = vsel %vm931_vm8, %v922_v21, %v923_v16  ;;  %v6296_v21 = vld [vmem:[%s10184_s3 + $0x48] sm:$0xff]  ;;  %v10786_v16 = vld [vmem:[#allocation142_spill] sm:$0xff] }
 0x334   :  { %2166 = vrot.lane.b32.xlu1 %v1501_v42, %s6323_s14  ;;  %2933 = vmatmul.mubr.bf16.gmra.mrb[40].mxu1 %v2270_v54  ;;  %v1116_v41 = vmul.f32 %v10782_v20, %v8713_v56  ;;  %v10784_v42 = vld [vmem:[#allocation16_spill] sm:$0xff]  ;;  %v1117_v5 = vmul.f32 %v10786_v16, %v8709_v40  ;;  %v10789_v20 = vld [vmem:[#allocation86_spill] sm:$0xff] }
 0x335   :  { %v1514_v49 = vpop.permute.xlu0 %1513  ;;  %2940 = vmatprep.mubr.bf16.mxu1 %v2338_v47  ;;  %v697_v54 = vmul.f32 %v10785_v14, %v10784_v42  ;;  %v1639_v29 = vmul.f32 %v10789_v20, %v7296_v25  ;;  %v10790_v14 = vld [vmem:[#allocation29_spill] sm:$0xff]  ;;  %v6297_v25 = vld [vmem:[%s10184_s3 + $0x50] sm:$0xff] }
 0x336   :  { %v1637_v62 = vmul.f32 %v1514_v49, %v7281_v55  ;;  %v2077_v28 = vpop.permute.xlu1 %2076  ;;  %v10788_v55 = vld [vmem:[#allocation74_spill] sm:$0xff]  ;;  %v1136_v42 = vpack.c.bf16 %v1117_v5, %v1116_v41  ;;  %v10792_v41 = vld [vmem:[#allocation117_spill] sm:$0xff] }
 0x337   :  { %1973 = vperm.xlu0 %5948, %v10783_v37   ;;  %v1316_v49 = vpack.c.bf16 %v10788_v55, %v10787_v4  ;;  %v718_v37 = vpack.c.bf16 %v698_v6, %v697_v54  ;;  %v1641_v54 = vmul.f32 %v10792_v41, %v10674_v22  ;;  %v10795_v55 = vld [vmem:[#allocation156_spill] sm:$0xff]  ;;  %v10796_v22 = vld [vmem:[#allocation2_spill] sm:$0xff] }
 0x338   :  { %v1668_v47 = vpack.c.bf16 %v1637_v62, %v1636_v59  ;;  %1897 = vperm.xlu1 %5938, %v6296_v21   ;;  %v10791_v21 = vld [vmem:[#allocation163_spill] sm:$0xff]  ;;  %v2342_v6 = vsel %vm74_vm1, %v1136_v42, %v2125_v11  ;;  %v1832_v11 = vmul.f32 %v10796_v22, %v10749_v36 }
 0x339   :  { %v1518_v32 = vpop.permute.xlu0 %1517  ;;  %v2358_v7 = vsel %vm74_vm1, %v1316_v49, %v10791_v21  ;;  %v10800_v21 = vld [vmem:[#allocation152_spill] sm:$0xff] }
 0x33a   :  { %v1638_v27 = vmul.f32 %v1518_v32, %v7275_v53  ;;  %v2422_v59 = vsel %vm74_vm1, %v1668_v47, %v10790_v14  ;;  %v8735_v62 = vpop.permute.xlu1 %1077  ;;  %v2274_v53 = vsel %vm74_vm1, %v718_v37, %v8532_v24  ;;  %v10793_v47 = vld [vmem:[#allocation145_spill] sm:$0xff]  ;;  %v700_v24 = vmul.f32 %v8474_v0, %v10795_v55  ;;  %v10798_v37 = vld [vmem:[#allocation76_spill] sm:$0xff] }
 0x33b   :  { %1985 = vperm.xlu0 %5948, %v10669_v30   ;;  %3013 = vmatprep.mubr.bf16.mxu0 %v2422_v59  ;;  %v10799_v14 = vld [vmem:[#allocation77_spill] sm:$0xff] }
 0x33c   :  { %v1669_v16 = vpack.c.bf16 %v1639_v29, %v1638_v27  ;;  %3014 = vmatmul.mubr.bf16.vlgmr.msra.gmra.mrb[4].mxu0 %v2358_v7  ;;  %1901 = vperm.xlu1 %5938, %v6297_v25   ;;  %v10794_v27 = vld [vmem:[#allocation11_spill] sm:$0xff]  ;;  %v1317_v59 = vpack.c.bf16 %v10799_v14, %v10798_v37  ;;  %v10807_v37 = vld [vmem:[#allocation81_spill] sm:$0xff]  ;;  %v10808_v14 = vld [vmem:[#allocation78_spill] sm:$0xff] }
 0x33d   :  { %v1526_v32 = vpop.permute.xlu0 %1525  ;;  %2941 = vmatmul.mubr.bf16.gmra.mrb[44].mxu1 %v2274_v53  ;;  %v1833_v5 = vmul.f32 %v10794_v27, %v10763_v23  ;;  %v1480_v53 = vmul.f32 %v8586_v60, %v8628_v18  ;;  %v10804_v60 = vld [vmem:[#allocation72_spill] sm:$0xff] }
 0x33e   :  { %v1640_v30 = vmul.f32 %v1526_v32, %v10670_v50  ;;  %v2426_v29 = vsel %vm74_vm1, %v1669_v16, %v10793_v47  ;;  %v8751_v7 = vpop.permute.xlu1 %2158  ;;  %2948 = vmatprep.mubr.bf16.mxu1 %v2342_v6  ;;  %v10797_v50 = vld [vmem:[#allocation138_spill] sm:$0xff] }
 0x33f   :  { %3021 = vmatprep.mubr.bf16.mxu0 %v2426_v29  ;;  %v699_v42 = vmul.f32 %v8406_v35, %v10797_v50  ;;  %v1854_v25 = vpack.c.bf16 %v1833_v5, %v1832_v11  ;;  %v10801_v32 = vld [vmem:[#allocation166_spill] sm:$0xff]  ;;  %v1643_v5 = vmul.f32 %v10804_v60, %v10686_v26  ;;  %v10805_v11 = vld [vmem:[#allocation165_spill] sm:$0xff]  ;;  %v926_v26 = vrot.slane %v8182_v38, 1 }
 0x340   :  { %v1670_v49 = vpack.c.bf16 %v1641_v54, %v1640_v30  ;;  %5939 = vset.pattern.permute.xlu1 %v10572_v43  ;;  %v2362_v6 = vsel %vm74_vm1, %v1317_v59, %v10801_v32  ;;  %v10802_v35 = vld [vmem:[#allocation34_spill] sm:$0xff]  ;;  %v10803_v30 = vld [vmem:[#allocation127_spill] sm:$0xff]  ;;  %v10809_v59 = vpack.c.bf16 %v10807_v37, %v10808_v14  ;;  %v10819_v14 = vld [vmem:[#allocation140_spill] sm:$0xff] }
 0x341   :  { %v1534_v20 = vpop.permute.xlu0 %1533  ;;  %1597 = vperm.xlu1 %5939, %v10800_v21   ;;  %v719_v0 = vpack.c.bf16 %v700_v24, %v699_v42  ;;  %v1481_v47 = vmul.f32 %v10803_v30, %v8678_v63  ;;  %v925_v42 = vrot.slane %v10805_v11, 1 }
 0x342   :  { %v8765_v16 = vpop.permute.xlu1 %657  ;;  %v1642_v41 = vmul.f32 %v1534_v20, %v10680_v52  ;;  %v2430_v54 = vsel %vm74_vm1, %v1670_v49, %v10802_v35  ;;  %v10806_v20 = vld [vmem:[#allocation168_spill] sm:$0xff] }
 0x343   :  { %v2278_v27 = vsel %vm74_vm1, %v719_v0, %v2077_v28  ;;  %v1502_v52 = vpack.c.bf16 %v1481_v47, %v1480_v53  ;;  %v2366_v28 = vsel %vm74_vm1, %v10809_v59, %v10806_v20  ;;  %v10810_v0 = vld [vmem:[#allocation147_spill] sm:$0xff]  ;;  %v8811_v47 = vsel %vm931_vm8, %v925_v42, %v926_v26  ;;  %v10817_v20 = vld [vmem:[#allocation82_spill] sm:$0xff] }
 0x344   :  { %3022 = vmatmul.mubr.bf16.gmra.mrb[8].mxu0 %v2362_v6  ;;  %v1671_v22 = vpack.c.bf16 %v1643_v5, %v1642_v41  ;;  %v10811_v6 = vld [vmem:[#allocation160_spill] sm:$0xff]  ;;  %v10812_v41 = vld [vmem:[#allocation143_spill] sm:$0xff]  ;;  %v1835_v59 = vmul.f32 %v10819_v14, %v10777_v44 }
 0x345   :  { %3029 = vmatprep.mubr.bf16.mxu0 %v2430_v54  ;;  %v1542_v29 = vpop.permute.xlu0 %1541  ;;  %2216 = vrot.lane.b32.xlu1 %v1854_v25, %s6323_s14  ;;  %v1645_v35 = vmul.f32 %v10812_v41, %v10703_v58  ;;  %v10813_v54 = vrot.slane %v10778_v46, 1  ;;  %v10815_v58 = vld [vmem:[#allocation167_spill] sm:$0xff]  ;;  %v10821_v41 = vld [vmem:[#allocation136_spill] sm:$0xff] }
 0x346   :  { %5940 = vset.pattern.permute.xlu1 %v10702_v31  ;;  %2949 = vmatmul.mubr.bf16.gmra.mrb[48].mxu1 %v2278_v27  ;;  %v1644_v25 = vmul.f32 %v1542_v29, %v10699_v12  ;;  %v2434_v53 = vsel %vm74_vm1, %v1671_v22, %v10810_v0  ;;  %v1119_v60 = vmul.f32 %v10815_v58, %v8811_v47 }
 0x347   :  { %v8781_v24 = vpop.permute.xlu1 %1797  ;;  %v8803_v30 = vsel %vm931_vm8, %v10813_v54, %v925_v42  ;;  %v1482_v58 = vmul.f32 %v8605_v9, %v8672_v2 }
 0x348   :  { %10814 = vst [vmem:[#allocation30_spill] sm:$0xff] %v8803_v30  ;;  %v1118_v12 = vmul.f32 %v8541_v39, %v8803_v30  ;;  %v1672_v29 = vpack.c.bf16 %v1645_v35, %v1644_v25  ;;  %v10816_v39 = vld [vmem:[#allocation83_spill] sm:$0xff]  ;;  %v10820_v25 = vld [vmem:[#allocation164_spill] sm:$0xff]  ;;  %v1834_v35 = vmul.f32 %v10821_v41, %v10764_v45 }
 0x349   :  { %v1550_v49 = vpop.permute.xlu0 %1549  ;;  %2168 = vrot.lane.b32.xlu1 %v1502_v52, %s6323_s14  ;;  %v6298_v52 = vld [vmem:[%s10184_s3 + $0x70] sm:$0xff]  ;;  %v10818_v37 = vpack.c.bf16 %v10816_v39, %v10817_v20 }
 0x34a   :  { %v1137_v22 = vpack.c.bf16 %v1119_v60, %v1118_v12  ;;  %v2438_v0 = vsel %vm74_vm1, %v1672_v29, %v10820_v25  ;;  %v1855_v29 = vpack.c.bf16 %v1835_v59, %v1834_v35 }
 0x34b   :  { %v8790_v21 = vpop.permute.xlu1 %1801  ;;  %v2370_v42 = vsel %vm74_vm1, %v10818_v37, %v8376_v34  ;;  %v1647_v34 = vmul.f32 %v8514_v61, %v10715_v15  ;;  %v10824_v15 = vld [vmem:[#allocation141_spill] sm:$0xff] }
 0x34c   :  { %3030 = vmatmul.mubr.bf16.gmra.mrb[12].mxu0 %v2366_v28  ;;  %v1646_v28 = vmul.f32 %v1550_v49, %v10710_v48  ;;  %v6299_v48 = vld [vmem:[%s10184_s3 + $0xc0] sm:$0xff]  ;;  %v10822_v49 = vld [vmem:[#allocation155_spill] sm:$0xff]  ;;  %v1483_v39 = vmul.f32 %v10824_v15, %v8713_v56  ;;  %v10825_v37 = vld [vmem:[#allocation89_spill] sm:$0xff] }
 0x34d   :  { %3037 = vmatprep.mubr.bf16.mxu0 %v2434_v53  ;;  %v1558_v32 = vpop.permute.xlu0 %1557  ;;  %1913 = vperm.xlu1 %5940, %v10811_v6   ;;  %v701_v12 = vmul.f32 %v8588_v19, %v10822_v49  ;;  %v6301_v15 = vld [vmem:[%s10184_s3 + $0x90] sm:$0xff] }
 0x34e   :  { %v1673_v60 = vpack.c.bf16 %v1647_v34, %v1646_v28  ;;  %v1503_v9 = vpack.c.bf16 %v1483_v39, %v1482_v58  ;;  %v1648_v59 = vmul.f32 %v1558_v32, %v10722_v3  ;;  %v6300_v3 = vld [vmem:[%s10184_s3 + $0x88] sm:$0xff]  ;;  %v10829_v32 = vld [vmem:[#allocation97_spill] sm:$0xff]  ;;  %v10830_v34 = vld [vmem:[#allocation96_spill] sm:$0xff] }
 0x34f   :  { %v10834_v39 = vld [vmem:[#allocation93_spill] sm:$0xff] }
 0x350   :  { %v8813_v27 = vpop.permute.xlu1 %1449 }
 0x351   :  { %v1566_v5 = vpop.permute.xlu0 %1565  ;;  %1917 = vperm.xlu1 %5940, %v6298_v52  }
 0x354   :  { %3038 = vmatmul.mubr.bf16.gmra.mrb[16].mxu0 %v2370_v42  ;;  %v2127_v53 = vpop.permute.xlu1 %2126  ;;  %v10826_v42 = vld [vmem:[#allocation84_spill] sm:$0xff] }
 0x355   :  { %3045 = vmatprep.mubr.bf16.mxu0 %v2438_v0  ;;  %5941 = vset.pattern.permute.xlu1 %v10572_v43  ;;  %v2346_v6 = vsel %vm74_vm1, %v1137_v22, %v2127_v53  ;;  %v8836_v54 = vpop.permute.xlu0 %1573  ;;  %v10823_v22 = vld [vmem:[#allocation171_spill] sm:$0xff]  ;;  %v10827_v14 = vpack.c.bf16 %v10825_v37, %v10826_v42 }
 0x356   :  { %1605 = vperm.xlu1 %5941, %v6299_v48   ;;  %2956 = vmatprep.mubr.bf16.mxu1 %v2346_v6  ;;  %v702_v61 = vmul.f32 %v8491_v51, %v10823_v22  ;;  %v10828_v51 = vld [vmem:[#allocation169_spill] sm:$0xff]  ;;  %v1649_v6 = vmul.f32 %v8695_v17, %v10726_v8  ;;  %v10831_v48 = vpack.c.bf16 %v10829_v32, %v10830_v34  ;;  %v10832_v17 = vld [vmem:[#allocation174_spill] sm:$0xff]  ;;  %v10840_v34 = vld [vmem:[#allocation80_spill] sm:$0xff] }
 0x357   :  { %v2374_v19 = vsel %vm74_vm1, %v10827_v14, %v8570_v10  ;;  %v2442_v25 = vsel %vm74_vm1, %v1673_v60, %v10828_v51  ;;  %v10833_v60 = vld [vmem:[#allocation20_spill] sm:$0xff] }
 0x358   :  { %v1570_v52 = vpop.permute.xlu1 %1569  ;;  %v720_v20 = vpack.c.bf16 %v702_v61, %v701_v12  ;;  %v1674_v10 = vpack.c.bf16 %v1649_v6, %v1648_v59  ;;  %v2378_v12 = vsel %vm74_vm1, %v10831_v48, %v8751_v7  ;;  %v1650_v61 = vmul.f32 %v1566_v5, %v10833_v60  ;;  %v10837_v5 = vld [vmem:[#allocation79_spill] sm:$0xff]  ;;  %v8897_v59 = vld [vmem:[%s10184_s3 + $0xd0] sm:$0xff] }
 0x359   :  { %v2211_v28 = vpop.permute.xlu0 %2210  ;;  %v1651_v8 = vmul.f32 %v1570_v52, %v10739_v57  ;;  %v10836_v52 = vld [vmem:[#allocation13_spill] sm:$0xff]  ;;  %v927_v48 = vrot.slane %v10840_v34, 1 }
 0x35a   :  { %2218 = vrot.lane.b32.xlu1 %v1855_v29, %s6323_s14  ;;  %v2446_v29 = vsel %vm74_vm1, %v1674_v10, %v10832_v17  ;;  %v1837_v14 = vmul.f32 %v10836_v52, %v10805_v11 }
 0x35b   :  { %5942 = vset.pattern.permute.xlu1 %v10702_v31  ;;  %v1675_v42 = vpack.c.bf16 %v1651_v8, %v1650_v61  ;;  %v10841_v8 = vld [vmem:[#allocation6_spill] sm:$0xff]  ;;  %v8921_v60 = vsel %vm931_vm8, %v926_v26, %v927_v48 }
 0x35c   :  { %3046 = vmatmul.mubr.bf16.gmra.mrb[20].mxu0 %v2374_v19  ;;  %v2079_v0 = vpop.permute.xlu1 %2078  ;;  %v928_v17 = vrot.slane %v10841_v8, 1 }
 0x35d   :  { %3053 = vmatprep.mubr.bf16.mxu0 %v2442_v25  ;;  %v2282_v53 = vsel %vm74_vm1, %v720_v20, %v2079_v0  ;;  %v8865_v35 = vpop.permute.xlu0 %1581  ;;  %v10835_v20 = vld [vmem:[#allocation92_spill] sm:$0xff]  ;;  %v2450_v51 = vsel %vm74_vm1, %v1675_v42, %v2211_v28  ;;  %v10838_v0 = vld [vmem:[#allocation149_spill] sm:$0xff] }
 0x35e   :  { %2170 = vrot.lane.b32.xlu1 %v1503_v9, %s6323_s14  ;;  %2957 = vmatmul.mubr.bf16.gmra.mrb[52].mxu1 %v2282_v53  ;;  %v1322_v37 = vpack.c.bf16 %v10835_v20, %v10834_v39  ;;  %v1836_v9 = vmul.f32 %v10837_v5, %v10778_v46  ;;  %v1484_v53 = vmul.f32 %v10838_v0, %v8709_v40  ;;  %v10843_v20 = vld [vmem:[#allocation64_spill] sm:$0xff]  ;;  %v10846_v5 = vld [vmem:[#allocation45_spill] sm:$0xff] }
 0x35f   :  { %v8929_v39 = vsel %vm931_vm8, %v927_v48, %v928_v17 }
 0x360   :  { %v8863_v41 = vpop.permute.xlu1 %1085  ;;  %v1856_v25 = vpack.c.bf16 %v1837_v14, %v1836_v9  ;;  %v10845_v14 = vld [vmem:[#allocation172_spill] sm:$0xff] }
 0x361   :  { %v8884_v7 = vpop.permute.xlu0 %2212  ;;  %v1121_v26 = vmul.f32 %v10845_v14, %v8929_v39  ;;  %v10850_v14 = vld [vmem:[#allocation18_spill] sm:$0xff] }
 0x362   :  { %1929 = vperm.xlu1 %5942, %v6300_v3   ;;  %v10839_v3 = vld [vmem:[#allocation14_spill] sm:$0xff] }
 0x363   :  { %v1485_v32 = vmul.f32 %v10839_v3, %v8803_v30  ;;  %v6304_v3 = vld [vmem:[%s10184_s3 + $0xb0] sm:$0xff] }
 0x364   :  { %3054 = vmatmul.mubr.bf16.gmra.mrb[24].mxu0 %v2378_v12  ;;  %v2161_v58 = vpop.permute.xlu1 %2160 }
 0x365   :  { %3061 = vmatprep.mubr.bf16.mxu0 %v2446_v29  ;;  %v2382_v19 = vsel %vm74_vm1, %v1322_v37, %v2161_v58  ;;  %v8905_v10 = vpop.permute.xlu0 %1593  ;;  %v1504_v12 = vpack.c.bf16 %v1485_v32, %v1484_v53  ;;  %v10842_v29 = vld [vmem:[#allocation173_spill] sm:$0xff]  ;;  %v10844_v37 = vrot.slane %v10843_v20, 1  ;;  %v10847_v32 = vld [vmem:[#allocation170_spill] sm:$0xff] }
 0x366   :  { %1933 = vperm.xlu1 %5942, %v6301_v15   ;;  %v929_v58 = vrot.slane %v10842_v29, 1  ;;  %v1120_v15 = vmul.f32 %v8735_v62, %v8921_v60  ;;  %v6303_v62 = vld [vmem:[%s10184_s3 + $0xa8] sm:$0xff]  ;;  %v703_v48 = vmul.f32 %v8765_v16, %v10847_v32  ;;  %v6305_v16 = vld [vmem:[%s10184_s3 + $0xe0] sm:$0xff] }
 0x368   :  { %v8886_v57 = vpop.permute.xlu1 %667  ;;  %v8935_v42 = vsel %vm931_vm8, %v929_v58, %v10844_v37 }
 0x369   :  { %v8923_v61 = vpop.permute.xlu0 %1601 }
 0x36a   :  { %5943 = vset.pattern.permute.xlu1 %v10572_v43 }
 0x36b   :  { %1613 = vperm.xlu1 %5943, %v8897_v59  }
 0x36c   :  { %3062 = vmatmul.mubr.bf16.gmra.mrb[28].mxu0 %v2382_v19  ;;  %v1490_v19 = vmul.f32 %v8689_v13, %v8935_v42 }
 0x36d   :  { %3069 = vmatprep.mubr.bf16.mxu0 %v2450_v51  ;;  %v8903_v6 = vpop.permute.xlu1 %1805  ;;  %v1138_v51 = vpack.c.bf16 %v1121_v26, %v1120_v15  ;;  %v8945_v0 = vpop.permute.xlu0 %1609 }
 0x36f   :  { %2220 = vrot.lane.b32.xlu1 %v1856_v25, %s6323_s14 }
 0x370   :  { %5944 = vset.pattern.permute.xlu1 %v10702_v31 }
 0x371   :  { %v8912_v28 = vpop.permute.xlu1 %1809 }
 0x373   :  { %2172 = vrot.lane.b32.xlu1 %v1504_v12, %s6323_s14  ;;  %v10848_v12 = vld [vmem:[#allocation8_spill] sm:$0xff] }
 0x374   :  { %v1839_v15 = vmul.f32 %v10848_v12, %v10840_v34  ;;  %v10853_v12 = vld [vmem:[#allocation4_spill] sm:$0xff] }
 0x375   :  { %v10854_v34 = vld [vmem:[#allocation88_spill] sm:$0xff] }
 0x376   :  { %v1458_v52 = vpop.permute.xlu1 %1457  ;;  %v1486_v30 = vmul.f32 %v10854_v34, %v8811_v47 }
 0x377   :  { %v1491_v9 = vmul.f32 %v1458_v52, %v10846_v5  ;;  %1945 = vperm.xlu1 %5944, %v6303_v62   ;;  %v10849_v52 = vld [vmem:[#allocation12_spill] sm:$0xff]  ;;  %v8961_v62 = vpop.permute.xlu0 %1617 }
 0x378   :  { %v704_v26 = vmul.f32 %v10850_v14, %v10849_v52  ;;  %v1652_v14 = vmul.f32 %v8836_v54, %v10853_v12 }
 0x379   :  { %v1507_v25 = vpack.c.bf16 %v1491_v9, %v1490_v19  ;;  %v10851_v19 = vld [vmem:[#allocation87_spill] sm:$0xff] }
 0x37a   :  { %v2129_v53 = vpop.permute.xlu1 %2128  ;;  %v1838_v9 = vmul.f32 %v10851_v19, %v8182_v38 }
 0x37b   :  { %1949 = vperm.xlu1 %5944, %v6304_v3   ;;  %2178 = vrot.lane.b32.xlu0 %v1507_v25, %s6323_s14  ;;  %v2350_v13 = vsel %vm74_vm1, %v1138_v51, %v2129_v53  ;;  %v10852_v25 = vld [vmem:[#allocation124_spill] sm:$0xff]  ;;  %v721_v53 = vpack.c.bf16 %v704_v26, %v703_v48 }
 0x37c   :  { %2964 = vmatprep.mubr.bf16.mxu1 %v2350_v13  ;;  %v1857_v3 = vpack.c.bf16 %v1839_v15, %v1838_v9  ;;  %v1487_v13 = vmul.f32 %v8655_v1, %v8921_v60  ;;  %v8978_v1 = vpop.permute.xlu0 %1625  ;;  %v8986_v9 = vsel %vm931_vm8, %v928_v17, %v929_v58  ;;  %v1841_v58 = vmul.f32 %v8790_v21, %v10842_v29 }
 0x37e   :  { %v1578_v37 = vpop.permute.xlu1 %1577  ;;  %v1505_v15 = vpack.c.bf16 %v1487_v13, %v1486_v30  ;;  %v6306_v30 = vld [vmem:[%s10184_s3 + $0xc8] sm:$0xff] }
 0x37f   :  { %5945 = vset.pattern.permute.xlu1 %v10572_v43  ;;  %v1653_v51 = vmul.f32 %v1578_v37, %v10852_v25  ;;  %v10855_v25 = vld [vmem:[#allocation101_spill] sm:$0xff]  ;;  %v10857_v13 = vld [vmem:[#allocation67_spill] sm:$0xff] }
 0x380   :  { %1621 = vperm.xlu1 %5945, %v6305_v16   ;;  %v10856_v16 = vld [vmem:[#allocation105_spill] sm:$0xff] }
 0x381   :  { %v1676_v37 = vpack.c.bf16 %v1653_v51, %v1652_v14  ;;  %v1323_v48 = vpack.c.bf16 %v10856_v16, %v10855_v25  ;;  %v8988_v51 = vpop.permute.xlu0 %1633 }
 0x382   :  { %v2081_v5 = vpop.permute.xlu1 %2080 }
 0x383   :  { %v2286_v19 = vsel %vm74_vm1, %v721_v53, %v2081_v5  ;;  %v2454_v34 = vsel %vm74_vm1, %v1676_v37, %v8884_v7  ;;  %v1122_v53 = vmul.f32 %v8863_v41, %v8986_v9  ;;  %v1123_v7 = vmul.f32 %v10857_v13, %v8935_v42  ;;  %v10858_v37 = vld [vmem:[#allocation7_spill] sm:$0xff]  ;;  %v10863_v13 = vld [vmem:[#allocation118_spill] sm:$0xff] }
 0x384   :  { %2222 = vrot.lane.b32.xlu1 %v1857_v3, %s6323_s14  ;;  %2965 = vmatmul.mubr.bf16.gmra.mrb[56].mxu1 %v2286_v19  ;;  %v1840_v41 = vmul.f32 %v8781_v24, %v10841_v8  ;;  %v705_v25 = vmul.f32 %v8886_v57, %v10858_v37  ;;  %v10862_v24 = vld [vmem:[#allocation25_spill] sm:$0xff] }
 0x385   :  { %5946 = vset.pattern.permute.xlu1 %v10702_v31  ;;  %v1139_v12 = vpack.c.bf16 %v1123_v7, %v1122_v53  ;;  %v1862_v14 = vpop.permute.xlu0 %1861  ;;  %v1488_v53 = vmul.f32 %v10862_v24, %v8929_v39 }
 0x386   :  { %v2163_v26 = vpop.permute.xlu1 %2162  ;;  %v1988_v7 = vmul.f32 %v1862_v14, %v10863_v13 }
 0x387   :  { %v2386_v54 = vsel %vm74_vm1, %v1323_v48, %v2163_v26  ;;  %v10859_v48 = vld [vmem:[#allocation17_spill] sm:$0xff]  ;;  %v1858_v26 = vpack.c.bf16 %v1841_v58, %v1840_v41 }
 0x388   :  { %2174 = vrot.lane.b32.xlu1 %v1505_v15, %s6323_s14  ;;  %3070 = vmatmul.mubr.bf16.gmra.mrb[32].mxu0 %v2386_v54  ;;  %v10860_v15 = vld [vmem:[#allocation19_spill] sm:$0xff]  ;;  %v10861_v54 = vld [vmem:[#allocation9_spill] sm:$0xff] }
 0x389   :  { %3077 = vmatprep.mubr.bf16.mxu0 %v2454_v34  ;;  %v706_v21 = vmul.f32 %v10860_v15, %v10859_v48  ;;  %v10866_v15 = vld [vmem:[#allocation121_spill] sm:$0xff] }
 0x38a   :  { %v1866_v5 = vpop.permute.xlu1 %1865 }
 0x38b   :  { %v1989_v34 = vmul.f32 %v1866_v5, %v10861_v54  ;;  %v722_v57 = vpack.c.bf16 %v706_v21, %v705_v25  ;;  %v10865_v5 = vld [vmem:[#allocation109_spill] sm:$0xff]  ;;  %v10867_v54 = vld [vmem:[#allocation51_spill] sm:$0xff] }
 0x38c   :  { %1961 = vperm.xlu1 %5946, %v6306_v30   ;;  %v1874_v30 = vpop.permute.xlu0 %1873 }
 0x38e   :  { %v1870_v3 = vpop.permute.xlu1 %1869 }
 0x38f   :  { %v1990_v14 = vmul.f32 %v1870_v3, %v10866_v15 }
 0x390   :  { %1965 = vperm.xlu1 %5946, %v8897_v59   ;;  %v6307_v59 = vld [vmem:[%s10184_s3 + $0xf0] sm:$0xff]  ;;  %v1878_v25 = vpop.permute.xlu0 %1877 }
 0x392   :  { %v2131_v17 = vpop.permute.xlu1 %2130 }
 0x393   :  { %v2354_v19 = vsel %vm74_vm1, %v1139_v12, %v2131_v17 }
 0x394   :  { %5947 = vset.pattern.permute.xlu1 %v10572_v43  ;;  %2972 = vmatprep.mubr.bf16.mxu1 %v2354_v19  ;;  %v1489_v43 = vmul.f32 %v8813_v27, %v8986_v9  ;;  %v2020_v19 = vpack.c.bf16 %v1989_v34, %v1988_v7  ;;  %v10864_v27 = vld [vmem:[#allocation106_spill] sm:$0xff] }
 0x395   :  { %1629 = vperm.xlu1 %5947, %v6307_v59   ;;  %v1324_v41 = vpack.c.bf16 %v10865_v5, %v10864_v27  ;;  %v10869_v7 = vld [vmem:[#allocation114_spill] sm:$0xff]  ;;  %v10870_v27 = vld [vmem:[#allocation119_spill] sm:$0xff] }
 0x396   :  { %v1586_v16 = vpop.permute.xlu1 %1585  ;;  %v1506_v17 = vpack.c.bf16 %v1489_v43, %v1488_v53  ;;  %v6308_v43 = vld [vmem:[%s10184_s3 + $0xe8] sm:$0xff]  ;;  %v1843_v53 = vmul.f32 %v8912_v28, %v10787_v4 }
 0x399   :  { %2224 = vrot.lane.b32.xlu1 %v1858_v26, %s6323_s14 }
 0x39a   :  { %v2083_v12 = vpop.permute.xlu1 %2082  ;;  %5949 = vset.pattern.permute.xlu1 %v10702_v31  ;;  %v1991_v31 = vmul.f32 %v1874_v30, %v10867_v54  ;;  %v3311_v30 = vsub.s32 3, %v6891_v33 }
 0x39b   :  { %v2290_v58 = vsel %vm74_vm1, %v722_v57, %v2083_v12  ;;  %v10868_v57 = vld [vmem:[#allocation15_spill] sm:$0xff]  ;;  %v1890_v12 = vpop.permute.xlu0 %1889 }
 0x39c   :  { %2973 = vmatmul.mubr.bf16.gmra.mrb[60].mxu1 %v2290_v58  ;;  %v2021_v34 = vpack.c.bf16 %v1991_v31, %v1990_v14  ;;  %v1992_v13 = vmul.f32 %v1878_v25, %v10868_v57  ;;  %v9041_v58 = vld [vmem:[%s10188_s8] sm:$0xff]  ;;  %v1995_v5 = vmul.f32 %v1890_v12, %v10870_v27  ;;  %v10876_v12 = vld [vmem:[#allocation120_spill] sm:$0xff] }
 0x39d   :  { %2176 = vrot.lane.b32.xlu1 %v1506_v17, %s6323_s14  ;;  %5752 = vmatprep.mubr.msk.bf16.mxu1 %vm74_vm1, %v2020_v19  ;;  %v1842_v17 = vmul.f32 %v8903_v6, %v10843_v20  ;;  %v9047_v15 = vrot.slane %v9041_v58, %v3311_v30  ;;  %v10872_v6 = vld [vmem:[#allocation126_spill] sm:$0xff] }
 0x39e   :  { %v2165_v21 = vpop.permute.xlu1 %2164 }
 0x39f   :  { %v2390_v26 = vsel %vm74_vm1, %v1324_v41, %v2165_v21  ;;  %v1859_v28 = vpack.c.bf16 %v1843_v53, %v1842_v17  ;;  %v10871_v41 = vld [vmem:[#allocation116_spill] sm:$0xff]  ;;  %v10877_v17 = vld [vmem:[#allocation35_spill] sm:$0xff] }
 0x3a0   :  { %3078 = vmatmul.mubr.bf16.gmra.mrb[36].mxu0 %v2390_v26  ;;  %v10873_v26 = vld [vmem:[#allocation10_spill] sm:$0xff]  ;;  %v10875_v53 = vld [vmem:[#allocation112_spill] sm:$0xff] }
 0x3a1   :  { %1977 = vperm.xlu1 %5949, %v6308_v43   ;;  %v1654_v54 = vmul.f32 %v8865_v35, %v10873_v26 }
 0x3a2   :  { %v1882_v24 = vpop.permute.xlu1 %1881 }
 0x3a3   :  { %v1993_v3 = vmul.f32 %v1882_v24, %v10869_v7  ;;  %v10874_v24 = vld [vmem:[#allocation110_spill] sm:$0xff] }
 0x3a4   :  { %5753 = vmatmul.mubr.msk.bf16.vlgmr.msra.gmra.mrb[64].mxu1 %vm74_vm1, %v2021_v34  ;;  %v1325_v57 = vpack.c.bf16 %v10875_v53, %v10874_v24 }
 0x3a5   :  { %v2022_v19 = vpack.c.bf16 %v1993_v3, %v1992_v13  ;;  %1981 = vperm.xlu1 %5949, %v6307_v59   ;;  %v1655_v59 = vmul.f32 %v1586_v16, %v10872_v6  ;;  %v1894_v13 = vpop.permute.xlu0 %1893 }
 0x3a6   :  { %v1886_v4 = vpop.permute.xlu1 %1885  ;;  %v1996_v30 = vmul.f32 %v1894_v13, %v10876_v12 }
 0x3a7   :  { %v1994_v25 = vmul.f32 %v1886_v4, %v10871_v41  ;;  %5756 = vmatprep.mubr.msk.bf16.mxu1 %vm74_vm1, %v2022_v19  ;;  %v1677_v31 = vpack.c.bf16 %v1655_v59, %v1654_v54  ;;  %v10878_v59 = vld [vmem:[#allocation176_spill] sm:$0xff]  ;;  %v10879_v54 = vld [vmem:[#allocation161_spill] sm:$0xff] }
 0x3a9   :  { %v2023_v14 = vpack.c.bf16 %v1995_v5, %v1994_v25  ;;  %2226 = vrot.lane.b32.xlu1 %v1859_v28, %s6323_s14  ;;  %v1906_v28 = vpop.permute.xlu0 %1905 }
 0x3aa   :  { %v1999_v26 = vmul.f32 %v1906_v28, %v10878_v59  ;;  %v10882_v28 = vld [vmem:[#allocation113_spill] sm:$0xff] }
 0x3ab   :  { %v1590_v21 = vpop.permute.xlu1 %1589 }
 0x3ac   :  { %5757 = vmatmul.mubr.msk.bf16.gmra.mrb[68].mxu1 %vm74_vm1, %v2023_v14 }
 0x3ad   :  { %3346 = vrot.lane.b32.xlu1 %v9047_v15, %s6325_s20 }
 0x3af   :  { %v2215_v43 = vpop.permute.xlu1 %2214 }
 0x3b0   :  { %v2458_v34 = vsel %vm74_vm1, %v1677_v31, %v2215_v43 }
 0x3b1   :  { %3085 = vmatprep.mubr.bf16.mxu0 %v2458_v34  ;;  %v10880_v34 = vld [vmem:[#allocation16_spill] sm:$0xff] }
 0x3b2   :  { %v1656_v24 = vmul.f32 %v1590_v21, %v10880_v34  ;;  %v1910_v21 = vpop.permute.xlu0 %1909  ;;  %v10883_v34 = vld [vmem:[#allocation177_spill] sm:$0xff] }
 0x3b3   :  { %v2167_v16 = vpop.permute.xlu1 %2166 }
 0x3b4   :  { %v2394_v7 = vsel %vm74_vm1, %v1325_v57, %v2167_v16  ;;  %v10881_v16 = vld [vmem:[#allocation139_spill] sm:$0xff] }
 0x3b5   :  { %3086 = vmatmul.mubr.bf16.gmra.mrb[40].mxu0 %v2394_v7  ;;  %v1657_v7 = vmul.f32 %v8905_v10, %v10881_v16 }
 0x3b6   :  { %v1922_v16 = vpop.permute.xlu0 %1921 }
 0x3b7   :  { %v1898_v35 = vpop.permute.xlu1 %1897  ;;  %v5446_v3 = vpop.f32.mrb[0].mxu1 }
 0x3b8   :  { %v1997_v19 = vmul.f32 %v1898_v35, %v10877_v17  ;;  %v5447_v4 = vpop.f32.mrb[1].mxu1 }
 0x3b9   :  { %v9062_v27 = vadd.f32 %v5447_v4, %v5446_v3  ;;  %v5449_v5 = vpop.f32.mrb[2].mxu1 }
 0x3ba   :  { %v2024_v41 = vpack.c.bf16 %v1997_v19, %v1996_v30  ;;  %v5450_v25 = vpop.f32.mrb[3].mxu1  ;;  %v1678_v30 = vpack.c.bf16 %v1657_v7, %v1656_v24  ;;  %v2000_v24 = vmul.f32 %v1910_v21, %v10883_v34 }
 0x3bb   :  { %v1902_v14 = vpop.permute.xlu1 %1901  ;;  %v9064_v6 = vadd.f32 %v5450_v25, %v5449_v5  ;;  %v1326_v5 = vpack.c.bf16 %v10749_v36, %v10882_v28 }
 0x3bc   :  { %v1998_v31 = vmul.f32 %v1902_v14, %v10879_v54  ;;  %5760 = vmatprep.mubr.msk.bf16.mxu1 %vm74_vm1, %v2024_v41 }
 0x3be   :  { %v2025_v43 = vpack.c.bf16 %v1999_v26, %v1998_v31 }
 0x3bf   :  { %v5452_v53 = vpop.f32.mrb[4].mxu1 }
 0x3c0   :  { %v1598_v57 = vpop.permute.xlu1 %1597  ;;  %5761 = vmatmul.mubr.msk.bf16.gmra.mrb[72].mxu1 %vm74_vm1, %v2025_v43  ;;  %v5453_v13 = vpop.f32.mrb[5].mxu1 }
 0x3c1   :  { %v9073_v35 = vadd.f32 %v5453_v13, %v5452_v53  ;;  %v5455_v3 = vpop.f32.mrb[6].mxu1  ;;  %v10884_v53 = vld [vmem:[#allocation53_spill] sm:$0xff]  ;;  %v1658_v21 = vmul.f32 %v1598_v57, %v10797_v50  ;;  %v1327_v50 = vpack.c.bf16 %v10764_v45, %v10763_v23  ;;  %v1926_v57 = vpop.permute.xlu0 %1925 }
 0x3c2   :  { %v5456_v12 = vpop.f32.mrb[7].mxu1 }
 0x3c3   :  { %v9075_v17 = vadd.f32 %v5456_v12, %v5455_v3 }
 0x3c4   :  { %v2217_v19 = vpop.permute.xlu1 %2216 }
 0x3c5   :  { %v2462_v4 = vsel %vm74_vm1, %v1678_v30, %v2217_v19  ;;  %v10885_v30 = vld [vmem:[#allocation23_spill] sm:$0xff] }
 0x3c6   :  { %3093 = vmatprep.mubr.bf16.mxu0 %v2462_v4  ;;  %v2003_v19 = vmul.f32 %v1922_v16, %v10885_v30  ;;  %v10886_v4 = vld [vmem:[#allocation54_spill] sm:$0xff] }
 0x3c7   :  { %v5458_v41 = vpop.f32.mrb[8].mxu1 }
 0x3c8   :  { %v2169_v25 = vpop.permute.xlu1 %2168  ;;  %v5459_v14 = vpop.f32.mrb[9].mxu1 }
 0x3c9   :  { %v2398_v10 = vsel %vm74_vm1, %v1326_v5, %v2169_v25  ;;  %v9081_v59 = vadd.f32 %v5459_v14, %v5458_v41  ;;  %v5461_v26 = vpop.f32.mrb[10].mxu1 }
 0x3ca   :  { %3094 = vmatmul.mubr.bf16.gmra.mrb[44].mxu0 %v2398_v10  ;;  %v5462_v54 = vpop.f32.mrb[11].mxu1 }
 0x3cb   :  { %v9083_v31 = vadd.f32 %v5462_v54, %v5461_v26  ;;  %v1659_v54 = vmul.f32 %v8923_v61, %v10795_v55 }
 0x3cc   :  { %v1914_v43 = vpop.permute.xlu1 %1913 }
 0x3cd   :  { %v2001_v13 = vmul.f32 %v1914_v43, %v10884_v53  ;;  %v1679_v34 = vpack.c.bf16 %v1659_v54, %v1658_v21 }
 0x3cf   :  { %v2026_v7 = vpack.c.bf16 %v2001_v13, %v2000_v24  ;;  %v5464_v36 = vpop.f32.mrb[12].mxu1 }
 0x3d0   :  { %v1918_v3 = vpop.permute.xlu1 %1917  ;;  %v5465_v12 = vpop.f32.mrb[13].mxu1 }
 0x3d1   :  { %v2002_v28 = vmul.f32 %v1918_v3, %v10886_v4  ;;  %5764 = vmatprep.mubr.msk.bf16.mxu1 %vm74_vm1, %v2026_v7  ;;  %v9090_v5 = vadd.f32 %v5465_v12, %v5464_v36  ;;  %v5467_v41 = vpop.f32.mrb[14].mxu1 }
 0x3d2   :  { %v5468_v25 = vpop.f32.mrb[15].mxu1 }
 0x3d3   :  { %v2027_v14 = vpack.c.bf16 %v2003_v19, %v2002_v28  ;;  %v9092_v10 = vadd.f32 %v5468_v25, %v5467_v41  ;;  %v10887_v41 = vld [vmem:[#allocation24_spill] sm:$0xff] }
 0x3d4   :  { %v2004_v25 = vmul.f32 %v1926_v57, %v10887_v41 }
 0x3d5   :  { %v1606_v26 = vpop.permute.xlu1 %1605  ;;  %5765 = vmatmul.mubr.msk.bf16.gmra.mrb[76].mxu1 %vm74_vm1, %v2027_v14  ;;  %v10888_v14 = vld [vmem:[#allocation144_spill] sm:$0xff] }
 0x3d7   :  { %v5470_v43 = vpop.f32.mrb[16].mxu1 }
 0x3d8   :  { %v5471_v24 = vpop.f32.mrb[17].mxu1 }
 0x3d9   :  { %v2219_v53 = vpop.permute.xlu1 %2218  ;;  %v9098_v13 = vadd.f32 %v5471_v24, %v5470_v43  ;;  %v5473_v16 = vpop.f32.mrb[18].mxu1 }
 0x3da   :  { %v2466_v7 = vsel %vm74_vm1, %v1679_v34, %v2219_v53  ;;  %v5474_v36 = vpop.f32.mrb[19].mxu1  ;;  %v1938_v43 = vpop.permute.xlu0 %1937  ;;  %v10889_v53 = vld [vmem:[#allocation56_spill] sm:$0xff] }
 0x3db   :  { %3101 = vmatprep.mubr.bf16.mxu0 %v2466_v7  ;;  %v9101_v3 = vadd.f32 %v5474_v36, %v5473_v16  ;;  %v2007_v24 = vmul.f32 %v1938_v43, %v8628_v18 }
 0x3dd   :  { %v2171_v12 = vpop.permute.xlu1 %2170 }
 0x3de   :  { %v2402_v55 = vsel %vm74_vm1, %v1327_v50, %v2171_v12  ;;  %v1660_v12 = vmul.f32 %v1606_v26, %v10822_v49  ;;  %v1942_v49 = vpop.permute.xlu0 %1941  ;;  %v1328_v26 = vpack.c.bf16 %v10778_v46, %v10777_v44 }
 0x3df   :  { %3102 = vmatmul.mubr.bf16.gmra.mrb[48].mxu0 %v2402_v55  ;;  %v5476_v61 = vpop.f32.mrb[20].mxu1 }
 0x3e0   :  { %v5477_v30 = vpop.f32.mrb[21].mxu1 }
 0x3e1   :  { %v1930_v19 = vpop.permute.xlu1 %1929  ;;  %v9106_v4 = vadd.f32 %v5477_v30, %v5476_v61  ;;  %v5479_v28 = vpop.f32.mrb[22].mxu1 }
 0x3e2   :  { %v2005_v21 = vmul.f32 %v1930_v19, %v10888_v14  ;;  %v5480_v54 = vpop.f32.mrb[23].mxu1  ;;  %v1661_v19 = vmul.f32 %v8945_v0, %v10823_v22 }
 0x3e3   :  { %v9110_v34 = vadd.f32 %v5480_v54, %v5479_v28 }
 0x3e4   :  { %v2028_v23 = vpack.c.bf16 %v2005_v21, %v2004_v25  ;;  %v1680_v28 = vpack.c.bf16 %v1661_v19, %v1660_v12 }
 0x3e5   :  { %v1934_v45 = vpop.permute.xlu1 %1933 }
 0x3e6   :  { %v2006_v16 = vmul.f32 %v1934_v45, %v10889_v53  ;;  %5768 = vmatprep.mubr.msk.bf16.mxu1 %vm74_vm1, %v2028_v23  ;;  %v2008_v53 = vmul.f32 %v1942_v49, %v8678_v63 }
 0x3e7   :  { %v5482_v7 = vpop.f32.mrb[24].mxu1 }
 0x3e8   :  { %v2029_v36 = vpack.c.bf16 %v2007_v24, %v2006_v16  ;;  %v5483_v50 = vpop.f32.mrb[25].mxu1 }
 0x3e9   :  { %v9116_v57 = vadd.f32 %v5483_v50, %v5482_v7  ;;  %v5485_v55 = vpop.f32.mrb[26].mxu1 }
 0x3ea   :  { %v1614_v61 = vpop.permute.xlu1 %1613  ;;  %5769 = vmatmul.mubr.msk.bf16.gmra.mrb[80].mxu1 %vm74_vm1, %v2029_v36  ;;  %v5486_v30 = vpop.f32.mrb[27].mxu1 }
 0x3eb   :  { %v9121_v18 = vadd.f32 %v5486_v30, %v5485_v55  ;;  %v1954_v36 = vpop.permute.xlu0 %1953 }
 0x3ec   :  { %v2011_v19 = vmul.f32 %v1954_v36, %v8709_v40 }
 0x3ee   :  { %v2221_v41 = vpop.permute.xlu1 %2220 }
 0x3ef   :  { %v2470_v25 = vsel %vm74_vm1, %v1680_v28, %v2221_v41  ;;  %v5488_v14 = vpop.f32.mrb[28].mxu1 }
 0x3f0   :  { %3109 = vmatprep.mubr.bf16.mxu0 %v2470_v25  ;;  %v5489_v21 = vpop.f32.mrb[29].mxu1 }
 0x3f1   :  { %v9126_v54 = vadd.f32 %v5489_v21, %v5488_v14  ;;  %v5491_v43 = vpop.f32.mrb[30].mxu1  ;;  %v1663_v21 = vmul.f32 %v8961_v62, %v10849_v52 }
 0x3f2   :  { %v2173_v23 = vpop.permute.xlu1 %2172  ;;  %v5492_v45 = vpop.f32.mrb[31].mxu1 }
 0x3f3   :  { %v2406_v22 = vsel %vm74_vm1, %v1328_v26, %v2173_v23  ;;  %v9129_v0 = vadd.f32 %v5492_v45, %v5491_v43 }
 0x3f4   :  { %3110 = vmatmul.mubr.bf16.gmra.mrb[52].mxu0 %v2406_v22 }
 0x3f6   :  { %v1946_v24 = vpop.permute.xlu1 %1945 }
 0x3f7   :  { %v2009_v16 = vmul.f32 %v1946_v24, %v8672_v2  ;;  %v5494_v7 = vpop.f32.mrb[32].mxu1  ;;  %v1662_v2 = vmul.f32 %v1614_v61, %v10847_v32  ;;  %v1958_v32 = vpop.permute.xlu0 %1957  ;;  %v1329_v61 = vpack.c.bf16 %v8182_v38, %v10805_v11 }
 0x3f8   :  { %v5495_v50 = vpop.f32.mrb[33].mxu1 }
 0x3f9   :  { %v2030_v12 = vpack.c.bf16 %v2009_v16, %v2008_v53  ;;  %v9133_v44 = vadd.f32 %v5495_v50, %v5494_v7  ;;  %v5497_v46 = vpop.f32.mrb[34].mxu1  ;;  %v1681_v43 = vpack.c.bf16 %v1663_v21, %v1662_v2 }
 0x3fa   :  { %v1950_v55 = vpop.permute.xlu1 %1949  ;;  %v5498_v30 = vpop.f32.mrb[35].mxu1 }
 0x3fb   :  { %v2010_v28 = vmul.f32 %v1950_v55, %v8713_v56  ;;  %5772 = vmatprep.mubr.msk.bf16.mxu1 %vm74_vm1, %v2030_v12  ;;  %v9138_v41 = vadd.f32 %v5498_v30, %v5497_v46  ;;  %v10890_v46 = vld [vmem:[#allocation30_spill] sm:$0xff] }
 0x3fc   :  { %v2012_v55 = vmul.f32 %v1958_v32, %v10890_v46 }
 0x3fd   :  { %v2031_v63 = vpack.c.bf16 %v2011_v19, %v2010_v28  ;;  %v1970_v19 = vpop.permute.xlu0 %1969 }
 0x3ff   :  { %v1622_v25 = vpop.permute.xlu1 %1621  ;;  %5773 = vmatmul.mubr.msk.bf16.gmra.mrb[84].mxu1 %vm74_vm1, %v2031_v63  ;;  %v5500_v14 = vpop.f32.mrb[36].mxu1  ;;  %v2015_v63 = vmul.f32 %v1970_v19, %v8929_v39 }
 0x400   :  { %v5501_v49 = vpop.f32.mrb[37].mxu1  ;;  %v1664_v32 = vmul.f32 %v1622_v25, %v10858_v37 }
 0x401   :  { %v9144_v26 = vadd.f32 %v5501_v49, %v5500_v14  ;;  %v5503_v40 = vpop.f32.mrb[38].mxu1 }
 0x402   :  { %v5504_v56 = vpop.f32.mrb[39].mxu1 }
 0x403   :  { %v2223_v23 = vpop.permute.xlu1 %2222  ;;  %v9146_v45 = vadd.f32 %v5504_v56, %v5503_v40 }
 0x404   :  { %v2474_v22 = vsel %vm74_vm1, %v1681_v43, %v2223_v23 }
 0x405   :  { %3117 = vmatprep.mubr.bf16.mxu0 %v2474_v22 }
 0x407   :  { %v2175_v24 = vpop.permute.xlu1 %2174  ;;  %v5506_v53 = vpop.f32.mrb[40].mxu1 }
 0x408   :  { %v2410_v52 = vsel %vm74_vm1, %v1329_v61, %v2175_v24  ;;  %v5507_v62 = vpop.f32.mrb[41].mxu1 }
 0x409   :  { %3118 = vmatmul.mubr.bf16.gmra.mrb[56].mxu0 %v2410_v52  ;;  %v9152_v16 = vadd.f32 %v5507_v62, %v5506_v53  ;;  %v5509_v7 = vpop.f32.mrb[42].mxu1  ;;  %v1665_v52 = vmul.f32 %v8978_v1, %v10859_v48 }
 0x40a   :  { %v5510_v36 = vpop.f32.mrb[43].mxu1 }
 0x40b   :  { %v1962_v50 = vpop.permute.xlu1 %1961  ;;  %v9154_v12 = vadd.f32 %v5510_v36, %v5509_v7  ;;  %v1682_v7 = vpack.c.bf16 %v1665_v52, %v1664_v32  ;;  %v10892_v52 = vld [vmem:[#allocation175_spill] sm:$0xff] }
 0x40c   :  { %v2013_v30 = vmul.f32 %v1962_v50, %v8811_v47 }
 0x40e   :  { %v2032_v28 = vpack.c.bf16 %v2013_v30, %v2012_v55 }
 0x40f   :  { %v5558_v38 = vpop.f32.mrb[4].mxu0  ;;  %v1966_v11 = vpop.permute.xlu1 %1965 }
 0x410   :  { %v5559_v2 = vpop.f32.mrb[5].mxu0  ;;  %v2014_v14 = vmul.f32 %v1966_v11, %v8921_v60  ;;  %5776 = vmatprep.mubr.msk.bf16.mxu1 %vm74_vm1, %v2032_v28  ;;  %v5512_v21 = vpop.f32.mrb[44].mxu1  ;;  %v10891_v11 = vld [vmem:[#allocation80_spill] sm:$0xff] }
 0x411   :  { %v5560_v49 = vadd.f32 %v5559_v2, %v5558_v38  ;;  %v5561_v40 = vpop.f32.mrb[6].mxu0  ;;  %v5513_v43 = vpop.f32.mrb[45].mxu1  ;;  %v1330_v1 = vpack.c.bf16 %v10841_v8, %v10891_v11 }
 0x412   :  { %v5562_v56 = vpop.f32.mrb[7].mxu0  ;;  %v2033_v23 = vpack.c.bf16 %v2015_v63, %v2014_v14  ;;  %v9161_v22 = vadd.f32 %v5513_v43, %v5512_v21  ;;  %v5515_v47 = vpop.f32.mrb[46].mxu1 }
 0x413   :  { %v5563_v61 = vadd.f32 %v5562_v56, %v5561_v40  ;;  %v5516_v24 = vpop.f32.mrb[47].mxu1  ;;  %v9165_v39 = vadd.f32 %v5560_v49, %v9062_v27  ;;  %v1974_v28 = vpop.permute.xlu0 %1973 }
 0x414   :  { %v1630_v53 = vpop.permute.xlu1 %1629  ;;  %5777 = vmatmul.mubr.msk.bf16.gmra.mrb[88].mxu1 %vm74_vm1, %v2033_v23  ;;  %v9168_v60 = vadd.f32 %v5516_v24, %v5515_v47  ;;  %v2016_v8 = vmul.f32 %v1974_v28, %v8986_v9  ;;  %v10895_v9 = vld [vmem:[#allocation45_spill] sm:$0xff] }
 0x415   :  { %v9173_v62 = vadd.f32 %v5563_v61, %v9064_v6 }
 0x417   :  { %v5564_v36 = vpop.f32.mrb[8].mxu0  ;;  %v1986_v61 = vpop.permute.xlu0 %1985 }
 0x418   :  { %v5565_v50 = vpop.f32.mrb[9].mxu0  ;;  %v2225_v37 = vpop.permute.xlu1 %2224 }
 0x419   :  { %v5566_v25 = vadd.f32 %v5565_v50, %v5564_v36  ;;  %v5567_v46 = vpop.f32.mrb[10].mxu0  ;;  %v2478_v27 = vsel %vm74_vm1, %v1682_v7, %v2225_v37  ;;  %v5518_v55 = vpop.f32.mrb[48].mxu1  ;;  %v1666_v7 = vmul.f32 %v1630_v53, %v10892_v52 }
 0x41a   :  { %v5568_v30 = vpop.f32.mrb[11].mxu0  ;;  %3125 = vmatprep.mubr.bf16.mxu0 %v2478_v27  ;;  %v5519_v19 = vpop.f32.mrb[49].mxu1  ;;  %v10894_v27 = vld [vmem:[#allocation115_spill] sm:$0xff] }
 0x41b   :  { %v5569_v38 = vadd.f32 %v5568_v30, %v5567_v46  ;;  %v9178_v48 = vadd.f32 %v5519_v19, %v5518_v55  ;;  %v5521_v6 = vpop.f32.mrb[50].mxu1  ;;  %v9181_v63 = vadd.f32 %v5566_v25, %v9073_v35  ;;  %v10893_v25 = vld [vmem:[#allocation22_spill] sm:$0xff]  ;;  %v2019_v55 = vmul.f32 %v1986_v61, %v10894_v27  ;;  %v2179_v19 = vpop.permute.xlu0 %2178 }
 0x41c   :  { %v2177_v2 = vpop.permute.xlu1 %2176  ;;  %v5522_v14 = vpop.f32.mrb[51].mxu1  ;;  %v1667_v46 = vmul.f32 %v8988_v51, %v10893_v25 }
 0x41d   :  { %v2414_v21 = vsel %vm74_vm1, %v1330_v1, %v2177_v2  ;;  %v9184_v49 = vadd.f32 %v5522_v14, %v5521_v6  ;;  %v9187_v40 = vadd.f32 %v5569_v38, %v9075_v17  ;;  %v1331_v1 = vpack.c.bf16 %v10843_v20, %v10842_v29 }
 0x41e   :  { %3126 = vmatmul.mubr.bf16.gmra.mrb[60].mxu0 %v2414_v21  ;;  %v1683_v53 = vpack.c.bf16 %v1667_v46, %v1666_v7 }
 0x41f   :  { %v5570_v43 = vpop.f32.mrb[12].mxu0 }
 0x420   :  { %v5571_v56 = vpop.f32.mrb[13].mxu0  ;;  %v1978_v23 = vpop.permute.xlu1 %1977 }
 0x421   :  { %v5572_v47 = vadd.f32 %v5571_v56, %v5570_v43  ;;  %v5573_v32 = vpop.f32.mrb[14].mxu0  ;;  %v2017_v35 = vmul.f32 %v1978_v23, %v8935_v42  ;;  %v10896_v56 = vmov 0.0  }
 0x422   :  { %v5574_v24 = vpop.f32.mrb[15].mxu0 }
 0x423   :  { %v5575_v36 = vadd.f32 %v5574_v24, %v5573_v32  ;;  %v2034_v50 = vpack.c.bf16 %v2017_v35, %v2016_v8  ;;  %v9193_v37 = vadd.f32 %v5572_v47, %v9081_v59 }
 0x424   :  { %v1982_v17 = vpop.permute.xlu1 %1981 }
 0x425   :  { %v2018_v30 = vmul.f32 %v1982_v17, %v10895_v9  ;;  %5780 = vmatprep.mubr.msk.bf16.mxu1 %vm74_vm1, %v2034_v50  ;;  %v9201_v42 = vadd.f32 %v5575_v36, %v9083_v31  ;;  %v2418_v31 = vsel %vm74_vm1, %v1331_v1, %v2179_v19 }
 0x427   :  { %v5576_v28 = vpop.f32.mrb[16].mxu0  ;;  %v2035_v38 = vpack.c.bf16 %v2019_v55, %v2018_v30 }
 0x428   :  { %v5577_v11 = vpop.f32.mrb[17].mxu0  ;;  %v2227_v59 = vpop.permute.xlu1 %2226 }
 0x429   :  { %v5578_v6 = vadd.f32 %v5577_v11, %v5576_v28  ;;  %v5579_v51 = vpop.f32.mrb[18].mxu0  ;;  %5781 = vmatmul.mubr.msk.bf16.gmra.mrb[92].mxu1 %vm74_vm1, %v2035_v38  ;;  %v2482_v2 = vsel %vm74_vm1, %v1683_v53, %v2227_v59 }
 0x42a   :  { %v5580_v14 = vpop.f32.mrb[19].mxu0  ;;  %3133 = vmatprep.mubr.bf16.mxu0 %v2482_v2 }
 0x42b   :  { %v5581_v21 = vadd.f32 %v5580_v14, %v5579_v51  ;;  %3134 = vmatmul.mubr.bf16.gmra.mrb[64].mxu0 %v2418_v31  ;;  %v9209_v43 = vadd.f32 %v5578_v6, %v9090_v5 }
 0x42c   :  { %3903 = vmatprep.mubr.f32.mxu0 %v10896_v56 }
 0x42d   :  { %v9213_v23 = vadd.f32 %v5581_v21, %v9092_v10 }
 0x42f   :  { %v5582_v29 = vpop.f32.mrb[20].mxu0 }
 0x430   :  { %v5583_v20 = vpop.f32.mrb[21].mxu0 }
 0x431   :  { %v5584_v8 = vadd.f32 %v5583_v20, %v5582_v29  ;;  %v5585_v47 = vpop.f32.mrb[22].mxu0  ;;  %v5524_v32 = vpop.f32.mrb[52].mxu1 }
 0x432   :  { %v5586_v35 = vpop.f32.mrb[23].mxu0  ;;  %v5525_v61 = vpop.f32.mrb[53].mxu1 }
 0x433   :  { %v5587_v24 = vadd.f32 %v5586_v35, %v5585_v47  ;;  %v9215_v52 = vadd.f32 %v5525_v61, %v5524_v32  ;;  %v5527_v7 = vpop.f32.mrb[54].mxu1  ;;  %v9218_v36 = vadd.f32 %v5584_v8, %v9098_v13  ;;  %v3304_v32 = vld [vmem:[%s10188_s8 + $0x8] sm:$0xff]  ;;  %v3307_v35 = vld [vmem:[%s10188_s8 + $0x20] sm:$0xf]  ;;  %v3306_v61 = vld [vmem:[%s10188_s8 + $0x18] sm:$0xf] }
 0x434   :  { %v5528_v5 = vpop.f32.mrb[55].mxu1 }
 0x435   :  { %v9220_v50 = vadd.f32 %v5528_v5, %v5527_v7  ;;  %v9223_v10 = vadd.f32 %v5587_v24, %v9101_v3  ;;  %v3823_v24 = vrot.slane %v9041_v58, 4  ;;  %v3826_v7 = vrot.slane %v3304_v32, 4 }
 0x436   :  { %v3824_v5 = vrot.slane %v3306_v61, 4 }
 0x437   :  { %v5588_v17 = vpop.f32.mrb[24].mxu0 }
 0x438   :  { %v5589_v25 = vpop.f32.mrb[25].mxu0 }
 0x439   :  { %v5590_v46 = vadd.f32 %v5589_v25, %v5588_v17  ;;  %v5591_v27 = vpop.f32.mrb[26].mxu0  ;;  %v3825_v17 = vsel %vm259_vm5, %v3823_v24, %v3824_v5 }
 0x43a   :  { %v5592_v55 = vpop.f32.mrb[27].mxu0 }
 0x43b   :  { %v5593_v9 = vadd.f32 %v5592_v55, %v5591_v27  ;;  %v9226_v30 = vadd.f32 %v5590_v46, %v9106_v4 }
 0x43d   :  { %v9229_v19 = vadd.f32 %v5593_v9, %v9110_v34 }
 0x43f   :  { %v5594_v13 = vpop.f32.mrb[28].mxu0 }
 0x440   :  { %v5595_v53 = vpop.f32.mrb[29].mxu0 }
 0x441   :  { %v5596_v28 = vadd.f32 %v5595_v53, %v5594_v13  ;;  %v5597_v38 = vpop.f32.mrb[30].mxu0 }
 0x442   :  { %v5598_v11 = vpop.f32.mrb[31].mxu0 }
 0x443   :  { %v5599_v59 = vadd.f32 %v5598_v11, %v5597_v38  ;;  %v9232_v3 = vadd.f32 %v5596_v28, %v9116_v57 }
 0x445   :  { %v9235_v1 = vadd.f32 %v5599_v59, %v9121_v18 }
 0x457   :  { %v5530_v6 = vpop.f32.mrb[56].mxu1 }
 0x458   :  { %v5531_v51 = vpop.f32.mrb[57].mxu1 }
 0x459   :  { %v9237_v2 = vadd.f32 %v5531_v51, %v5530_v6  ;;  %v5533_v4 = vpop.f32.mrb[58].mxu1 }
 0x45a   :  { %v5534_v14 = vpop.f32.mrb[59].mxu1 }
 0x45b   :  { %v9239_v34 = vadd.f32 %v5534_v14, %v5533_v4  ;;  %v5600_v31 = vpop.f32.mrb[32].mxu0 }
 0x45c   :  { %v5601_v21 = vpop.f32.mrb[33].mxu0 }
 0x45d   :  { %v5602_v29 = vadd.f32 %v5601_v21, %v5600_v31  ;;  %v5603_v20 = vpop.f32.mrb[34].mxu0 }
 0x45e   :  { %v5604_v8 = vpop.f32.mrb[35].mxu0 }
 0x45f   :  { %v5605_v47 = vadd.f32 %v5604_v8, %v5603_v20  ;;  %v9242_v57 = vadd.f32 %v5602_v29, %v9126_v54  ;;  %v3827_v54 = vrot.slane %v3307_v35, 4  ;;  %v9269_v29 = vpop.permute.xlu1 %3346 }
 0x461   :  { %v9245_v18 = vadd.f32 %v5605_v47, %v9129_v0  ;;  %v3828_v0 = vsel %vm259_vm5, %v3826_v7, %v3827_v54 }
 0x462   :  { %3839 = vmatprep.subr.mxu0 %v3828_v0 }
 0x463   :  { %3840 = vmatpush1.msra.mxu0 %v3825_v17 }
 0x464   :  { %5784 = vmatprep.subr.mxu0 %v10896_v56 }
 0x46f   :  { %v5536_v25 = vpop.f32.mrb[60].mxu1 }
 0x470   :  { %v5537_v46 = vpop.f32.mrb[61].mxu1 }
 0x471   :  { %v9260_v27 = vadd.f32 %v5537_v46, %v5536_v25  ;;  %v5539_v55 = vpop.f32.mrb[62].mxu1 }
 0x472   :  { %v5540_v9 = vpop.f32.mrb[63].mxu1 }
 0x473   :  { %v9262_v13 = vadd.f32 %v5540_v9, %v5539_v55  ;;  %v5606_v58 = vpop.f32.mrb[36].mxu0 }
 0x474   :  { %v5607_v53 = vpop.f32.mrb[37].mxu0 }
 0x475   :  { %v5608_v28 = vadd.f32 %v5607_v53, %v5606_v58  ;;  %v5609_v38 = vpop.f32.mrb[38].mxu0 }
 0x476   :  { %v5610_v11 = vpop.f32.mrb[39].mxu0 }
 0x477   :  { %v5611_v59 = vadd.f32 %v5610_v11, %v5609_v38  ;;  %v5754_v6 = vpop.f32.mrb[64].mxu1  ;;  %v9265_v51 = vadd.f32 %v5608_v28, %v9133_v44 }
 0x478   :  { %v3185_v4 = vadd.f32 %v5754_v6, %v9181_v63  ;;  %v3176_v14 = vpop.f32.mrb[65].mxu1 }
 0x479   :  { %v3177_v31 = vadd.f32 %v3176_v14, %v9165_v39  ;;  %v5755_v21 = vpop.f32.mrb[66].mxu1  ;;  %v9272_v20 = vadd.f32 %v5611_v59, %v9138_v41 }
 0x47a   :  { %v3315_v8 = vmul.f32 %v9047_v15, %v3185_v4  ;;  %v3188_v47 = vadd.f32 %v5755_v21, %v9187_v40  ;;  %v3179_v32 = vpop.f32.mrb[67].mxu1 }
 0x47b   :  { %v3313_v35 = vmul.f32 %v9047_v15, %v3177_v31  ;;  %v3180_v44 = vadd.f32 %v3179_v32, %v9173_v62 }
 0x47c   :  { %v3316_v63 = vmul.f32 %v9047_v15, %v3188_v47  ;;  %v3351_v61 = vadd.f32 %v9269_v29, %v3315_v8 }
 0x47d   :  { %v3314_v39 = vmul.f32 %v9047_v15, %v3180_v44  ;;  %v3349_v24 = vadd.f32 %v9269_v29, %v3313_v35 }
 0x47e   :  { %v3352_v41 = vadd.f32 %v9269_v29, %v3316_v63  ;;  %v3383_v7 = vmax.f32 %v3351_v61, 0.0 }
 0x47f   :  { %v5758_v54 = vpop.f32.mrb[68].mxu1  ;;  %v3350_v5 = vadd.f32 %v9269_v29, %v3314_v39  ;;  %v3381_v40 = vmax.f32 %v3349_v24, 0.0 }
 0x480   :  { %v3201_v0 = vadd.f32 %v5758_v54, %v9209_v43  ;;  %v3192_v17 = vpop.f32.mrb[69].mxu1  ;;  %v3384_v25 = vmax.f32 %v3352_v41, 0.0  ;;  %v3415_v58 = vrot.slane %v3383_v7, 1 }
 0x481   :  { %v3193_v62 = vadd.f32 %v3192_v17, %v9193_v37  ;;  %v5759_v46 = vpop.f32.mrb[70].mxu1  ;;  %v3382_v55 = vmax.f32 %v3350_v5, 0.0  ;;  %v9290_v6 = vrot.slane %v3381_v40, 1 }
 0x482   :  { %v3319_v9 = vmul.f32 %v9047_v15, %v3201_v0  ;;  %v3416_v53 = vrot.slane %v3384_v25, 1  ;;  %v3204_v28 = vadd.f32 %v5759_v46, %v9213_v23  ;;  %v3195_v38 = vpop.f32.mrb[71].mxu1 }
 0x483   :  { %v3317_v11 = vmul.f32 %v9047_v15, %v3193_v62  ;;  %v3196_v59 = vadd.f32 %v3195_v38, %v9201_v42  ;;  %v3414_v43 = vrot.slane %v3382_v55, 1 }
 0x484   :  { %v3355_v4 = vadd.f32 %v9269_v29, %v3319_v9  ;;  %v3459_v37 = vsel %vm931_vm8, %v3415_v58, %v3416_v53  ;;  %v3320_v14 = vmul.f32 %v9047_v15, %v3204_v28 }
 0x485   :  { %v3353_v31 = vadd.f32 %v9269_v29, %v3317_v11  ;;  %v9297_v21 = vmax.f32 %v3383_v7, %v3459_v37  ;;  %v3318_v23 = vmul.f32 %v9047_v15, %v3196_v59  ;;  %v3460_v42 = vsel %vm931_vm8, %v9290_v6, %v3414_v43 }
 0x486   :  { %v3387_v8 = vmax.f32 %v3355_v4, 0.0  ;;  %v3356_v47 = vadd.f32 %v9269_v29, %v3320_v14  ;;  %v9304_v32 = vmax.f32 %v3381_v40, %v3460_v42  ;;  %v3491_v35 = vsel %vm931_vm8, %v3414_v43, %v3415_v58 }
 0x487   :  { %v3385_v44 = vmax.f32 %v3353_v31, 0.0  ;;  %v3354_v63 = vadd.f32 %v9269_v29, %v3318_v23  ;;  %v9309_v61 = vmax.f32 %v3382_v55, %v3491_v35 }
 0x488   :  { %v3388_v39 = vmax.f32 %v3356_v47, 0.0  ;;  %v5612_v24 = vpop.f32.mrb[40].mxu0  ;;  %v3419_v0 = vrot.slane %v3387_v8, 1 }
 0x489   :  { %v3417_v41 = vrot.slane %v3385_v44, 1  ;;  %v3386_v7 = vmax.f32 %v3354_v63, 0.0  ;;  %v5613_v54 = vpop.f32.mrb[41].mxu0  ;;  %v3509_v5 = vmax.f32 %v9304_v32, %v9309_v61 }
 0x48a   :  { %v3420_v17 = vrot.slane %v3388_v39, 1  ;;  %v5614_v40 = vadd.f32 %v5613_v54, %v5612_v24  ;;  %v5615_v62 = vpop.f32.mrb[42].mxu0 }
 0x48b   :  { %v3490_v46 = vsel %vm931_vm8, %v3416_v53, %v3417_v41  ;;  %v3418_v9 = vrot.slane %v3386_v7, 1  ;;  %v5616_v58 = vpop.f32.mrb[43].mxu0 }
 0x48c   :  { %v9315_v28 = vmax.f32 %v3384_v25, %v3490_v46  ;;  %v3457_v55 = vsel %vm931_vm8, %v3419_v0, %v3420_v17  ;;  %v5617_v38 = vadd.f32 %v5616_v58, %v5615_v62  ;;  %v9320_v11 = vadd.f32 %v5614_v40, %v9144_v26 }
 0x48d   :  { %v9322_v59 = vmax.f32 %v3387_v8, %v3457_v55  ;;  %v3458_v43 = vsel %vm931_vm8, %v3417_v41, %v3418_v9  ;;  %v3489_v4 = vsel %vm931_vm8, %v3418_v9, %v3419_v0 }
 0x48e   :  { %v3510_v53 = vmax.f32 %v9297_v21, %v9315_v28  ;;  %v9330_v25 = vmax.f32 %v3385_v44, %v3458_v43  ;;  %v9332_v37 = vmax.f32 %v3386_v7, %v3489_v4  ;;  %v9335_v14 = vadd.f32 %v5617_v38, %v9146_v45 }
 0x490   :  { %v3511_v26 = vmax.f32 %v9330_v25, %v9332_v37 }
 0x493   :  { %v5762_v31 = vpop.f32.mrb[72].mxu1 }
 0x494   :  { %v3217_v23 = vadd.f32 %v5762_v31, %v9226_v30  ;;  %v3208_v42 = vpop.f32.mrb[73].mxu1 }
 0x495   :  { %v3209_v8 = vadd.f32 %v3208_v42, %v9218_v36  ;;  %v5763_v47 = vpop.f32.mrb[74].mxu1 }
 0x496   :  { %v3323_v35 = vmul.f32 %v9047_v15, %v3217_v23  ;;  %v3220_v44 = vadd.f32 %v5763_v47, %v9229_v19  ;;  %v3211_v63 = vpop.f32.mrb[75].mxu1 }
 0x497   :  { %v3321_v24 = vmul.f32 %v9047_v15, %v3209_v8  ;;  %v3212_v45 = vadd.f32 %v3211_v63, %v9223_v10 }
 0x498   :  { %v3359_v41 = vadd.f32 %v9269_v29, %v3323_v35  ;;  %v3324_v7 = vmul.f32 %v9047_v15, %v3220_v44 }
 0x499   :  { %v3357_v54 = vadd.f32 %v9269_v29, %v3321_v24  ;;  %v3322_v30 = vmul.f32 %v9047_v15, %v3212_v45 }
 0x49a   :  { %v3391_v0 = vmax.f32 %v3359_v41, 0.0  ;;  %v9350_v36 = vadd.f32 %v9269_v29, %v3324_v7  ;;  %v3305_v7 = vld [vmem:[%s10188_s8 + $0x10] sm:$0xff] }
 0x49b   :  { %v3389_v40 = vmax.f32 %v3357_v54, 0.0  ;;  %v3358_v19 = vadd.f32 %v9269_v29, %v3322_v30  ;;  %v3308_v54 = vld [vmem:[%s10188_s8 + $0x28] sm:$0xf] }
 0x49c   :  { %v3392_v62 = vmax.f32 %v9350_v36, 0.0  ;;  %v3423_v58 = vrot.slane %v3391_v0, 1 }
 0x49d   :  { %v3421_v46 = vrot.slane %v3389_v40, 1  ;;  %v3390_v9 = vmax.f32 %v3358_v19, 0.0  ;;  %v5618_v10 = vpop.f32.mrb[44].mxu0  ;;  %v6018_v19 = vld [vmem:[%s10189_s5 + $0x4] ss:$12 sps:$4 sm:$0xff]  }
 0x49e   :  { %v9356_v55 = vrot.slane %v3392_v62, 1  ;;  %v5619_v38 = vpop.f32.mrb[45].mxu0  ;;  %4492 = vmatprep.subr.bf16.mxu1 %v6018_v19 }
 0x49f   :  { %v3488_v43 = vsel %vm931_vm8, %v3420_v17, %v3421_v46  ;;  %v3422_v4 = vrot.slane %v3390_v9, 1  ;;  %v5620_v31 = vadd.f32 %v5619_v38, %v5618_v10  ;;  %v5621_v23 = vpop.f32.mrb[46].mxu0  ;;  %v6019_v10 = vld [vmem:[%s10189_s5 + $0x18] ss:$12 sps:$4 sm:$0xff]   ;;  %v6024_v38 = vld [vmem:[%s10189_s5 + $0x34] ss:$12 sps:$4 sm:$0xff]  }
 0x4a0   :  { %v9360_v42 = vmax.f32 %v3388_v39, %v3488_v43  ;;  %v3455_v8 = vsel %vm931_vm8, %v3423_v58, %v9356_v55  ;;  %v5622_v47 = vpop.f32.mrb[47].mxu0 }
 0x4a1   :  { %v9365_v35 = vmax.f32 %v3391_v0, %v3455_v8  ;;  %v3456_v44 = vsel %vm931_vm8, %v3421_v46, %v3422_v4  ;;  %v3487_v63 = vsel %vm931_vm8, %v3422_v4, %v3423_v58  ;;  %v5623_v24 = vadd.f32 %v5622_v47, %v5621_v23  ;;  %v6016_v0 = vld [vmem:[%s10189_s5] ss:$12 sps:$4 sm:$0xff]  }
 0x4a2   :  { %v3512_v17 = vmax.f32 %v9322_v59, %v9360_v42  ;;  %v9373_v45 = vmax.f32 %v3389_v40, %v3456_v44  ;;  %v9375_v39 = vmax.f32 %v3390_v9, %v3487_v63  ;;  %v9378_v41 = vadd.f32 %v5620_v31, %v9152_v16  ;;  %v3816_v46 = vld [vmem:[%s10190_s1] sm:$0x3]  ;;  %4493 = vmatpush1.bf16.msra.mxu1 %v6016_v0  ;;  %v6027_v31 = vld [vmem:[%s10189_s5 + $0x184] ss:$12 sps:$4 sm:$0xff]  }
 0x4a3   :  { %v9387_v30 = vadd.f32 %v5623_v24, %v9154_v12  ;;  %v3829_v40 = vrot.slane %v3305_v7, 4  ;;  %v3830_v9 = vrot.slane %v3308_v54, 4  ;;  %5260 = vmatmul.mubr.msk.f32.vlgmr.msra.gmra.mrb[68].mxu0 %vm3835_vm9, %v3816_v46  ;;  %v6021_v12 = vld [vmem:[%s10189_s5 + $0x1c] ss:$12 sps:$4 sm:$0xff]   ;;  %v6025_v4 = vld [vmem:[%s10189_s5 + $0x180] ss:$12 sps:$4 sm:$0xff]  }
 0x4a4   :  { %v3513_v16 = vmax.f32 %v9373_v45, %v9375_v39  ;;  %5786 = vmatprep.mubr.msk.f32.mxu0 %vm6314_vm0, %v10896_v56  ;;  %4494 = vmatprep.subr.bf16.mxu1 %v6021_v12  ;;  %v6022_v56 = vld [vmem:[%s10189_s5 + $0x30] ss:$12 sps:$4 sm:$0xff]   ;;  %v6031_v63 = vld [vmem:[%s10189_s5 + $0x198] ss:$12 sps:$4 sm:$0xff]  }
 0x4a5   :  { %v3831_v58 = vsel %vm259_vm5, %v3829_v40, %v3830_v9  ;;  %v6033_v54 = vld [vmem:[%s10189_s5 + $0x19c] ss:$12 sps:$4 sm:$0xff]   ;;  %v6030_v40 = vld [vmem:[%s10189_s5 + $0x4c] ss:$12 sps:$4 sm:$0xff]  }
 0x4a6   :  { %5785 = vmatpush3.msra.mxu0 %v3831_v58  ;;  %4495 = vmatpush1.bf16.msra.mxu1 %v6019_v10 }
 0x4a7   :  { %5787 = vmatmul.mubr.msk.f32.vlgmr.msra.gmra.mrb[70].mxu0 %vm3835_vm9, %v3816_v46  ;;  %4533 = vmatprep.subr.bf16.mxu0 %v6027_v31  ;;  %v6039_v46 = vld [vmem:[%s10189_s5 + $0x1b4] ss:$12 sps:$4 sm:$0xff]   ;;  %v6036_v31 = vld [vmem:[%s10189_s5 + $0x64] ss:$12 sps:$4 sm:$0xff]  }
 0x4a8   :  { %v5766_v43 = vpop.f32.mrb[76].mxu1  ;;  %4534 = vmatpush1.bf16.msra.mxu0 %v6025_v4  ;;  %4496 = vmatprep.subr.bf16.mxu1 %v6024_v38  ;;  %v6037_v38 = vld [vmem:[%s10189_s5 + $0x1b0] ss:$12 sps:$4 sm:$0xff]  }
 0x4a9   :  { %v3233_v23 = vadd.f32 %v5766_v43, %v9242_v57  ;;  %v3224_v8 = vpop.f32.mrb[77].mxu1  ;;  %4535 = vmatprep.subr.bf16.mxu0 %v6033_v54  ;;  %v6042_v54 = vld [vmem:[%s10189_s5 + $0x7c] ss:$12 sps:$4 sm:$0xff]  }
 0x4aa   :  { %v3225_v47 = vadd.f32 %v3224_v8, %v9232_v3  ;;  %v5767_v44 = vpop.f32.mrb[78].mxu1  ;;  %4497 = vmatpush1.bf16.msra.mxu1 %v6022_v56 }
 0x4ab   :  { %v3327_v24 = vmul.f32 %v9047_v15, %v3233_v23  ;;  %v3236_v7 = vadd.f32 %v5767_v44, %v9245_v18  ;;  %v3227_v57 = vpop.f32.mrb[79].mxu1  ;;  %4498 = vmatprep.subr.bf16.mxu1 %v6030_v40  ;;  %v6045_v23 = vld [vmem:[%s10189_s5 + $0x1cc] ss:$12 sps:$4 sm:$0xff]  }
 0x4ac   :  { %v3325_v0 = vmul.f32 %v9047_v15, %v3225_v47  ;;  %v3228_v3 = vadd.f32 %v3227_v57, %v9235_v1  ;;  %v6028_v1 = vld [vmem:[%s10189_s5 + $0x48] ss:$12 sps:$4 sm:$0xff]   ;;  %4536 = vmatpush1.bf16.msra.mxu0 %v6031_v63  ;;  %v6034_v63 = vld [vmem:[%s10189_s5 + $0x60] ss:$12 sps:$4 sm:$0xff]  }
 0x4ad   :  { %v3363_v19 = vadd.f32 %v9269_v29, %v3327_v24  ;;  %v3328_v18 = vmul.f32 %v9047_v15, %v3236_v7  ;;  %4537 = vmatprep.subr.bf16.mxu0 %v6039_v46 }
 0x4ae   :  { %v3361_v9 = vadd.f32 %v9269_v29, %v3325_v0  ;;  %v3326_v12 = vmul.f32 %v9047_v15, %v3228_v3  ;;  %4499 = vmatpush1.bf16.msra.mxu1 %v6028_v1 }
 0x4af   :  { %v3395_v10 = vmax.f32 %v3363_v19, 0.0  ;;  %v9449_v58 = vadd.f32 %v9269_v29, %v3328_v18  ;;  %4500 = vmatprep.subr.bf16.mxu1 %v6036_v31  ;;  %v6043_v18 = vld [vmem:[%s10189_s5 + $0x1c8] ss:$12 sps:$4 sm:$0xff]  }
 0x4b0   :  { %v3393_v43 = vmax.f32 %v3361_v9, 0.0  ;;  %v3362_v4 = vadd.f32 %v9269_v29, %v3326_v12  ;;  %4538 = vmatpush1.bf16.msra.mxu0 %v6037_v38 }
 0x4b1   :  { %v3396_v8 = vmax.f32 %v9449_v58, 0.0  ;;  %v3427_v24 = vrot.slane %v3395_v10, 1  ;;  %4539 = vmatprep.subr.bf16.mxu0 %v6045_v23 }
 0x4b2   :  { %v3425_v56 = vrot.slane %v3393_v43, 1  ;;  %v3394_v47 = vmax.f32 %v3362_v4, 0.0  ;;  %v5624_v44 = vpop.f32.mrb[48].mxu0  ;;  %4501 = vmatpush1.bf16.msra.mxu1 %v6034_v63  ;;  %v6054_v63 = vld [vmem:[%s10189_s5 + $0xac] ss:$12 sps:$4 sm:$0xff]  }
 0x4b3   :  { %v9467_v7 = vrot.slane %v3396_v8, 1  ;;  %v5625_v57 = vpop.f32.mrb[49].mxu0  ;;  %4502 = vmatprep.subr.bf16.mxu1 %v6042_v54 }
 0x4b4   :  { %v3486_v0 = vsel %vm931_vm8, %v9356_v55, %v3425_v56  ;;  %v3426_v3 = vrot.slane %v3394_v47, 1  ;;  %v5626_v40 = vadd.f32 %v5625_v57, %v5624_v44  ;;  %v5627_v19 = vpop.f32.mrb[50].mxu0  ;;  %v6051_v55 = vld [vmem:[%s10189_s5 + $0x1e4] ss:$12 sps:$4 sm:$0xff]   ;;  %4540 = vmatpush1.bf16.msra.mxu0 %v6043_v18 }
 0x4b5   :  { %v9480_v46 = vmax.f32 %v3392_v62, %v3486_v0  ;;  %v3453_v9 = vsel %vm931_vm8, %v3427_v24, %v9467_v7  ;;  %v5628_v12 = vpop.f32.mrb[51].mxu0  ;;  %4541 = vmatprep.subr.bf16.mxu0 %v6051_v55  ;;  %v6055_v57 = vld [vmem:[%s10189_s5 + $0x1f8] ss:$12 sps:$4 sm:$0xff]   ;;  %v6063_v0 = vld [vmem:[%s10189_s5 + $0x214] ss:$12 sps:$4 sm:$0xff]  }
 0x4b6   :  { %v9488_v1 = vmax.f32 %v3395_v10, %v3453_v9  ;;  %v3454_v38 = vsel %vm931_vm8, %v3425_v56, %v3426_v3  ;;  %v3485_v4 = vsel %vm931_vm8, %v3426_v3, %v3427_v24  ;;  %v5629_v36 = vadd.f32 %v5628_v12, %v5627_v19  ;;  %v6040_v10 = vld [vmem:[%s10189_s5 + $0x78] ss:$12 sps:$4 sm:$0xff]   ;;  %v6048_v56 = vld [vmem:[%s10189_s5 + $0x94] ss:$12 sps:$4 sm:$0xff]  }
 0x4b7   :  { %v9496_v31 = vmax.f32 %v3393_v43, %v3454_v38  ;;  %v9498_v23 = vmax.f32 %v3394_v47, %v3485_v4  ;;  %v9501_v44 = vadd.f32 %v5626_v40, %v9161_v22  ;;  %v6049_v43 = vld [vmem:[%s10189_s5 + $0x1e0] ss:$12 sps:$4 sm:$0xff]   ;;  %v6057_v47 = vld [vmem:[%s10189_s5 + $0x1fc] ss:$12 sps:$4 sm:$0xff]   ;;  %4503 = vmatpush1.bf16.msra.mxu1 %v6040_v10  ;;  %v6060_v12 = vld [vmem:[%s10189_s5 + $0xc4] ss:$12 sps:$4 sm:$0xff]  }
 0x4b8   :  { %v9510_v24 = vadd.f32 %v5629_v36, %v9168_v60  ;;  %v6046_v60 = vld [vmem:[%s10189_s5 + $0x90] ss:$12 sps:$4 sm:$0xff]   ;;  %4504 = vmatprep.subr.bf16.mxu1 %v6048_v56  ;;  %4542 = vmatpush1.bf16.msra.mxu0 %v6049_v43  ;;  %v6052_v9 = vld [vmem:[%s10189_s5 + $0xa8] ss:$12 sps:$4 sm:$0xff]   ;;  %v6069_v10 = vld [vmem:[%s10189_s5 + $0x22c] ss:$12 sps:$4 sm:$0xff]  }
 0x4b9   :  { %4543 = vmatprep.subr.bf16.mxu0 %v6057_v47 }
 0x4bb   :  { %4505 = vmatpush1.bf16.msra.mxu1 %v6046_v60  ;;  %v6058_v60 = vld [vmem:[%s10189_s5 + $0xc0] ss:$12 sps:$4 sm:$0xff]  }
 0x4bc   :  { %4506 = vmatprep.subr.bf16.mxu1 %v6054_v63  ;;  %4544 = vmatpush1.bf16.msra.mxu0 %v6055_v57 }
 0x4bd   :  { %v5770_v54 = vpop.f32.mrb[80].mxu1  ;;  %4545 = vmatprep.subr.bf16.mxu0 %v6063_v0 }
 0x4be   :  { %v3249_v3 = vadd.f32 %v5770_v54, %v9320_v11  ;;  %v3240_v40 = vpop.f32.mrb[81].mxu1  ;;  %v6067_v54 = vld [vmem:[%s10189_s5 + $0x228] ss:$12 sps:$4 sm:$0xff]  }
 0x4bf   :  { %v3241_v19 = vadd.f32 %v3240_v40, %v9265_v51  ;;  %v5771_v18 = vpop.f32.mrb[82].mxu1  ;;  %v6061_v51 = vld [vmem:[%s10189_s5 + $0x210] ss:$12 sps:$4 sm:$0xff]   ;;  %4507 = vmatpush1.bf16.msra.mxu1 %v6052_v9  ;;  %v6072_v9 = vld [vmem:[%s10189_s5 + $0xf4] ss:$12 sps:$4 sm:$0xff]  }
 0x4c0   :  { %v3331_v55 = vmul.f32 %v9047_v15, %v3249_v3  ;;  %v3252_v38 = vadd.f32 %v5771_v18, %v9335_v14  ;;  %v3243_v4 = vpop.f32.mrb[83].mxu1  ;;  %4508 = vmatprep.subr.bf16.mxu1 %v6060_v12  ;;  %4546 = vmatpush1.bf16.msra.mxu0 %v6061_v51  ;;  %v6075_v40 = vld [vmem:[%s10189_s5 + $0x244] ss:$12 sps:$4 sm:$0xff]  }
 0x4c1   :  { %v3329_v11 = vmul.f32 %v9047_v15, %v3241_v19  ;;  %v3244_v36 = vadd.f32 %v3243_v4, %v9272_v20  ;;  %v6066_v20 = vld [vmem:[%s10189_s5 + $0xdc] ss:$12 sps:$4 sm:$0xff]   ;;  %4547 = vmatprep.subr.bf16.mxu0 %v6069_v10  ;;  %v6064_v18 = vld [vmem:[%s10189_s5 + $0xd8] ss:$12 sps:$4 sm:$0xff]   ;;  %v6073_v4 = vld [vmem:[%s10189_s5 + $0x240] ss:$12 sps:$4 sm:$0xff]  }
 0x4c2   :  { %v3367_v56 = vadd.f32 %v9269_v29, %v3331_v55  ;;  %v3332_v14 = vmul.f32 %v9047_v15, %v3252_v38  ;;  %v6081_v10 = vld [vmem:[%s10189_s5 + $0x25c] ss:$12 sps:$4 sm:$0xff]  }
 0x4c3   :  { %v3365_v43 = vadd.f32 %v9269_v29, %v3329_v11  ;;  %v3330_v47 = vmul.f32 %v9047_v15, %v3244_v36  ;;  %4509 = vmatpush1.bf16.msra.mxu1 %v6058_v60  ;;  %v6070_v60 = vld [vmem:[%s10189_s5 + $0xf0] ss:$12 sps:$4 sm:$0xff]  }
 0x4c4   :  { %v3399_v63 = vmax.f32 %v3367_v56, 0.0  ;;  %v9561_v57 = vadd.f32 %v9269_v29, %v3332_v14  ;;  %4510 = vmatprep.subr.bf16.mxu1 %v6066_v20  ;;  %4548 = vmatpush1.bf16.msra.mxu0 %v6067_v54 }
 0x4c5   :  { %v3397_v0 = vmax.f32 %v3365_v43, 0.0  ;;  %v3366_v3 = vadd.f32 %v9269_v29, %v3330_v47  ;;  %4549 = vmatprep.subr.bf16.mxu0 %v6075_v40 }
 0x4c6   :  { %v3400_v19 = vmax.f32 %v9561_v57, 0.0  ;;  %v3431_v51 = vrot.slane %v3399_v63, 1 }
 0x4c7   :  { %v3429_v12 = vrot.slane %v3397_v0, 1  ;;  %v3398_v55 = vmax.f32 %v3366_v3, 0.0  ;;  %v5630_v38 = vpop.f32.mrb[52].mxu0  ;;  %4511 = vmatpush1.bf16.msra.mxu1 %v6064_v18  ;;  %v6076_v18 = vld [vmem:[%s10189_s5 + $0x108] ss:$12 sps:$4 sm:$0xff]  }
 0x4c8   :  { %v9582_v11 = vrot.slane %v3400_v19, 1  ;;  %v5631_v36 = vpop.f32.mrb[53].mxu0  ;;  %4512 = vmatprep.subr.bf16.mxu1 %v6072_v9  ;;  %4550 = vmatpush1.bf16.msra.mxu0 %v6073_v4  ;;  %v6090_v9 = vld [vmem:[%s10189_s5 + $0x13c] ss:$12 sps:$4 sm:$0xff]  }
 0x4c9   :  { %v3484_v56 = vsel %vm931_vm8, %v9467_v7, %v3429_v12  ;;  %v3430_v14 = vrot.slane %v3398_v55, 1  ;;  %v5632_v43 = vadd.f32 %v5631_v36, %v5630_v38  ;;  %v5633_v47 = vpop.f32.mrb[54].mxu0  ;;  %v6078_v7 = vld [vmem:[%s10189_s5 + $0x10c] ss:$12 sps:$4 sm:$0xff]   ;;  %4551 = vmatprep.subr.bf16.mxu0 %v6081_v10  ;;  %v6091_v10 = vld [vmem:[%s10189_s5 + $0x288] ss:$12 sps:$4 sm:$0xff]  }
 0x4ca   :  { %v9595_v20 = vmax.f32 %v3396_v8, %v3484_v56  ;;  %v3451_v54 = vsel %vm931_vm8, %v3431_v51, %v9582_v11  ;;  %v5634_v3 = vpop.f32.mrb[55].mxu0  ;;  %v6079_v8 = vld [vmem:[%s10189_s5 + $0x258] ss:$12 sps:$4 sm:$0xff]  }
 0x4cb   :  { %v9603_v38 = vmax.f32 %v3399_v63, %v3451_v54  ;;  %v3452_v36 = vsel %vm931_vm8, %v3429_v12, %v3430_v14  ;;  %v3483_v40 = vsel %vm931_vm8, %v3430_v14, %v3431_v51  ;;  %v5635_v58 = vadd.f32 %v5634_v3, %v5633_v47  ;;  %v6087_v12 = vld [vmem:[%s10189_s5 + $0x274] ss:$12 sps:$4 sm:$0xff]   ;;  %4513 = vmatpush1.bf16.msra.mxu1 %v6070_v60 }
 0x4cc   :  { %v3516_v56 = vmax.f32 %v9488_v1, %v9595_v20  ;;  %v3469_v22 = vmax.f32 %v3397_v0, %v3452_v36  ;;  %v3501_v62 = vmax.f32 %v3398_v55, %v3483_v40  ;;  %v9615_v63 = vadd.f32 %v5632_v43, %v9178_v48  ;;  %v6084_v48 = vld [vmem:[%s10189_s5 + $0x124] ss:$12 sps:$4 sm:$0xff]   ;;  %4514 = vmatprep.subr.bf16.mxu1 %v6078_v7  ;;  %v6093_v55 = vld [vmem:[%s10189_s5 + $0x28c] ss:$12 sps:$4 sm:$0xff]  }
 0x4cd   :  { %v9621_v51 = vadd.f32 %v5635_v58, %v9184_v49  ;;  %v6085_v0 = vld [vmem:[%s10189_s5 + $0x270] ss:$12 sps:$4 sm:$0xff]   ;;  %4552 = vmatpush1.bf16.msra.mxu0 %v6079_v8 }
 0x4ce   :  { %v3517_v14 = vmax.f32 %v3469_v22, %v3501_v62  ;;  %v6082_v62 = vld [vmem:[%s10189_s5 + $0x120] ss:$12 sps:$4 sm:$0xff]   ;;  %4553 = vmatprep.subr.bf16.mxu0 %v6087_v12 }
 0x4cf   :  { %4515 = vmatpush1.bf16.msra.mxu1 %v6076_v18 }
 0x4d0   :  { %v9635_v49 = vsub.f32 %v3509_v5, %v3517_v14  ;;  %4516 = vmatprep.subr.bf16.mxu1 %v6084_v48 }
 0x4d1   :  { %4554 = vmatpush1.bf16.msra.mxu0 %v6085_v0 }
 0x4d2   :  { %v5774_v22 = vpop.f32.mrb[84].mxu1  ;;  %4555 = vmatprep.subr.bf16.mxu0 %v6093_v55 }
 0x4d3   :  { %v3265_v32 = vadd.f32 %v5774_v22, %v9501_v44  ;;  %v3256_v61 = vpop.f32.mrb[85].mxu1  ;;  %v6088_v44 = vld [vmem:[%s10189_s5 + $0x138] ss:$12 sps:$4 sm:$0xff]   ;;  %4517 = vmatpush1.bf16.msra.mxu1 %v6082_v62 }
 0x4d4   :  { %v3257_v5 = vadd.f32 %v3256_v61, %v9378_v41  ;;  %v5775_v4 = vpop.f32.mrb[86].mxu1  ;;  %4518 = vmatprep.subr.bf16.mxu1 %v6090_v9 }
 0x4d5   :  { %v3335_v43 = vmul.f32 %v9047_v15, %v3265_v32  ;;  %v3268_v47 = vadd.f32 %v5775_v4, %v9510_v24  ;;  %v3259_v60 = vpop.f32.mrb[87].mxu1  ;;  %4556 = vmatpush1.bf16.msra.mxu0 %v6091_v10 }
 0x4d6   :  { %v3333_v54 = vmul.f32 %v9047_v15, %v3257_v5  ;;  %v3260_v41 = vadd.f32 %v3259_v60, %v9387_v30 }
 0x4d7   :  { %v3371_v3 = vadd.f32 %v9269_v29, %v3335_v43  ;;  %v3336_v7 = vmul.f32 %v9047_v15, %v3268_v47  ;;  %4519 = vmatpush1.bf16.msra.mxu1 %v6088_v44 }
 0x4d8   :  { %v3369_v36 = vadd.f32 %v9269_v29, %v3333_v54  ;;  %v3334_v24 = vmul.f32 %v9047_v15, %v3260_v41 }
 0x4d9   :  { %v3403_v40 = vmax.f32 %v3371_v3, 0.0  ;;  %v3372_v58 = vadd.f32 %v9269_v29, %v3336_v7 }
 0x4da   :  { %v3401_v8 = vmax.f32 %v3369_v36, 0.0  ;;  %v3370_v12 = vadd.f32 %v9269_v29, %v3334_v24 }
 0x4db   :  { %v3404_v18 = vmax.f32 %v3372_v58, 0.0  ;;  %v3435_v30 = vrot.slane %v3403_v40, 1 }
 0x4dc   :  { %v3433_v14 = vrot.slane %v3401_v8, 1  ;;  %v3402_v48 = vmax.f32 %v3370_v12, 0.0  ;;  %v5636_v0 = vpop.f32.mrb[56].mxu0 }
 0x4dd   :  { %v3436_v22 = vrot.slane %v3404_v18, 1  ;;  %v5637_v62 = vpop.f32.mrb[57].mxu0 }
 0x4de   :  { %v3482_v55 = vsel %vm931_vm8, %v9582_v11, %v3433_v14  ;;  %v3434_v9 = vrot.slane %v3402_v48, 1  ;;  %v5638_v32 = vadd.f32 %v5637_v62, %v5636_v0  ;;  %v5639_v61 = vpop.f32.mrb[58].mxu0 }
 0x4df   :  { %v3502_v5 = vmax.f32 %v3400_v19, %v3482_v55  ;;  %v3449_v4 = vsel %vm931_vm8, %v3435_v30, %v3436_v22  ;;  %v5640_v10 = vpop.f32.mrb[59].mxu0 }
 0x4e0   :  { %v3472_v43 = vmax.f32 %v3403_v40, %v3449_v4  ;;  %v3450_v47 = vsel %vm931_vm8, %v3433_v14, %v3434_v9  ;;  %v3481_v60 = vsel %vm931_vm8, %v3434_v9, %v3435_v30  ;;  %v5641_v44 = vadd.f32 %v5640_v10, %v5639_v61 }
 0x4e1   :  { %v3518_v11 = vmax.f32 %v9603_v38, %v3502_v5  ;;  %v3471_v54 = vmax.f32 %v3401_v8, %v3450_v47  ;;  %v3503_v41 = vmax.f32 %v3402_v48, %v3481_v60  ;;  %v3120_v3 = vadd.f32 %v5638_v32, %v9215_v52 }
 0x4e2   :  { %v3123_v57 = vadd.f32 %v5641_v44, %v9220_v50 }
 0x4e3   :  { %v9681_v19 = vsub.f32 %v3510_v53, %v3518_v11  ;;  %v3519_v7 = vmax.f32 %v3471_v54, %v3503_v41 }
 0x4e5   :  { %v9686_v36 = vsub.f32 %v3511_v26, %v3519_v7 }
 0x4e7   :  { %v5778_v24 = vpop.f32.mrb[88].mxu1 }
 0x4e8   :  { %v3281_v40 = vadd.f32 %v5778_v24, %v3120_v3  ;;  %v3272_v38 = vpop.f32.mrb[89].mxu1 }
 0x4e9   :  { %v3273_v58 = vadd.f32 %v3272_v38, %v9615_v63  ;;  %v5779_v8 = vpop.f32.mrb[90].mxu1 }
 0x4ea   :  { %v3339_v52 = vmul.f32 %v9047_v15, %v3281_v40  ;;  %v3284_v50 = vadd.f32 %v5779_v8, %v3123_v57  ;;  %v3275_v12 = vpop.f32.mrb[91].mxu1  ;;  %v3533_v8 = vand.u32 2147483647, %v9635_v49 }
 0x4eb   :  { %v3337_v21 = vmul.f32 %v9047_v15, %v3273_v58  ;;  %v3276_v28 = vadd.f32 %v3275_v12, %v9621_v51 }
 0x4ec   :  { %v3375_v53 = vadd.f32 %v9269_v29, %v3339_v52  ;;  %v3340_v25 = vmul.f32 %v9047_v15, %v3284_v50 }
 0x4ed   :  { %v3373_v37 = vadd.f32 %v9269_v29, %v3337_v21  ;;  %v3338_v26 = vmul.f32 %v9047_v15, %v3276_v28  ;;  %v3552_v21 = vrot.slane %v3533_v8, 4 }
 0x4ee   :  { %v3407_v30 = vmax.f32 %v3375_v53, 0.0  ;;  %v9697_v63 = vadd.f32 %v9269_v29, %v3340_v25 }
 0x4ef   :  { %v3405_v14 = vmax.f32 %v3373_v37, 0.0  ;;  %v3374_v48 = vadd.f32 %v9269_v29, %v3338_v26  ;;  %v3547_v37 = vrot.slane %v3533_v8, 2  ;;  %v3557_v26 = vrot.slane %v3533_v8, 6 }
 0x4f0   :  { %v3408_v0 = vmax.f32 %v9697_v63, 0.0  ;;  %v3439_v9 = vrot.slane %v3407_v30, 1  ;;  %v6096_v63 = vld [vmem:[%s10189_s5 + $0x154] ss:$12 sps:$4 sm:$0xff]  }
 0x4f1   :  { %v3437_v62 = vrot.slane %v3405_v14, 1  ;;  %v3406_v55 = vmax.f32 %v3374_v48, 0.0  ;;  %v5642_v51 = vpop.f32.mrb[60].mxu0  ;;  %4520 = vmatprep.subr.bf16.mxu1 %v6096_v63  ;;  %v6111_v63 = vld [vmem:[%s10189_s5 + $0x2e8] ss:$12 sps:$4 sm:$0xff]  }
 0x4f2   :  { %v3440_v32 = vrot.slane %v3408_v0, 1  ;;  %v5643_v61 = vpop.f32.mrb[61].mxu0 }
 0x4f3   :  { %v3480_v5 = vsel %vm931_vm8, %v3436_v22, %v3437_v62  ;;  %v3438_v4 = vrot.slane %v3406_v55, 1  ;;  %v5644_v10 = vadd.f32 %v5643_v61, %v5642_v51  ;;  %v5645_v47 = vpop.f32.mrb[62].mxu0 }
 0x4f4   :  { %v3504_v60 = vmax.f32 %v3404_v18, %v3480_v5  ;;  %v3447_v44 = vsel %vm931_vm8, %v3439_v9, %v3440_v32  ;;  %v5646_v11 = vpop.f32.mrb[63].mxu0 }
 0x4f5   :  { %v9707_v54 = vmax.f32 %v3407_v30, %v3447_v44  ;;  %v3448_v41 = vsel %vm931_vm8, %v3437_v62, %v3438_v4  ;;  %v3479_v3 = vsel %vm931_vm8, %v3438_v4, %v3439_v9  ;;  %v5647_v57 = vadd.f32 %v5646_v11, %v5645_v47 }
 0x4f6   :  { %v3520_v7 = vmax.f32 %v3472_v43, %v3504_v60  ;;  %v3473_v24 = vmax.f32 %v3405_v14, %v3448_v41  ;;  %v3505_v22 = vmax.f32 %v3406_v55, %v3479_v3  ;;  %v3128_v40 = vadd.f32 %v5644_v10, %v9237_v2 }
 0x4f7   :  { %v3131_v18 = vadd.f32 %v5647_v57, %v9239_v34 }
 0x4f8   :  { %v9718_v38 = vsub.f32 %v3512_v17, %v3520_v7  ;;  %v3521_v58 = vmax.f32 %v3473_v24, %v3505_v22 }
 0x4fa   :  { %v3529_v52 = vsub.f32 %v3513_v16, %v3521_v58 }
 0x4fc   :  { %v3537_v50 = vand.u32 2147483647, %v3529_v52  ;;  %v5782_v43 = vpop.f32.mrb[92].mxu1 }
 0x4fd   :  { %v3288_v12 = vpop.f32.mrb[93].mxu1 }
 0x4fe   :  { %v3289_v2 = vadd.f32 %v3288_v12, %v3128_v40  ;;  %v5648_v28 = vpop.f32.mrb[64].mxu0  ;;  %v5783_v34 = vpop.f32.mrb[94].mxu1  ;;  %v3554_v53 = vrot.slane %v3537_v50, 3  ;;  %v3549_v25 = vrot.slane %v3537_v50, 1  ;;  %v3559_v59 = vrot.slane %v3537_v50, 5 }
 0x4ff   :  { %v5649_v42 = vpop.f32.mrb[65].mxu0  ;;  %v3291_v17 = vpop.f32.mrb[95].mxu1  ;;  %v3542_v49 = vrot.slane %v3537_v50, 7 }
 0x500   :  { %v3341_v30 = vmul.f32 %v9047_v15, %v3289_v2  ;;  %v5650_v45 = vadd.f32 %v5649_v42, %v5648_v28  ;;  %v3292_v39 = vadd.f32 %v3291_v17, %v3131_v18  ;;  %v5651_v16 = vpop.f32.mrb[66].mxu0  ;;  %v9726_v14 = vsel %vm3544_vm10, %v3552_v21, %v3554_v53 }
 0x501   :  { %v5652_v48 = vpop.f32.mrb[67].mxu0  ;;  %v9729_v62 = vsel %vm3544_vm10, %v3547_v37, %v3549_v25  ;;  %v9732_v55 = vsel %vm3544_vm10, %v3557_v26, %v3559_v59  ;;  %v9735_v51 = vsel %vm3544_vm10, %v3533_v8, %v3542_v49  ;;  %v3534_v8 = vand.u32 2147483647, %v9681_v19  ;;  %v6099_v19 = vld [vmem:[%s10189_s5 + $0x2a4] ss:$12 sps:$4 sm:$0xff]  }
 0x502   :  { %v3377_v9 = vadd.f32 %v9269_v29, %v3341_v30  ;;  %v3136_v61 = vadd.f32 %v5650_v45, %v9260_v27  ;;  %v3342_v5 = vmul.f32 %v9047_v15, %v3292_v39  ;;  %v5653_v4 = vadd.f32 %v5652_v48, %v5651_v16  ;;  %4557 = vmatprep.subr.bf16.mxu0 %v6099_v19  ;;  %v6102_v26 = vld [vmem:[%s10189_s5 + $0x16c] ss:$12 sps:$4 sm:$0xff]  }
 0x503   :  { %v9772_v2 = vand.u32 2147483647, %v9686_v36  ;;  %v3572_v53 = vrot.slane %v3534_v8, 4  ;;  %v3567_v25 = vrot.slane %v3534_v8, 2  ;;  %v6100_v36 = vld [vmem:[%s10189_s5 + $0x168] ss:$12 sps:$4 sm:$0xff]   ;;  %v10898_v48 = vmax.f32 %v9496_v31, %v9498_v23 }
 0x504   :  { %v3409_v10 = vmax.f32 %v3377_v9, 0.0  ;;  %v3297_v47 = vadd.f32 %v5782_v43, %v3136_v61  ;;  %v3378_v60 = vadd.f32 %v9269_v29, %v3342_v5  ;;  %v3139_v44 = vadd.f32 %v5653_v4, %v9262_v13  ;;  %v6105_v4 = vld [vmem:[%s10189_s5 + $0x2bc] ss:$12 sps:$4 sm:$0xff]   ;;  %v6108_v31 = vld [vmem:[%s10189_s5 + $0x2d4] ss:$12 sps:$4 sm:$0xff]  }
 0x505   :  { %v3577_v30 = vrot.slane %v3534_v8, 6  ;;  %v3536_v16 = vand.u32 2147483647, %v9718_v38  ;;  %v6109_v23 = vld [vmem:[%s10189_s5 + $0xc8] ss:$12 sps:$4 sm:$0xff]  }
 0x506   :  { %v3441_v11 = vrot.slane %v3409_v10, 1  ;;  %v3343_v41 = vmul.f32 %v9047_v15, %v3297_v47  ;;  %v3410_v3 = vmax.f32 %v3378_v60, 0.0  ;;  %v3300_v57 = vadd.f32 %v5783_v34, %v3139_v44 }
 0x508   :  { %v3478_v7 = vsel %vm931_vm8, %v3440_v32, %v3441_v11  ;;  %v3379_v24 = vadd.f32 %v9269_v29, %v3343_v41  ;;  %v3442_v27 = vrot.slane %v3410_v3, 1  ;;  %v3344_v22 = vmul.f32 %v9047_v15, %v3300_v57  ;;  %v6094_v15 = vld [vmem:[%s10189_s5 + $0x150] ss:$12 sps:$4 sm:$0xff]  }
 0x509   :  { %v3506_v40 = vmax.f32 %v3408_v0, %v3478_v7  ;;  %v10897_v0 = vmax.f32 %v9365_v35, %v9480_v46  ;;  %4521 = vmatpush1.bf16.msra.mxu1 %v6094_v15  ;;  %v3592_v57 = vrot.slane %v9772_v2, 4  ;;  %v3597_v7 = vrot.slane %v9772_v2, 6 }
 0x50a   :  { %v3411_v18 = vmax.f32 %v3379_v24, 0.0  ;;  %v3446_v13 = vsel %vm931_vm8, %v3441_v11, %v3442_v27  ;;  %v3380_v58 = vadd.f32 %v9269_v29, %v3344_v22  ;;  %v6097_v29 = vld [vmem:[%s10189_s5 + $0x2a0] ss:$12 sps:$4 sm:$0xff]   ;;  %4522 = vmatprep.subr.bf16.mxu1 %v6102_v26  ;;  %v6106_v24 = vld [vmem:[%s10189_s5 + $0x2d0] ss:$12 sps:$4 sm:$0xff]   ;;  %v3617_v22 = vrot.slane %v3536_v16, 6 }
 0x50b   :  { %v3522_v52 = vmax.f32 %v9707_v54, %v3506_v40  ;;  %v3475_v50 = vmax.f32 %v3409_v10, %v3446_v13  ;;  %4558 = vmatpush1.bf16.msra.mxu0 %v6097_v29  ;;  %v6117_v29 = vld [vmem:[%s10189_s5 + $0x248] ss:$12 sps:$4 sm:$0xff]  }
 0x50c   :  { %v3443_v32 = vrot.slane %v3411_v18, 1  ;;  %v3412_v43 = vmax.f32 %v3380_v58, 0.0  ;;  %4559 = vmatprep.subr.bf16.mxu0 %v6105_v4 }
 0x50d   :  { %v3530_v12 = vsub.f32 %v10897_v0, %v3522_v52  ;;  %4523 = vmatpush1.bf16.msra.mxu1 %v6100_v36 }
 0x50e   :  { %v3477_v54 = vsel %vm931_vm8, %v3442_v27, %v3443_v32  ;;  %v3444_v21 = vrot.slane %v3412_v43, 1  ;;  %v3612_v27 = vrot.slane %v3536_v16, 4  ;;  %5676 = vmatprep.subr.bf16.mxu1 %v6109_v23  ;;  %v6114_v23 = vld [vmem:[%s10189_s5 + $0xe0] ss:$12 sps:$4 sm:$0xff]  }
 0x50f   :  { %v3538_v28 = vand.u32 2147483647, %v3530_v12  ;;  %v3507_v34 = vmax.f32 %v3410_v3, %v3477_v54  ;;  %v3587_v3 = vrot.slane %v9772_v2, 2 }
 0x510   :  { %v3445_v35 = vsel %vm931_vm8, %v3443_v32, %v3444_v21  ;;  %v3492_v46 = vsel %vm931_vm8, %v3444_v21, %v9290_v6  ;;  %v6103_v6 = vld [vmem:[%s10189_s5 + $0x2b8] ss:$12 sps:$4 sm:$0xff]  }
 0x511   :  { %v3523_v59 = vmax.f32 %v3475_v50, %v3507_v34  ;;  %v3476_v42 = vmax.f32 %v3411_v18, %v3445_v35  ;;  %v3508_v17 = vmax.f32 %v3412_v43, %v3492_v46  ;;  %v3574_v37 = vrot.slane %v3538_v28, 3  ;;  %4560 = vmatpush1.bf16.msra.mxu0 %v6103_v6  ;;  %v6113_v18 = vld [vmem:[%s10189_s5 + $0x2ec] ss:$12 sps:$4 sm:$0xff]  }
 0x512   :  { %v3569_v49 = vrot.slane %v3538_v28, 1  ;;  %v3579_v45 = vrot.slane %v3538_v28, 5  ;;  %v3563_v39 = vrot.slane %v3538_v28, 7  ;;  %4561 = vmatprep.subr.bf16.mxu0 %v6108_v31 }
 0x513   :  { %v3531_v9 = vsub.f32 %v10898_v48, %v3523_v59  ;;  %v3524_v61 = vmax.f32 %v3476_v42, %v3508_v17  ;;  %v3576_v5 = vsel %vm3544_vm10, %v3572_v53, %v3574_v37 }
 0x514   :  { %v5955_v10 = vpack.i.bf16 %v9726_v14, %v3576_v5  ;;  %v3571_v47 = vsel %vm3544_vm10, %v3567_v25, %v3569_v49  ;;  %v3581_v60 = vsel %vm3544_vm10, %v3577_v30, %v3579_v45  ;;  %v9800_v38 = vsel %vm3544_vm10, %v3534_v8, %v3563_v39 }
 0x515   :  { %v3539_v44 = vand.u32 2147483647, %v3531_v9  ;;  %v3532_v14 = vsub.f32 %v3516_v56, %v3524_v61  ;;  %v5950_v11 = vpack.i.bf16 %v9729_v62, %v3571_v47  ;;  %v5960_v41 = vpack.i.bf16 %v9732_v55, %v3581_v60  ;;  %4562 = vmatpush1.bf16.msra.mxu0 %v6106_v24  ;;  %v6110_v60 = vld [vmem:[%s10189_s5 + $0x8] ss:$12 sps:$4 sm:$0xff]  }
 0x516   :  { %5956 = vrot.lane.b32.xlu1 %v5955_v10, %s6323_s14  ;;  %v3607_v55 = vrot.slane %v3536_v16, 2  ;;  %4563 = vmatprep.subr.bf16.mxu0 %v6113_v18  ;;  %v6120_v18 = vld [vmem:[%s10189_s5 + $0x110] ss:$12 sps:$4 sm:$0xff]  }
 0x517   :  { %v3540_v1 = vand.u32 2147483647, %v3532_v14  ;;  %5951 = vrot.lane.b32.xlu0 %v5950_v11, %s6326_s4  ;;  %v3589_v20 = vrot.slane %v3539_v44, 1  ;;  %v3594_v56 = vrot.slane %v3539_v44, 3  ;;  %v3599_v62 = vrot.slane %v3539_v44, 5 }
 0x518   :  { %v3583_v40 = vrot.slane %v3539_v44, 7 }
 0x519   :  { %v3591_v13 = vsel %vm3544_vm10, %v3587_v3, %v3589_v20  ;;  %v3609_v58 = vrot.slane %v3540_v1, 1  ;;  %v3596_v8 = vsel %vm3544_vm10, %v3592_v57, %v3594_v56  ;;  %v3614_v52 = vrot.slane %v3540_v1, 3  ;;  %4564 = vmatpush1.bf16.msra.mxu0 %v6111_v63  ;;  %v6115_v57 = vld [vmem:[%s10189_s5 + $0x20] ss:$12 sps:$4 sm:$0xff]   ;;  %v6131_v63 = vld [vmem:[%s10189_s5 + $0x1d0] ss:$12 sps:$4 sm:$0xff]  }
 0x51a   :  { %v3601_v50 = vsel %vm3544_vm10, %v3597_v7, %v3599_v62  ;;  %v3619_v32 = vrot.slane %v3540_v1, 5  ;;  %v3585_v43 = vsel %vm3544_vm10, %v9772_v2, %v3583_v40  ;;  %v3603_v15 = vrot.slane %v3540_v1, 7  ;;  %5698 = vmatprep.subr.bf16.mxu0 %v6117_v29  ;;  %v6116_v1 = vld [vmem:[%s10189_s5 + $0xf8] ss:$12 sps:$4 sm:$0xff]   ;;  %v6121_v40 = vld [vmem:[%s10189_s5 + $0x260] ss:$12 sps:$4 sm:$0xff]  }
 0x51b   :  { %5961 = vrot.lane.b32.xlu0 %v5960_v41, %s6325_s20  ;;  %v3611_v0 = vsel %vm3544_vm10, %v3607_v55, %v3609_v58  ;;  %v3616_v12 = vsel %vm3544_vm10, %v3612_v27, %v3614_v52  ;;  %v6119_v27 = vld [vmem:[%s10189_s5 + $0x188] ss:$12 sps:$4 sm:$0xff]   ;;  %v6122_v58 = vld [vmem:[%s10189_s5 + $0x50] ss:$12 sps:$4 sm:$0xff]   ;;  %v6132_v29 = vld [vmem:[%s10189_s5 + $0x158] ss:$12 sps:$4 sm:$0xff]  }
 0x51c   :  { %v5965_v19 = vpack.i.bf16 %v3591_v13, %v3611_v0  ;;  %v5970_v54 = vpack.i.bf16 %v3596_v8, %v3616_v12  ;;  %v3621_v21 = vsel %vm3544_vm10, %v3617_v22, %v3619_v32  ;;  %v3605_v2 = vsel %vm3544_vm10, %v3536_v16, %v3603_v15  ;;  %v6118_v22 = vld [vmem:[%s10189_s5 + $0x38] ss:$12 sps:$4 sm:$0xff]   ;;  %v6123_v13 = vld [vmem:[%s10189_s5 + $0x1a0] ss:$12 sps:$4 sm:$0xff]   ;;  %v6124_v52 = vld [vmem:[%s10189_s5 + $0x128] ss:$12 sps:$4 sm:$0xff]  }
 0x51d   :  { %v5975_v28 = vpack.i.bf16 %v3601_v50, %v3621_v21  ;;  %v6125_v8 = vld [vmem:[%s10189_s5 + $0x278] ss:$12 sps:$4 sm:$0xff]   ;;  %v6126_v32 = vld [vmem:[%s10189_s5 + $0x68] ss:$12 sps:$4 sm:$0xff]   ;;  %v6128_v15 = vld [vmem:[%s10189_s5 + $0x140] ss:$12 sps:$4 sm:$0xff]  }
 0x51e   :  { %5966 = vrot.lane.b32.xlu1 %v5965_v19, %s6326_s4  ;;  %v6127_v50 = vld [vmem:[%s10189_s5 + $0x1b8] ss:$12 sps:$4 sm:$0xff]   ;;  %v6130_v0 = vld [vmem:[%s10189_s5 + $0x80] ss:$12 sps:$4 sm:$0xff]   ;;  %v6133_v12 = vld [vmem:[%s10189_s5 + $0x2a8] ss:$12 sps:$4 sm:$0xff]  }
 0x51f   :  { %5971 = vrot.lane.b32.xlu0 %v5970_v54, %s6323_s14  ;;  %v6135_v19 = vld [vmem:[%s10189_s5 + $0x1e8] ss:$12 sps:$4 sm:$0xff]   ;;  %v6134_v54 = vld [vmem:[%s10189_s5 + $0x98] ss:$12 sps:$4 sm:$0xff]   ;;  %v6137_v21 = vld [vmem:[%s10189_s5 + $0x2c0] ss:$12 sps:$4 sm:$0xff]  }
 0x522   :  { %5976 = vrot.lane.b32.xlu1 %v5975_v28, %s6325_s20  ;;  %v6139_v28 = vld [vmem:[%s10189_s5 + $0x200] ss:$12 sps:$4 sm:$0xff]  }
 0x576   :  { %v9843_v34 = vpop.f32.mrb[68].mxu0 }
 0x577   :  { %v9845_v35 = vpop.f32.mrb[69].mxu0 }
 0x57a   :  { %v9847_v46 = vpop.f32.mrb[70].mxu0 }
 0x57b   :  { %v5788_v53 = vpop.f32.mrb[71].mxu0 }
 0x57c   :  { %v6138_v53 = vld [vmem:[%s10189_s5 + $0xb0] ss:$12 sps:$4 sm:$0xff]  }
 0x588   :  { %v5957_v25 = vpop.permute.xlu1 %5956 }
 0x589   :  { %v5952_v59 = vpop.permute.xlu0 %5951  ;;  %v5959_v37 = vunpack.i.h.bf16 %v5957_v25  ;;  %v5958_v36 = vunpack.i.l.bf16 %v5957_v25  ;;  %v6140_v25 = vld [vmem:[%s10189_s5 + $0x2d8] ss:$12 sps:$4 sm:$0xff]  }
 0x58a   :  { %v5954_v42 = vunpack.i.h.bf16 %v5952_v59  ;;  %v5953_v17 = vunpack.i.l.bf16 %v5952_v59  ;;  %v6146_v59 = vld [vmem:[%s10191_s6 + $0x4] ss:$8 sps:$4 sm:$0xff]  }
 0x58c   :  { %v3671_v26 = vsel %vm3670_vm11, %v9735_v51, %v5954_v42  ;;  %v3675_v49 = vsel %vm3670_vm11, %v9800_v38, %v5953_v17  ;;  %v6141_v42 = vld [vmem:[%s10189_s5 + $0x218] ss:$12 sps:$4 sm:$0xff]   ;;  %v6142_v17 = vld [vmem:[%s10189_s5 + $0x2f0] ss:$12 sps:$4 sm:$0xff]  }
 0x58d   :  { %v5962_v30 = vpop.permute.xlu0 %5961  ;;  %v3672_v6 = vsel %vm74_vm1, %v3671_v26, %v5959_v37  ;;  %v3676_v16 = vsel %vm74_vm1, %v3675_v49, %v5958_v36  ;;  %v6144_v37 = vld [vmem:[%s10191_s6] ss:$8 sps:$4 sm:$0xff]   ;;  %v6149_v36 = vld [vmem:[%s10191_s6 + $0x14] ss:$8 sps:$4 sm:$0xff]   ;;  %v6147_v49 = vld [vmem:[%s10191_s6 + $0x10] ss:$8 sps:$4 sm:$0xff]  }
 0x58e   :  { %v5964_v45 = vunpack.i.h.bf16 %v5962_v30  ;;  %v5963_v39 = vunpack.i.l.bf16 %v5962_v30  ;;  %v6143_v26 = vld [vmem:[%s10189_s5 + $0x230] ss:$12 sps:$4 sm:$0xff]   ;;  %v6152_v30 = vld [vmem:[%s10191_s6 + $0x24] ss:$8 sps:$4 sm:$0xff]  }
 0x590   :  { %v3674_v48 = vsel %vm3673_vm12, %v3672_v6, %v5964_v45  ;;  %v5967_v9 = vpop.permute.xlu1 %5966  ;;  %v3677_v61 = vsel %vm3673_vm12, %v3676_v16, %v5963_v39  ;;  %v6150_v45 = vld [vmem:[%s10191_s6 + $0x20] ss:$8 sps:$4 sm:$0xff]   ;;  %v10899_v39 = vmov 0   ;;  %v6155_v6 = vld [vmem:[%s10191_s6 + $0x34] ss:$8 sps:$4 sm:$0xff]  }
 0x591   :  { %v9857_v5 = vpack.c.bf16 %v3674_v48, %v3674_v48  ;;  %v5969_v4 = vunpack.i.h.bf16 %v5967_v9  ;;  %v5968_v51 = vunpack.i.l.bf16 %v5967_v9  ;;  %v5972_v10 = vpop.permute.xlu0 %5971  ;;  %v3685_v47 = vpack.c.bf16 %v3677_v61, %v3677_v61  ;;  %v6153_v16 = vld [vmem:[%s10191_s6 + $0x30] ss:$8 sps:$4 sm:$0xff]   ;;  %v6158_v48 = vld [vmem:[%s10191_s6 + $0x44] ss:$8 sps:$4 sm:$0xff]   ;;  %v6156_v9 = vld [vmem:[%s10191_s6 + $0x40] ss:$8 sps:$4 sm:$0xff]  }
 0x592   :  { %v5974_v38 = vunpack.i.h.bf16 %v5972_v10  ;;  %v5973_v31 = vunpack.i.l.bf16 %v5972_v10  ;;  %v6161_v61 = vld [vmem:[%s10191_s6 + $0x54] ss:$8 sps:$4 sm:$0xff]  }
 0x593   :  { %v3678_v44 = vsel %vm3670_vm11, %v3585_v43, %v5969_v4  ;;  %v3681_v14 = vsel %vm3670_vm11, %v3605_v2, %v5968_v51  ;;  %4524 = vmatprep.mubr.bf16.mxu1 %v3685_v47  ;;  %v6129_v43 = vld [vmem:[%s10189_s5 + $0x290] ss:$12 sps:$4 sm:$0xff]   ;;  %v6164_v4 = vld [vmem:[%s10191_s6 + $0x64] ss:$8 sps:$4 sm:$0xff]   ;;  %v6162_v51 = vld [vmem:[%s10191_s6 + $0x60] ss:$8 sps:$4 sm:$0xff]  }
 0x594   :  { %4525 = vmatmul.mubr.bf16.vlgmr.msra.gmra.mrb[96].mxu1 %v9857_v5  ;;  %v5977_v11 = vpop.permute.xlu1 %5976  ;;  %v3679_v7 = vsel %vm74_vm1, %v3678_v44, %v5974_v38  ;;  %v3682_v24 = vsel %vm74_vm1, %v3681_v14, %v5973_v31  ;;  %v6136_v2 = vld [vmem:[%s10189_s5 + $0x170] ss:$12 sps:$4 sm:$0xff]   ;;  %v6168_v38 = vld [vmem:[%s10191_s6 + $0x80] ss:$8 sps:$4 sm:$0xff]   ;;  %v6176_v44 = vld [vmem:[%s10191_s6 + $0xa4] ss:$8 sps:$4 sm:$0xff]  }
 0x595   :  { %5677 = vmatpush3.bf16.msra.mxu1 %v6110_v60  ;;  %v5979_v41 = vunpack.i.h.bf16 %v5977_v11  ;;  %v5978_v3 = vunpack.i.l.bf16 %v5977_v11  ;;  %4606 = vmatprep.mubr.bf16.mxu1 %v3685_v47  ;;  %v6167_v10 = vld [vmem:[%s10191_s6 + $0x74] ss:$8 sps:$4 sm:$0xff]   ;;  %v6165_v47 = vld [vmem:[%s10191_s6 + $0x70] ss:$8 sps:$4 sm:$0xff]   ;;  %v6170_v60 = vld [vmem:[%s10191_s6 + $0x84] ss:$8 sps:$4 sm:$0xff]  }
 0x596   :  { %5678 = vmatprep.subr.bf16.mxu1 %v6114_v23  ;;  %v6173_v31 = vld [vmem:[%s10191_s6 + $0x94] ss:$8 sps:$4 sm:$0xff]   ;;  %v6171_v23 = vld [vmem:[%s10191_s6 + $0x90] ss:$8 sps:$4 sm:$0xff]   ;;  %v6174_v14 = vld [vmem:[%s10191_s6 + $0xa0] ss:$8 sps:$4 sm:$0xff]  }
 0x597   :  { %v3680_v20 = vsel %vm3673_vm12, %v3679_v7, %v5979_v41  ;;  %v3683_v56 = vsel %vm3673_vm12, %v3682_v24, %v5978_v3  ;;  %v6179_v11 = vld [vmem:[%s10191_s6 + $0xb4] ss:$8 sps:$4 sm:$0xff]   ;;  %v6177_v41 = vld [vmem:[%s10191_s6 + $0xb0] ss:$8 sps:$4 sm:$0xff]   ;;  %v6180_v3 = vld [vmem:[%s10191_s6 + $0xc0] ss:$8 sps:$4 sm:$0xff]  }
 0x598   :  { %v9878_v62 = vpack.c.bf16 %v3680_v20, %v3680_v20  ;;  %v3687_v55 = vpack.c.bf16 %v3683_v56, %v3683_v56  ;;  %v6185_v7 = vld [vmem:[%s10191_s6 + $0xd4] ss:$8 sps:$4 sm:$0xff]   ;;  %v6183_v24 = vld [vmem:[%s10191_s6 + $0xd0] ss:$8 sps:$4 sm:$0xff]   ;;  %v6188_v20 = vld [vmem:[%s10191_s6 + $0xe4] ss:$8 sps:$4 sm:$0xff]  }
 0x599   :  { %5679 = vmatpush3.bf16.msra.mxu1 %v6115_v57  ;;  %v6182_v57 = vld [vmem:[%s10191_s6 + $0xc4] ss:$8 sps:$4 sm:$0xff]   ;;  %v6191_v56 = vld [vmem:[%s10191_s6 + $0xf4] ss:$8 sps:$4 sm:$0xff]  }
 0x59a   :  { %4565 = vmatprep.mubr.bf16.mxu0 %v3687_v55  ;;  %5680 = vmatprep.subr.bf16.mxu1 %v6116_v1  ;;  %v6186_v1 = vld [vmem:[%s10191_s6 + $0xe0] ss:$8 sps:$4 sm:$0xff]  }
 0x59b   :  { %4566 = vmatmul.mubr.bf16.vlgmr.msra.gmra.mrb[72].mxu0 %v9878_v62 }
 0x59c   :  { %5699 = vmatpush3.bf16.msra.mxu0 %v6119_v27  ;;  %4646 = vmatprep.mubr.bf16.mxu0 %v3687_v55  ;;  %v6194_v55 = vld [vmem:[%s10191_s6 + $0x104] ss:$8 sps:$4 sm:$0xff]  }
 0x59d   :  { %5681 = vmatpush3.bf16.msra.mxu1 %v6118_v22  ;;  %5700 = vmatprep.subr.bf16.mxu0 %v6121_v40  ;;  %v6216_v27 = vld [vmem:[%s10192_s7] sm:$0xff]   ;;  %v6217_v22 = vld [vmem:[%s10192_s7 + $0x8] sm:$0xff]   ;;  %v6218_v40 = vld [vmem:[%s10192_s7 + $0x10] sm:$0xff]  }
 0x59e   :  { %5682 = vmatprep.subr.bf16.mxu1 %v6120_v18  ;;  %v6219_v18 = vld [vmem:[%s10192_s7 + $0x18] sm:$0xff]  }
 0x5a0   :  { %5701 = vmatpush3.bf16.msra.mxu0 %v6123_v13  ;;  %v6220_v13 = vld [vmem:[%s10192_s7 + $0x20] sm:$0xff]  }
 0x5a1   :  { %5683 = vmatpush3.bf16.msra.mxu1 %v6122_v58  ;;  %5702 = vmatprep.subr.bf16.mxu0 %v6125_v8  ;;  %v6221_v58 = vld [vmem:[%s10192_s7 + $0x28] sm:$0xff]   ;;  %v6222_v8 = vld [vmem:[%s10192_s7 + $0x30] sm:$0xff]  }
 0x5a2   :  { %5684 = vmatprep.subr.bf16.mxu1 %v6124_v52  ;;  %v6223_v52 = vld [vmem:[%s10192_s7 + $0x38] sm:$0xff]  }
 0x5a4   :  { %5703 = vmatpush3.bf16.msra.mxu0 %v6127_v50  ;;  %v6224_v50 = vld [vmem:[%s10192_s7 + $0x40] sm:$0xff]  }
 0x5a5   :  { %5685 = vmatpush3.bf16.msra.mxu1 %v6126_v32  ;;  %5704 = vmatprep.subr.bf16.mxu0 %v6129_v43  ;;  %v6225_v32 = vld [vmem:[%s10192_s7 + $0x48] sm:$0xff]  }
 0x5a6   :  { %5686 = vmatprep.subr.bf16.mxu1 %v6128_v15 }
 0x5a8   :  { %5705 = vmatpush3.bf16.msra.mxu0 %v6131_v63 }
 0x5a9   :  { %5687 = vmatpush3.bf16.msra.mxu1 %v6130_v0  ;;  %5706 = vmatprep.subr.bf16.mxu0 %v6133_v12 }
 0x5aa   :  { %5688 = vmatprep.subr.bf16.mxu1 %v6132_v29 }
 0x5ac   :  { %5707 = vmatpush3.bf16.msra.mxu0 %v6135_v19  ;;  %v10106_v19 = vld [vmem:[%s10188_s8] sm:$0xff] }
 0x5ad   :  { %5689 = vmatpush3.bf16.msra.mxu1 %v6134_v54  ;;  %5708 = vmatprep.subr.bf16.mxu0 %v6137_v21  ;;  %v10900_v54 = vld [vmem:[#allocation71_spill] sm:$0xff] }
 0x5ae   :  { %5690 = vmatprep.subr.bf16.mxu1 %v6136_v2  ;;  %v4657_v21 = vrot.slane %v10106_v19, %v10900_v54 }
 0x5b0   :  { %5709 = vmatpush3.bf16.msra.mxu0 %v6139_v28  ;;  %v10113_v28 = vld [vmem:[%s10188_s8 + $0x8] sm:$0xff] }
 0x5b1   :  { %5691 = vmatpush3.bf16.msra.mxu1 %v6138_v53  ;;  %5710 = vmatprep.subr.bf16.mxu0 %v6140_v25 }
 0x5b2   :  { %4971 = vmatprep.subr.bf16.mxu1 %v6146_v59 }
 0x5b4   :  { %4607 = vmatmul.mubr.bf16.vlgmr.msra.gmra.mrb[100].mxu1 %v9857_v5  ;;  %5711 = vmatpush3.bf16.msra.mxu0 %v6141_v42  ;;  %v6159_v5 = vld [vmem:[%s10191_s6 + $0x50] ss:$8 sps:$4 sm:$0xff]  }
 0x5b5   :  { %5712 = vmatprep.subr.bf16.mxu0 %v6142_v17  ;;  %4972 = vmatpush1.bf16.msra.mxu1 %v6144_v37 }
 0x5b6   :  { %4973 = vmatprep.subr.bf16.mxu1 %v6149_v36 }
 0x5b8   :  { %5713 = vmatpush3.bf16.msra.mxu0 %v6143_v26 }
 0x5b9   :  { %4974 = vmatpush1.bf16.msra.mxu1 %v6147_v49  ;;  %5160 = vmatprep.subr.bf16.mxu0 %v10899_v39 }
 0x5ba   :  { %4975 = vmatprep.subr.bf16.mxu1 %v6152_v30  ;;  %v6192_v30 = vld [vmem:[%s10191_s6 + $0x100] ss:$8 sps:$4 sm:$0xff]  }
 0x5bb   :  { %4647 = vmatmul.mubr.bf16.vlgmr.msra.gmra.mrb[76].mxu0 %v9878_v62  ;;  %v6189_v62 = vld [vmem:[%s10191_s6 + $0xf0] ss:$8 sps:$4 sm:$0xff]  }
 0x5bc   :  { %5161 = vmatpush1.bf16.msra.mxu0 %v6216_v27 }
 0x5bd   :  { %4976 = vmatpush1.bf16.msra.mxu1 %v6150_v45  ;;  %5162 = vmatprep.subr.bf16.mxu0 %v10899_v39 }
 0x5be   :  { %4977 = vmatprep.subr.bf16.mxu1 %v6155_v6  ;;  %v6197_v6 = vld [vmem:[%s10191_s6 + $0x114] ss:$8 sps:$4 sm:$0xff]  }
 0x5c0   :  { %5163 = vmatpush1.bf16.msra.mxu0 %v6217_v22 }
 0x5c1   :  { %4978 = vmatpush1.bf16.msra.mxu1 %v6153_v16  ;;  %5164 = vmatprep.subr.bf16.mxu0 %v10899_v39  ;;  %v6195_v16 = vld [vmem:[%s10191_s6 + $0x110] ss:$8 sps:$4 sm:$0xff]  }
 0x5c2   :  { %4979 = vmatprep.subr.bf16.mxu1 %v6158_v48  ;;  %v6200_v48 = vld [vmem:[%s10191_s6 + $0x124] ss:$8 sps:$4 sm:$0xff]  }
 0x5c4   :  { %5165 = vmatpush1.bf16.msra.mxu0 %v6218_v40 }
 0x5c5   :  { %4980 = vmatpush1.bf16.msra.mxu1 %v6156_v9  ;;  %5166 = vmatprep.subr.bf16.mxu0 %v10899_v39  ;;  %v6198_v9 = vld [vmem:[%s10191_s6 + $0x120] ss:$8 sps:$4 sm:$0xff]  }
 0x5c6   :  { %4981 = vmatprep.subr.bf16.mxu1 %v6161_v61  ;;  %v6203_v61 = vld [vmem:[%s10191_s6 + $0x134] ss:$8 sps:$4 sm:$0xff]  }
 0x5c8   :  { %5167 = vmatpush1.bf16.msra.mxu0 %v6219_v18  ;;  %v6226_v18 = vld [vmem:[%s10192_s7 + $0x50] sm:$0xff]  }
 0x5c9   :  { %4982 = vmatpush1.bf16.msra.mxu1 %v6159_v5  ;;  %5168 = vmatprep.subr.bf16.mxu0 %v10899_v39  ;;  %v6201_v5 = vld [vmem:[%s10191_s6 + $0x130] ss:$8 sps:$4 sm:$0xff]  }
 0x5ca   :  { %4983 = vmatprep.subr.bf16.mxu1 %v6164_v4  ;;  %v6206_v4 = vld [vmem:[%s10191_s6 + $0x144] ss:$8 sps:$4 sm:$0xff]  }
 0x5cc   :  { %5169 = vmatpush1.bf16.msra.mxu0 %v6220_v13  ;;  %v6227_v13 = vld [vmem:[%s10192_s7 + $0x58] sm:$0xff]  }
 0x5cd   :  { %4984 = vmatpush1.bf16.msra.mxu1 %v6162_v51  ;;  %5170 = vmatprep.subr.bf16.mxu0 %v10899_v39  ;;  %v6204_v51 = vld [vmem:[%s10191_s6 + $0x140] ss:$8 sps:$4 sm:$0xff]  }
 0x5ce   :  { %4985 = vmatprep.subr.bf16.mxu1 %v6167_v10 }
 0x5d0   :  { %5171 = vmatpush1.bf16.msra.mxu0 %v6221_v58  ;;  %v4725_v58 = vsub.s32 1, %v6891_v33 }
 0x5d1   :  { %4986 = vmatpush1.bf16.msra.mxu1 %v6165_v47  ;;  %5172 = vmatprep.subr.bf16.mxu0 %v10899_v39  ;;  %v6209_v47 = vld [vmem:[%s10191_s6 + $0x154] ss:$8 sps:$4 sm:$0xff]  }
 0x5d2   :  { %4987 = vmatprep.subr.bf16.mxu1 %v6170_v60 }
 0x5d4   :  { %5173 = vmatpush1.bf16.msra.mxu0 %v6222_v8  ;;  %v4726_v8 = vrot.slane %v10106_v19, %v4725_v58 }
 0x5d5   :  { %4988 = vmatpush1.bf16.msra.mxu1 %v6168_v38  ;;  %5174 = vmatprep.subr.bf16.mxu0 %v10899_v39 }
 0x5d6   :  { %4989 = vmatprep.subr.bf16.mxu1 %v6173_v31 }
 0x5d8   :  { %5175 = vmatpush1.bf16.msra.mxu0 %v6223_v52  ;;  %v4730_v52 = vrot.slane %v10113_v28, %v4725_v58 }
 0x5d9   :  { %4990 = vmatpush1.bf16.msra.mxu1 %v6171_v23  ;;  %5176 = vmatprep.subr.bf16.mxu0 %v10899_v39 }
 0x5da   :  { %4991 = vmatprep.subr.bf16.mxu1 %v6176_v44  ;;  %v6207_v44 = vld [vmem:[%s10191_s6 + $0x150] ss:$8 sps:$4 sm:$0xff]  }
 0x5dc   :  { %5177 = vmatpush1.bf16.msra.mxu0 %v6224_v50 }
 0x5dd   :  { %4992 = vmatpush1.bf16.msra.mxu1 %v6174_v14  ;;  %5178 = vmatprep.subr.bf16.mxu0 %v10899_v39 }
 0x5de   :  { %4993 = vmatprep.subr.bf16.mxu1 %v6179_v11  ;;  %v6212_v11 = vld [vmem:[%s10191_s6 + $0x164] ss:$8 sps:$4 sm:$0xff]  }
 0x5e0   :  { %5179 = vmatpush1.bf16.msra.mxu0 %v6225_v32 }
 0x5e1   :  { %4994 = vmatpush1.bf16.msra.mxu1 %v6177_v41  ;;  %5180 = vmatprep.subr.bf16.mxu0 %v10899_v39 }
 0x5e2   :  { %4995 = vmatprep.subr.bf16.mxu1 %v6182_v57 }
 0x5e4   :  { %5181 = vmatpush1.bf16.msra.mxu0 %v6226_v18 }
 0x5e5   :  { %4996 = vmatpush1.bf16.msra.mxu1 %v6180_v3  ;;  %v6210_v3 = vld [vmem:[%s10191_s6 + $0x160] ss:$8 sps:$4 sm:$0xff]   ;;  %5182 = vmatprep.subr.bf16.mxu0 %v10899_v39 }
 0x5e6   :  { %4997 = vmatprep.subr.bf16.mxu1 %v6185_v7  ;;  %v6215_v7 = vld [vmem:[%s10191_s6 + $0x174] ss:$8 sps:$4 sm:$0xff]  }
 0x5e8   :  { %5183 = vmatpush1.bf16.msra.mxu0 %v6227_v13 }
 0x5e9   :  { %4998 = vmatpush1.bf16.msra.mxu1 %v6183_v24 }
 0x5ea   :  { %4999 = vmatprep.subr.bf16.mxu1 %v6188_v20 }
 0x5ed   :  { %5000 = vmatpush1.bf16.msra.mxu1 %v6186_v1 }
 0x5ee   :  { %5001 = vmatprep.subr.bf16.mxu1 %v6191_v56 }
 0x5f1   :  { %5002 = vmatpush1.bf16.msra.mxu1 %v6189_v62 }
 0x5f2   :  { %5012 = vmatprep.subr.bf16.mxu1 %v6194_v55  ;;  %v6213_v55 = vld [vmem:[%s10191_s6 + $0x170] ss:$8 sps:$4 sm:$0xff]  }
 0x667   :  { %v4526_v43 = vpop.f32.mrb[96].mxu1 }
 0x668   :  { %v4527_v15 = vadd.f32 %v4526_v43, %v9843_v34  ;;  %v4528_v63 = vpop.f32.mrb[97].mxu1  ;;  %v4661_v34 = vrot.slane %v10113_v28, %v10900_v54 }
 0x669   :  { %v4529_v0 = vadd.f32 %v4528_v63, %v9845_v35  ;;  %v4530_v12 = vpop.f32.mrb[98].mxu1 }
 0x66a   :  { %v4531_v29 = vpop.f32.mrb[99].mxu1 }
 0x66e   :  { %v4567_v2 = vpop.f32.mrb[72].mxu0 }
 0x66f   :  { %v4568_v35 = vadd.f32 %v4567_v2, %v4527_v15  ;;  %v4569_v53 = vpop.f32.mrb[73].mxu0 }
 0x670   :  { %v4570_v25 = vadd.f32 %v4569_v53, %v4529_v0  ;;  %v4571_v59 = vpop.f32.mrb[74].mxu0 }
 0x671   :  { %v4666_v42 = vadd.f32 %v4657_v21, %v4568_v35  ;;  %v4572_v17 = vpop.f32.mrb[75].mxu0 }
 0x672   :  { %v4667_v37 = vadd.f32 %v4661_v34, %v4570_v25 }
 0x673   :  { %v4669_v36 = vmax.f32 %v4666_v42, 0.0 }
 0x674   :  { %v4670_v26 = vmax.f32 %v4667_v37, 0.0 }
 0x675   :  { %v4672_v45 = vpack.c.bf16 %v4669_v36, %v4669_v36 }
 0x676   :  { %v4673_v49 = vpack.c.bf16 %v4670_v26, %v4670_v26 }
 0x678   :  { %5003 = vmatprep.mubr.bf16.mxu1 %v4673_v49 }
 0x679   :  { %5004 = vmatmul.mubr.bf16.vlgmr.msra.gmra.mrb[104].mxu1 %v4672_v45 }
 0x67a   :  { %5013 = vmatpush1.bf16.msra.mxu1 %v6192_v30  ;;  %5044 = vmatprep.mubr.bf16.mxu1 %v10899_v39  ;;  %v5083_v39 = vsub.s32 2, %v6891_v33 }
 0x67b   :  { %5014 = vmatprep.subr.bf16.mxu1 %v6197_v6 }
 0x67c   :  { %v5084_v2 = vrot.slane %v10106_v19, %v5083_v39 }
 0x67e   :  { %5015 = vmatpush1.bf16.msra.mxu1 %v6195_v16 }
 0x67f   :  { %5016 = vmatprep.subr.bf16.mxu1 %v6200_v48 }
 0x682   :  { %5017 = vmatpush1.bf16.msra.mxu1 %v6198_v9 }
 0x683   :  { %5018 = vmatprep.subr.bf16.mxu1 %v6203_v61 }
 0x686   :  { %5019 = vmatpush1.bf16.msra.mxu1 %v6201_v5 }
 0x687   :  { %v5692_v10 = vpop.f32.mrb[100].mxu1  ;;  %5020 = vmatprep.subr.bf16.mxu1 %v6206_v4 }
 0x688   :  { %v5693_v60 = vpop.f32.mrb[101].mxu1 }
 0x689   :  { %v5694_v38 = vadd.f32 %v5693_v60, %v5692_v10  ;;  %v5695_v31 = vpop.f32.mrb[102].mxu1 }
 0x68a   :  { %v5696_v23 = vpop.f32.mrb[103].mxu1  ;;  %5021 = vmatpush1.bf16.msra.mxu1 %v6204_v51 }
 0x68b   :  { %v4609_v14 = vadd.f32 %v5694_v38, %v9847_v46  ;;  %5022 = vmatprep.subr.bf16.mxu1 %v6209_v47  ;;  %v6311_v46 = vld [vmem:[%s10188_s8 + $0x10] sm:$0xff] }
 0x68c   :  { %v4665_v1 = vrot.slane %v6311_v46, %v10900_v54 }
 0x68e   :  { %v5714_v41 = vpop.f32.mrb[76].mxu0  ;;  %5023 = vmatpush1.bf16.msra.mxu1 %v6207_v44 }
 0x68f   :  { %v5715_v57 = vpop.f32.mrb[77].mxu0  ;;  %5024 = vmatprep.subr.bf16.mxu1 %v6212_v11 }
 0x690   :  { %v5716_v24 = vadd.f32 %v5715_v57, %v5714_v41  ;;  %v5717_v20 = vpop.f32.mrb[78].mxu0 }
 0x691   :  { %v5718_v56 = vpop.f32.mrb[79].mxu0 }
 0x692   :  { %v4649_v62 = vadd.f32 %v5716_v24, %v4609_v14  ;;  %5025 = vmatpush1.bf16.msra.mxu1 %v6210_v3 }
 0x693   :  { %5026 = vmatprep.subr.bf16.mxu1 %v6215_v7 }
 0x694   :  { %v4668_v27 = vadd.f32 %v4665_v1, %v4649_v62 }
 0x696   :  { %v4671_v22 = vmax.f32 %v4668_v27, 0.0  ;;  %5027 = vmatpush1.bf16.msra.mxu1 %v6213_v55 }
 0x698   :  { %v4674_v40 = vpack.c.bf16 %v4671_v22, %v4671_v22 }
 0x69a   :  { %5045 = vmatmul.mubr.bf16.vlgmr.msra.gmra.mrb[104].mxu1 %v4674_v40 }
 0x76d   :  { %v5046_v50 = vpop.f32.mrb[104].mxu1 }
 0x76e   :  { %v5801_v32 = vadd.f32 %v5046_v50, %v4726_v8  ;;  %v5048_v43 = vpop.f32.mrb[105].mxu1 }
 0x76f   :  { %v5802_v15 = vadd.f32 %v5048_v43, %v4730_v52  ;;  %v5050_v63 = vpop.f32.mrb[106].mxu1 }
 0x770   :  { %v5053_v0 = vmax.f32 %v5801_v32, 0.0  ;;  %v5051_v12 = vpop.f32.mrb[107].mxu1 }
 0x771   :  { %v5054_v29 = vmax.f32 %v5802_v15, 0.0 }
 0x772   :  { %v5055_v21 = vpack.c.bf16 %v5053_v0, %v5053_v0 }
 0x773   :  { %v5056_v54 = vpack.c.bf16 %v5054_v29, %v5054_v29 }
 0x775   :  { %5418 = vmatprep.mubr.msk.bf16.mxu0 %vm74_vm1, %v5056_v54 }
 0x776   :  { %5193 = vmatmul.mubr.bf16.vlgmr.msra.gmra.mrb[80].mxu0 %v5055_v21 }
 0x849   :  { %v5194_v34 = vpop.f32.mrb[80].mxu0 }
 0x84a   :  { %v5195_v35 = vadd.f32 %v5194_v34, %v5084_v2  ;;  %v5196_v28 = vpop.f32.mrb[81].mxu0 }
 0x84b   :  { %v5197_v53 = vpop.f32.mrb[82].mxu0 }
 0x84c   :  { %5200 = vst [vmem:[%s10193_s9] sm:$0x3] %v5195_v35  ;;  %v5198_v25 = vpop.f32.mrb[83].mxu0 }

</bundles_post_ra>
